<compile_context>
chip_gen: v7x
topology: tpu7x:2x2x1
jax: 0.10.0
libtpu: 0.0.40
codegen_flags: <defaults>
</compile_context>

<pallas_src>
import functools

import jax
import jax.numpy as jnp
from jax.experimental import pallas as pl
from jax.experimental.pallas import tpu as pltpu

_LANES = 128


def _round_up(n, m):
    return max(m, ((n + m - 1) // m) * m)


# ---------------------------------------------------------------------------
# Pallas kernel: one grid step processes `nb` images, fully fused:
#   bn0+relu -> conv1(1x1)+bn+relu -> conv2(3x3,pad1)+bn+relu
#   -> conv3(1x1)+bn+relu -> SE(avg-pool, fc, relu, fc, sigmoid, scale)
#   -> + skip (1x1 conv with bias, or identity)
# ---------------------------------------------------------------------------
def _rese_kernel(x_ref, bn0s_ref, bn0b_ref, w1_ref, b1_ref, w2c_ref, b2_ref,
                 w3_ref, b3_ref, wfc1_ref, wfc2_ref, wsk_ref, bsk_ref,
                 o_ref, *, nb, Ho, Wo, Cout, use_skip):
    f32 = jnp.float32
    bf16 = jnp.bfloat16
    M = nb * Ho * Wo
    Cin = x_ref.shape[-1]
    Cmid_p = w1_ref.shape[-1]
    Cout_p = w3_ref.shape[-1]
    inv_hw = 1.0 / float(Ho * Wo)

    # ---- load (bf16) + bn0 + relu, flattened to (M, Cin) --------------------
    x2 = x_ref[...].reshape(M, Cin)                               # bf16
    xb = jnp.maximum(x2.astype(f32) * bn0s_ref[...] + bn0b_ref[...], 0.0)

    # ---- conv1: 1x1 (stride applied by wrapper subsampling) + BN + ReLU -----
    h1 = jnp.maximum(
        jnp.dot(xb.astype(bf16), w1_ref[...], preferred_element_type=f32)
        + b1_ref[...], 0.0)                                       # (M, Cmid_p) f32

    # ---- conv2: 3x3, pad=1, stride=1 + BN + ReLU -----------------------------
    # One dot per horizontal tap dx, with the 3 vertical taps (dy) concatenated
    # along K: (M, 3*Cmid_p) @ (3*Cmid_p, Cmid_p).  No padded scratch, no
    # misaligned stores; horizontal shifts are zero-filled column shifts and
    # vertical shifts are slab-aligned zero-row concats.
    h1f = h1.reshape(nb, Ho, Wo, Cmid_p)
    zrow = jnp.zeros((nb, 1, Wo, Cmid_p), bf16)

    def _shift_w(v, dx):
        if dx == 1:
            return v
        zcol = jnp.zeros((nb, Ho, 1, Cmid_p), v.dtype)
        if dx == 0:                                   # needs h1[..., x-1, :]
            return jnp.concatenate([zcol, v[:, :, :Wo - 1, :]], axis=2)
        return jnp.concatenate([v[:, :, 1:, :], zcol], axis=2)    # x+1

    acc = None
    for dx in range(3):
        shb = _shift_w(h1f, dx).astype(bf16)                      # (nb,Ho,Wo,Cmid_p)
        vcat = jnp.concatenate([zrow, shb, zrow], axis=1)         # (nb,Ho+2,Wo,Cmid_p)
        tap = jnp.concatenate(
            [vcat[:, 0:Ho], vcat[:, 1:Ho + 1], vcat[:, 2:Ho + 2]], axis=-1)
        contrib = jnp.dot(tap.reshape(M, 3 * Cmid_p), w2c_ref[dx],
                          preferred_element_type=f32)
        acc = contrib if acc is None else acc + contrib
    h2 = jnp.maximum(acc + b2_ref[...], 0.0)                      # (M, Cmid_p) f32

    # ---- conv3: 1x1 + BN + ReLU ----------------------------------------------
    h3 = jnp.maximum(
        jnp.dot(h2.astype(bf16), w3_ref[...], preferred_element_type=f32)
        + b3_ref[...], 0.0)                                       # (M, Cout_p) f32

    # ---- SE: global avg-pool -> fc -> relu -> fc -> sigmoid -> scale ---------
    h3r = h3.reshape(nb, Ho * Wo, Cout_p)
    y = jnp.sum(h3r, axis=1) * inv_hw                             # (nb, Cout_p)
    z = jnp.maximum(jnp.dot(y.astype(bf16), wfc1_ref[...],
                            preferred_element_type=f32), 0.0)     # (nb, Cred)
    z = jax.nn.sigmoid(jnp.dot(z.astype(bf16), wfc2_ref[...],
                               preferred_element_type=f32))       # (nb, Cout_p)
    h_se = (h3r * z[:, None, :]).reshape(M, Cout_p)

    # ---- skip branch (1x1 conv with bias, no BN/ReLU) or identity ------------
    if use_skip:
        res = (jnp.dot(x2, wsk_ref[...], preferred_element_type=f32)
               + bsk_ref[...])                                    # (M, Cout_p)
        out = (h_se + res)[:, :Cout]
    else:
        out = h_se[:, :Cout] + x2.astype(f32)                     # Cin == Cout

    # Unpadded (lane-sliced) store: HBM gets only the real Cout channels.
    o_ref[...] = out.reshape(nb, Ho, Wo, Cout).astype(o_ref.dtype)


# ---------------------------------------------------------------------------
# Parameter folding: eval-mode BN -> per-channel scale/shift folded into the
# convs, matmul weights in bf16, Cmid/Cout padded for lane-dense intermediates.
# ---------------------------------------------------------------------------
def _fold_params(raw, eps, cmid_p, cout_p, use_skip):
    f32 = jnp.float32
    bf16 = jnp.bfloat16

    def sb(bn):
        s = bn['gamma'] / jnp.sqrt(bn['var'] + eps)
        return s, bn['beta'] - bn['mean'] * s

    def pad_to(a, n, axis):
        extra = n - a.shape[axis]
        if extra <= 0:
            return a
        widths = [(0, 0)] * a.ndim
        widths[axis] = (0, extra)
        return jnp.pad(a, widths)

    s0, t0 = sb(raw['bn0'])
    s1, t1 = sb(raw['bn1'])
    s2, t2 = sb(raw['bn2'])
    s3, t3 = sb(raw['bn3'])

    p = {}
    p['bn0_s'] = s0[None, :].astype(f32)
    p['bn0_b'] = t0[None, :].astype(f32)
    # PyTorch conv weight (O, I, kh, kw) -> (I, O) / (kh, kw, I, O)
    p['w1'] = pad_to(raw['w1'][:, :, 0, 0].T * s1[None, :], cmid_p, 1).astype(bf16)
    p['b1'] = pad_to(raw['b1'] * s1 + t1, cmid_p, 0)[None, :].astype(f32)

    w2 = jnp.transpose(raw['w2'], (2, 3, 1, 0)) * s2[None, None, None, :]
    w2 = pad_to(pad_to(w2, cmid_p, 2), cmid_p, 3)                 # (3,3,Cmid_p,Cmid_p)
    # w2cat[dx] = concat over dy of w2[dy, dx] along K -> (3, 3*Cmid_p, Cmid_p)
    p['w2cat'] = jnp.transpose(w2, (1, 0, 2, 3)).reshape(
        3, 3 * cmid_p, cmid_p).astype(bf16)
    p['b2'] = pad_to(raw['b2'] * s2 + t2, cmid_p, 0)[None, :].astype(f32)

    w3 = raw['w3'][:, :, 0, 0].T * s3[None, :]                    # (Cmid, Cout)
    p['w3'] = pad_to(pad_to(w3, cmid_p, 0), cout_p, 1).astype(bf16)
    p['b3'] = pad_to(raw['b3'] * s3 + t3, cout_p, 0)[None, :].astype(f32)

    p['wfc1'] = pad_to(raw['wfc1'].T, cout_p, 0).astype(bf16)     # (Cout_p, Cred)
    p['wfc2'] = pad_to(raw['wfc2'].T, cout_p, 1).astype(bf16)     # (Cred, Cout_p)

    if use_skip:
        wsk = raw['wsk'][:, :, 0, 0].T                            # (Cin, Cout)
        p['wsk'] = pad_to(wsk, cout_p, 1).astype(bf16)
        p['bsk'] = pad_to(raw['bsk'], cout_p, 0)[None, :].astype(f32)
    else:  # identity skip: pass tiny dummies (never read by the kernel)
        p['wsk'] = jnp.zeros((1, _LANES), bf16)
        p['bsk'] = jnp.zeros((1, _LANES), f32)
    return p


# ---------------------------------------------------------------------------
# VMEM budgeting / batch-block selection
# ---------------------------------------------------------------------------
def _vmem_budget():
    try:
        cap = int(pltpu.get_tpu_info().vmem_capacity_bytes)
    except Exception:
        cap = 64 << 20                        # conservative default (v7x per-core)
    working = min(cap * 3 // 8, 64 << 20)     # ~24 MiB on v7x, 48 MiB on v5e/v6e
    limit = min(cap * 5 // 8, 96 << 20)       # ~40 MiB on v7x, 80 MiB on v5e/v6e
    return working, int(limit)


def _per_image_vmem_bytes(Ho, Wo, Cin, Cout, Cmid_p, Cout_p):
    hw = Ho * Wo
    blocks = 2 * (2 * hw * Cin) + 2 * (4 * hw * Cout)     # dbl-buffered in/out blocks
    conv12 = hw * Cmid_p * (4 + 4 + 2 + 4)                # h1, shifted f32/bf16, acc
    tap = hw * (3 * Cmid_p) * 2                           # K-concat tap (bf16)
    tail = hw * Cmid_p * 6 + hw * Cout_p * 12             # h2, h3 / h_se / res
    return blocks + conv12 + tap + tail


def _pick_batch_block(B, per_img, fixed_bytes, budget_bytes):
    # Cap nb so the grid keeps >= 2 "parallel" steps (v7x megacore) when B >= 2.
    cap = B if B < 2 else max(1, B // 2)
    nb = 1
    for d in range(1, B + 1):
        if B % d == 0 and d <= cap and fixed_bytes + d * per_img <= budget_bytes:
            nb = d
    return nb


# ---------------------------------------------------------------------------
# Wrapper: NCHW in / NCHW out; grid over blocks of nb images.
# ---------------------------------------------------------------------------
def rese_pallas(x_nchw, raw, stride=1, eps=1e-5):
    B, Cin, H, W = x_nchw.shape
    Cout = raw['w3'].shape[0]
    Cmid = raw['w1'].shape[0]
    use_skip = (Cin != Cout) or (stride != 1)

    Cmid_p = _round_up(Cmid, _LANES)          # lane-dense intermediates
    Cout_p = _round_up(Cout, _LANES)

    p = _fold_params(raw, eps, Cmid_p, Cout_p, use_skip)

    x = jnp.transpose(x_nchw, (0, 2, 3, 1))              # NHWC
    xs = x[:, ::stride, ::stride, :].astype(jnp.bfloat16)  # 1x1 stride == subsample
    Ho, Wo = xs.shape[1], xs.shape[2]

    params = (p['bn0_s'], p['bn0_b'], p['w1'], p['b1'], p['w2cat'], p['b2'],
              p['w3'], p['b3'], p['wfc1'], p['wfc2'], p['wsk'], p['bsk'])

    budget, vmem_limit = _vmem_budget()
    per_img = _per_image_vmem_bytes(Ho, Wo, Cin, Cout, Cmid_p, Cout_p)
    fixed = 2 * sum(a.size * a.dtype.itemsize for a in params)   # dbl-buffered weights
    nb = _pick_batch_block(B, per_img, fixed, budget)
    # NOTE: for production-sized feature maps a second ("arbitrary") grid axis
    # over Ho row tiles (1-row halo, two-pass SE) would cap the per-step working
    # set; the sizes used here fit whole images per step.  The constant weight
    # specs could also use pipeline_mode=pl.Buffered(1) once weights get large.

    kernel = functools.partial(_rese_kernel, nb=nb, Ho=Ho, Wo=Wo, Cout=Cout,
                               use_skip=use_skip)

    def _const_spec(a):
        zeros = (0,) * a.ndim
        return pl.BlockSpec(a.shape, lambda b, _z=zeros: _z)

    in_specs = [pl.BlockSpec((nb, Ho, Wo, Cin), lambda b: (b, 0, 0, 0))]
    in_specs += [_const_spec(a) for a in params]

    out = pl.pallas_call(
        kernel,
        out_shape=jax.ShapeDtypeStruct((B, Ho, Wo, Cout), jnp.float32),
        grid_spec=pltpu.PrefetchScalarGridSpec(
            num_scalar_prefetch=0,
            grid=(B // nb,),
            in_specs=in_specs,
            out_specs=pl.BlockSpec((nb, Ho, Wo, Cout), lambda b: (b, 0, 0, 0))),
        compiler_params=pltpu.CompilerParams(
            dimension_semantics=("parallel",),           # images are independent
            vmem_limit_bytes=vmem_limit),
    )(xs, *params)

    return jnp.transpose(out, (0, 3, 1, 2))              # back to NCHW


# ---------------------------------------------------------------------------
# Deterministic synthetic parameters (PyTorch-like shapes, eval-mode BN stats)
# ---------------------------------------------------------------------------
def init_raw_params(key, Cin, Cout, reduction=16):
    Cmid = Cout // 2
    Cred = max(Cout // reduction, 1)
    keys = iter(jax.random.split(key, 40))

    def n(shape, s=0.1):
        return jax.random.normal(next(keys), shape, jnp.float32) * s

    def u(shape):
        return jax.random.uniform(next(keys), shape, jnp.float32, 0.5, 1.5)

    def bn(c):
        return dict(gamma=1.0 + n((c,)), beta=n((c,)), mean=n((c,)), var=u((c,)))

    return dict(
        bn0=bn(Cin),
        w1=n((Cmid, Cin, 1, 1)), b1=n((Cmid,)), bn1=bn(Cmid),
        w2=n((Cmid, Cmid, 3, 3)), b2=n((Cmid,)), bn2=bn(Cmid),
        w3=n((Cout, Cmid, 1, 1)), b3=n((Cout,)), bn3=bn(Cout),
        wsk=n((Cout, Cin, 1, 1)), bsk=n((Cout,)),
        wfc1=n((Cred, Cout), 0.3), wfc2=n((Cout, Cred), 0.3),
    )


# ---------------------------------------------------------------------------
# Pure-JAX reference mirroring the PyTorch forward (NCHW, eval-mode BN)
# ---------------------------------------------------------------------------
def rese_reference(x, raw, stride, use_skip, eps=1e-5):
    def bn_relu(h, bn):
        s = bn['gamma'] / jnp.sqrt(bn['var'] + eps)
        t = bn['beta'] - bn['mean'] * s
        return jnp.maximum(h * s[None, :, None, None] + t[None, :, None, None], 0.0)

    def conv(h, w, b, stride, pad):
        o = jax.lax.conv_general_dilated(
            h, w, (stride, stride), [(pad, pad), (pad, pad)],
            dimension_numbers=('NCHW', 'OIHW', 'NCHW'))
        return o + b[None, :, None, None]

    out = bn_relu(x, raw['bn0'])
    out = bn_relu(conv(out, raw['w1'], raw['b1'], stride, 0), raw['bn1'])
    out = bn_relu(conv(out, raw['w2'], raw['b2'], 1, 1), raw['bn2'])
    out = bn_relu(conv(out, raw['w3'], raw['b3'], 1, 0), raw['bn3'])
    residual = conv(x, raw['wsk'], raw['bsk'], stride, 0) if use_skip else x
    # SE block (global avg pool since se == spatial dims)
    y = jnp.mean(out, axis=(2, 3))                      # (B, Cout)
    z = jnp.maximum(y @ raw['wfc1'].T, 0.0)
    z = jax.nn.sigmoid(z @ raw['wfc2'].T)
    out = out * z[:, :, None, None]
    return out + residual


if __name__ == "__main__":
    key = jax.random.PRNGKey(0)
    B, Cin, H, W = 2, 8, 16, 16
    Cout, stride = 32, 1            # inplanes != outplanes -> conv_skip path active
    kx, kp = jax.random.split(key)
    x = jax.random.normal(kx, (B, Cin, H, W), jnp.float32)
    raw = init_raw_params(kp, Cin, Cout)

    out = rese_pallas(x, raw, stride=stride)
    out = jax.block_until_ready(out)

    ref = rese_reference(x, raw, stride, use_skip=(Cin != Cout or stride != 1))
    err = float(jnp.max(jnp.abs(out - ref)))
    assert out.shape == (B, Cout, H // stride, W // stride), out.shape
    # bf16 MXU operands / bf16 input (f32 accumulation): a few e-3 of rounding
    # noise is expected; structural bugs would show up at >= 5e-2.
    assert err < 3e-2, f"max abs err {err}"
    print("KERNEL_OK")
</pallas_src>

<mosaic_0001>
module attributes {stable_mosaic.version = 11 : i64} {
  func.func @_rese_kernel(%arg0: i32, %arg1: memref<1x16x16x8xbf16, #tpu.memory_space<vmem>>, %arg2: memref<1x8xf32, #tpu.memory_space<vmem>>, %arg3: memref<1x8xf32, #tpu.memory_space<vmem>>, %arg4: memref<8x128xbf16, #tpu.memory_space<vmem>>, %arg5: memref<1x128xf32, #tpu.memory_space<vmem>>, %arg6: memref<3x384x128xbf16, #tpu.memory_space<vmem>>, %arg7: memref<1x128xf32, #tpu.memory_space<vmem>>, %arg8: memref<128x128xbf16, #tpu.memory_space<vmem>>, %arg9: memref<1x128xf32, #tpu.memory_space<vmem>>, %arg10: memref<128x2xbf16, #tpu.memory_space<vmem>>, %arg11: memref<2x128xbf16, #tpu.memory_space<vmem>>, %arg12: memref<8x128xbf16, #tpu.memory_space<vmem>>, %arg13: memref<1x128xf32, #tpu.memory_space<vmem>>, %arg14: memref<1x16x16x32xf32, #tpu.memory_space<vmem>>) attributes {dimension_semantics = [#tpu.dimension_semantics<parallel>], iteration_bounds = array<i64: 2>, scalar_prefetch = 0 : i64, scratch_operands = 0 : i64, tpu.core_type = #tpu.core_type<tc>, window_params = [{transform_indices = @transform_0, window_bounds = array<i64: 1, 16, 16, 8>}, {pipeline_mode = #tpu.pipeline_mode<synchronous>, transform_indices = @transform_1, window_bounds = array<i64: 1, 8>}, {pipeline_mode = #tpu.pipeline_mode<synchronous>, transform_indices = @transform_2, window_bounds = array<i64: 1, 8>}, {pipeline_mode = #tpu.pipeline_mode<synchronous>, transform_indices = @transform_3, window_bounds = array<i64: 8, 128>}, {pipeline_mode = #tpu.pipeline_mode<synchronous>, transform_indices = @transform_4, window_bounds = array<i64: 1, 128>}, {pipeline_mode = #tpu.pipeline_mode<synchronous>, transform_indices = @transform_5, window_bounds = array<i64: 3, 384, 128>}, {pipeline_mode = #tpu.pipeline_mode<synchronous>, transform_indices = @transform_6, window_bounds = array<i64: 1, 128>}, {pipeline_mode = #tpu.pipeline_mode<synchronous>, transform_indices = @transform_7, window_bounds = array<i64: 128, 128>}, {pipeline_mode = #tpu.pipeline_mode<synchronous>, transform_indices = @transform_8, window_bounds = array<i64: 1, 128>}, {pipeline_mode = #tpu.pipeline_mode<synchronous>, transform_indices = @transform_9, window_bounds = array<i64: 128, 2>}, {pipeline_mode = #tpu.pipeline_mode<synchronous>, transform_indices = @transform_10, window_bounds = array<i64: 2, 128>}, {pipeline_mode = #tpu.pipeline_mode<synchronous>, transform_indices = @transform_11, window_bounds = array<i64: 8, 128>}, {pipeline_mode = #tpu.pipeline_mode<synchronous>, transform_indices = @transform_12, window_bounds = array<i64: 1, 128>}, {transform_indices = @transform_13, window_bounds = array<i64: 1, 16, 16, 32>}]} {
    %c0 = arith.constant 0 : index
    %c0_0 = arith.constant 0 : index
    %c0_1 = arith.constant 0 : index
    %c0_2 = arith.constant 0 : index
    %0 = vector.load %arg1[%c0, %c0_0, %c0_1, %c0_2] : memref<1x16x16x8xbf16, #tpu.memory_space<vmem>>, vector<1x16x16x8xbf16>
    %1 = vector.shape_cast %0 : vector<1x16x16x8xbf16> to vector<256x8xbf16>
    %2 = arith.extf %1 : vector<256x8xbf16> to vector<256x8xf32>
    %c0_3 = arith.constant 0 : index
    %c0_4 = arith.constant 0 : index
    %3 = vector.load %arg2[%c0_3, %c0_4] : memref<1x8xf32, #tpu.memory_space<vmem>>, vector<1x8xf32>
    %4 = vector.broadcast %3 : vector<1x8xf32> to vector<256x8xf32>
    %5 = arith.mulf %2, %4 : vector<256x8xf32>
    %c0_5 = arith.constant 0 : index
    %c0_6 = arith.constant 0 : index
    %6 = vector.load %arg3[%c0_5, %c0_6] : memref<1x8xf32, #tpu.memory_space<vmem>>, vector<1x8xf32>
    %7 = vector.broadcast %6 : vector<1x8xf32> to vector<256x8xf32>
    %8 = arith.addf %5, %7 : vector<256x8xf32>
    %cst = arith.constant 0.000000e+00 : f32
    %9 = vector.broadcast %cst : f32 to vector<256x8xf32>
    %10 = arith.maximumf %8, %9 : vector<256x8xf32>
    %11 = arith.truncf %10 : vector<256x8xf32> to vector<256x8xbf16>
    %c0_7 = arith.constant 0 : index
    %c0_8 = arith.constant 0 : index
    %12 = vector.load %arg4[%c0_7, %c0_8] : memref<8x128xbf16, #tpu.memory_space<vmem>>, vector<8x128xbf16>
    %cst_9 = arith.constant dense<0.000000e+00> : vector<256x128xf32>
    %13 = tpu.matmul %11, %12, %cst_9 {dimension_numbers = #tpu.dot_dimension_numbers<[1], [0], [0], [1], [0, 0, 1, 1], [], []>} : vector<256x8xbf16>, vector<8x128xbf16>, vector<256x128xf32> -> vector<256x128xf32>
    %c0_10 = arith.constant 0 : index
    %c0_11 = arith.constant 0 : index
    %14 = vector.load %arg5[%c0_10, %c0_11] : memref<1x128xf32, #tpu.memory_space<vmem>>, vector<1x128xf32>
    %15 = vector.broadcast %14 : vector<1x128xf32> to vector<256x128xf32>
    %16 = arith.addf %13, %15 : vector<256x128xf32>
    %cst_12 = arith.constant 0.000000e+00 : f32
    %17 = vector.broadcast %cst_12 : f32 to vector<256x128xf32>
    %18 = arith.maximumf %16, %17 : vector<256x128xf32>
    %19 = vector.shape_cast %18 : vector<256x128xf32> to vector<1x16x16x128xf32>
    %cst_13 = arith.constant 0.000000e+00 : bf16
    %20 = vector.broadcast %cst_13 : bf16 to vector<1x1x16x128xbf16>
    %cst_14 = arith.constant 0.000000e+00 : f32
    %21 = vector.broadcast %cst_14 : f32 to vector<1x16x1x128xf32>
    %22 = vector.extract_strided_slice %19 {offsets = [0, 0, 0, 0], sizes = [1, 16, 15, 128], strides = [1, 1, 1, 1]} : vector<1x16x16x128xf32> to vector<1x16x15x128xf32>
    %23 = tpu.concatenate %21, %22 in 2 : vector<1x16x1x128xf32>, vector<1x16x15x128xf32> -> vector<1x16x16x128xf32>
    %24 = arith.truncf %23 : vector<1x16x16x128xf32> to vector<1x16x16x128xbf16>
    %25 = tpu.concatenate %20, %24, %20 in 1 : vector<1x1x16x128xbf16>, vector<1x16x16x128xbf16>, vector<1x1x16x128xbf16> -> vector<1x18x16x128xbf16>
    %26 = vector.extract_strided_slice %25 {offsets = [0, 0, 0, 0], sizes = [1, 16, 16, 128], strides = [1, 1, 1, 1]} : vector<1x18x16x128xbf16> to vector<1x16x16x128xbf16>
    %27 = vector.extract_strided_slice %25 {offsets = [0, 1, 0, 0], sizes = [1, 16, 16, 128], strides = [1, 1, 1, 1]} : vector<1x18x16x128xbf16> to vector<1x16x16x128xbf16>
    %28 = vector.extract_strided_slice %25 {offsets = [0, 2, 0, 0], sizes = [1, 16, 16, 128], strides = [1, 1, 1, 1]} : vector<1x18x16x128xbf16> to vector<1x16x16x128xbf16>
    %29 = tpu.concatenate %26, %27, %28 in 3 : vector<1x16x16x128xbf16>, vector<1x16x16x128xbf16>, vector<1x16x16x128xbf16> -> vector<1x16x16x384xbf16>
    %30 = vector.shape_cast %29 : vector<1x16x16x384xbf16> to vector<256x384xbf16>
    %c0_15 = arith.constant 0 : index
    %c0_16 = arith.constant 0 : index
    %c0_17 = arith.constant 0 : index
    %31 = vector.load %arg6[%c0_15, %c0_16, %c0_17] : memref<3x384x128xbf16, #tpu.memory_space<vmem>>, vector<1x384x128xbf16>
    %32 = vector.shape_cast %31 : vector<1x384x128xbf16> to vector<384x128xbf16>
    %cst_18 = arith.constant dense<0.000000e+00> : vector<256x128xf32>
    %33 = tpu.matmul %30, %32, %cst_18 {dimension_numbers = #tpu.dot_dimension_numbers<[1], [0], [0], [1], [0, 0, 1, 1], [], []>} : vector<256x384xbf16>, vector<384x128xbf16>, vector<256x128xf32> -> vector<256x128xf32>
    %34 = arith.truncf %19 : vector<1x16x16x128xf32> to vector<1x16x16x128xbf16>
    %35 = tpu.concatenate %20, %34, %20 in 1 : vector<1x1x16x128xbf16>, vector<1x16x16x128xbf16>, vector<1x1x16x128xbf16> -> vector<1x18x16x128xbf16>
    %36 = vector.extract_strided_slice %35 {offsets = [0, 0, 0, 0], sizes = [1, 16, 16, 128], strides = [1, 1, 1, 1]} : vector<1x18x16x128xbf16> to vector<1x16x16x128xbf16>
    %37 = vector.extract_strided_slice %35 {offsets = [0, 1, 0, 0], sizes = [1, 16, 16, 128], strides = [1, 1, 1, 1]} : vector<1x18x16x128xbf16> to vector<1x16x16x128xbf16>
    %38 = vector.extract_strided_slice %35 {offsets = [0, 2, 0, 0], sizes = [1, 16, 16, 128], strides = [1, 1, 1, 1]} : vector<1x18x16x128xbf16> to vector<1x16x16x128xbf16>
    %39 = tpu.concatenate %36, %37, %38 in 3 : vector<1x16x16x128xbf16>, vector<1x16x16x128xbf16>, vector<1x16x16x128xbf16> -> vector<1x16x16x384xbf16>
    %40 = vector.shape_cast %39 : vector<1x16x16x384xbf16> to vector<256x384xbf16>
    %c1 = arith.constant 1 : index
    %c0_19 = arith.constant 0 : index
    %c0_20 = arith.constant 0 : index
    %41 = vector.load %arg6[%c1, %c0_19, %c0_20] : memref<3x384x128xbf16, #tpu.memory_space<vmem>>, vector<1x384x128xbf16>
    %42 = vector.shape_cast %41 : vector<1x384x128xbf16> to vector<384x128xbf16>
    %cst_21 = arith.constant dense<0.000000e+00> : vector<256x128xf32>
    %43 = tpu.matmul %40, %42, %cst_21 {dimension_numbers = #tpu.dot_dimension_numbers<[1], [0], [0], [1], [0, 0, 1, 1], [], []>} : vector<256x384xbf16>, vector<384x128xbf16>, vector<256x128xf32> -> vector<256x128xf32>
    %44 = arith.addf %33, %43 : vector<256x128xf32>
    %cst_22 = arith.constant 0.000000e+00 : f32
    %45 = vector.broadcast %cst_22 : f32 to vector<1x16x1x128xf32>
    %46 = vector.extract_strided_slice %19 {offsets = [0, 0, 1, 0], sizes = [1, 16, 15, 128], strides = [1, 1, 1, 1]} : vector<1x16x16x128xf32> to vector<1x16x15x128xf32>
    %47 = tpu.concatenate %46, %45 in 2 : vector<1x16x15x128xf32>, vector<1x16x1x128xf32> -> vector<1x16x16x128xf32>
    %48 = arith.truncf %47 : vector<1x16x16x128xf32> to vector<1x16x16x128xbf16>
    %49 = tpu.concatenate %20, %48, %20 in 1 : vector<1x1x16x128xbf16>, vector<1x16x16x128xbf16>, vector<1x1x16x128xbf16> -> vector<1x18x16x128xbf16>
    %50 = vector.extract_strided_slice %49 {offsets = [0, 0, 0, 0], sizes = [1, 16, 16, 128], strides = [1, 1, 1, 1]} : vector<1x18x16x128xbf16> to vector<1x16x16x128xbf16>
    %51 = vector.extract_strided_slice %49 {offsets = [0, 1, 0, 0], sizes = [1, 16, 16, 128], strides = [1, 1, 1, 1]} : vector<1x18x16x128xbf16> to vector<1x16x16x128xbf16>
    %52 = vector.extract_strided_slice %49 {offsets = [0, 2, 0, 0], sizes = [1, 16, 16, 128], strides = [1, 1, 1, 1]} : vector<1x18x16x128xbf16> to vector<1x16x16x128xbf16>
    %53 = tpu.concatenate %50, %51, %52 in 3 : vector<1x16x16x128xbf16>, vector<1x16x16x128xbf16>, vector<1x16x16x128xbf16> -> vector<1x16x16x384xbf16>
    %54 = vector.shape_cast %53 : vector<1x16x16x384xbf16> to vector<256x384xbf16>
    %c2 = arith.constant 2 : index
    %c0_23 = arith.constant 0 : index
    %c0_24 = arith.constant 0 : index
    %55 = vector.load %arg6[%c2, %c0_23, %c0_24] : memref<3x384x128xbf16, #tpu.memory_space<vmem>>, vector<1x384x128xbf16>
    %56 = vector.shape_cast %55 : vector<1x384x128xbf16> to vector<384x128xbf16>
    %cst_25 = arith.constant dense<0.000000e+00> : vector<256x128xf32>
    %57 = tpu.matmul %54, %56, %cst_25 {dimension_numbers = #tpu.dot_dimension_numbers<[1], [0], [0], [1], [0, 0, 1, 1], [], []>} : vector<256x384xbf16>, vector<384x128xbf16>, vector<256x128xf32> -> vector<256x128xf32>
    %58 = arith.addf %44, %57 : vector<256x128xf32>
    %c0_26 = arith.constant 0 : index
    %c0_27 = arith.constant 0 : index
    %59 = vector.load %arg7[%c0_26, %c0_27] : memref<1x128xf32, #tpu.memory_space<vmem>>, vector<1x128xf32>
    %60 = vector.broadcast %59 : vector<1x128xf32> to vector<256x128xf32>
    %61 = arith.addf %58, %60 : vector<256x128xf32>
    %cst_28 = arith.constant 0.000000e+00 : f32
    %62 = vector.broadcast %cst_28 : f32 to vector<256x128xf32>
    %63 = arith.maximumf %61, %62 : vector<256x128xf32>
    %64 = arith.truncf %63 : vector<256x128xf32> to vector<256x128xbf16>
    %c0_29 = arith.constant 0 : index
    %c0_30 = arith.constant 0 : index
    %65 = vector.load %arg8[%c0_29, %c0_30] : memref<128x128xbf16, #tpu.memory_space<vmem>>, vector<128x128xbf16>
    %cst_31 = arith.constant dense<0.000000e+00> : vector<256x128xf32>
    %66 = tpu.matmul %64, %65, %cst_31 {dimension_numbers = #tpu.dot_dimension_numbers<[1], [0], [0], [1], [0, 0, 1, 1], [], []>} : vector<256x128xbf16>, vector<128x128xbf16>, vector<256x128xf32> -> vector<256x128xf32>
    %c0_32 = arith.constant 0 : index
    %c0_33 = arith.constant 0 : index
    %67 = vector.load %arg9[%c0_32, %c0_33] : memref<1x128xf32, #tpu.memory_space<vmem>>, vector<1x128xf32>
    %68 = vector.broadcast %67 : vector<1x128xf32> to vector<256x128xf32>
    %69 = arith.addf %66, %68 : vector<256x128xf32>
    %cst_34 = arith.constant 0.000000e+00 : f32
    %70 = vector.broadcast %cst_34 : f32 to vector<256x128xf32>
    %71 = arith.maximumf %69, %70 : vector<256x128xf32>
    %72 = vector.shape_cast %71 : vector<256x128xf32> to vector<1x256x128xf32>
    %cst_35 = arith.constant dense<0.000000e+00> : vector<1x128xf32>
    %73 = vector.multi_reduction <add>, %72, %cst_35 [1] : vector<1x256x128xf32> to vector<1x128xf32>
    %cst_36 = arith.constant 3.906250e-03 : f32
    %74 = vector.broadcast %cst_36 : f32 to vector<1x128xf32>
    %75 = arith.mulf %73, %74 : vector<1x128xf32>
    %76 = arith.truncf %75 : vector<1x128xf32> to vector<1x128xbf16>
    %c0_37 = arith.constant 0 : index
    %c0_38 = arith.constant 0 : index
    %77 = vector.load %arg10[%c0_37, %c0_38] : memref<128x2xbf16, #tpu.memory_space<vmem>>, vector<128x2xbf16>
    %cst_39 = arith.constant dense<0.000000e+00> : vector<1x2xf32>
    %78 = tpu.matmul %76, %77, %cst_39 {dimension_numbers = #tpu.dot_dimension_numbers<[1], [0], [0], [1], [0, 0, 1, 1], [], []>} : vector<1x128xbf16>, vector<128x2xbf16>, vector<1x2xf32> -> vector<1x2xf32>
    %cst_40 = arith.constant 0.000000e+00 : f32
    %79 = vector.broadcast %cst_40 : f32 to vector<1x2xf32>
    %80 = arith.maximumf %78, %79 : vector<1x2xf32>
    %81 = arith.truncf %80 : vector<1x2xf32> to vector<1x2xbf16>
    %c0_41 = arith.constant 0 : index
    %c0_42 = arith.constant 0 : index
    %82 = vector.load %arg11[%c0_41, %c0_42] : memref<2x128xbf16, #tpu.memory_space<vmem>>, vector<2x128xbf16>
    %cst_43 = arith.constant dense<0.000000e+00> : vector<1x128xf32>
    %83 = tpu.matmul %81, %82, %cst_43 {dimension_numbers = #tpu.dot_dimension_numbers<[1], [0], [0], [1], [0, 0, 1, 1], [], []>} : vector<1x2xbf16>, vector<2x128xbf16>, vector<1x128xf32> -> vector<1x128xf32>
    %84 = arith.negf %83 : vector<1x128xf32>
    %85 = math.exp %84 : vector<1x128xf32>
    %cst_44 = arith.constant 1.000000e+00 : f32
    %86 = vector.broadcast %cst_44 : f32 to vector<1x128xf32>
    %87 = arith.addf %86, %85 : vector<1x128xf32>
    %88 = arith.divf %86, %87 : vector<1x128xf32>
    %89 = vector.shape_cast %88 : vector<1x128xf32> to vector<1x1x128xf32>
    %90 = vector.broadcast %89 : vector<1x1x128xf32> to vector<1x256x128xf32>
    %91 = arith.mulf %72, %90 : vector<1x256x128xf32>
    %92 = vector.shape_cast %91 : vector<1x256x128xf32> to vector<256x128xf32>
    %c0_45 = arith.constant 0 : index
    %c0_46 = arith.constant 0 : index
    %93 = vector.load %arg12[%c0_45, %c0_46] : memref<8x128xbf16, #tpu.memory_space<vmem>>, vector<8x128xbf16>
    %cst_47 = arith.constant dense<0.000000e+00> : vector<256x128xf32>
    %94 = tpu.matmul %1, %93, %cst_47 {dimension_numbers = #tpu.dot_dimension_numbers<[1], [0], [0], [1], [0, 0, 1, 1], [], []>} : vector<256x8xbf16>, vector<8x128xbf16>, vector<256x128xf32> -> vector<256x128xf32>
    %c0_48 = arith.constant 0 : index
    %c0_49 = arith.constant 0 : index
    %95 = vector.load %arg13[%c0_48, %c0_49] : memref<1x128xf32, #tpu.memory_space<vmem>>, vector<1x128xf32>
    %96 = vector.broadcast %95 : vector<1x128xf32> to vector<256x128xf32>
    %97 = arith.addf %94, %96 : vector<256x128xf32>
    %98 = arith.addf %92, %97 : vector<256x128xf32>
    %99 = vector.extract_strided_slice %98 {offsets = [0, 0], sizes = [256, 32], strides = [1, 1]} : vector<256x128xf32> to vector<256x32xf32>
    %100 = vector.shape_cast %99 : vector<256x32xf32> to vector<1x16x16x32xf32>
    %c0_50 = arith.constant 0 : index
    %c0_51 = arith.constant 0 : index
    %c0_52 = arith.constant 0 : index
    %c0_53 = arith.constant 0 : index
    %101 = vector.load %arg14[%c0_50, %c0_51, %c0_52, %c0_53] : memref<1x16x16x32xf32, #tpu.memory_space<vmem>>, vector<1x16x16x32xf32>
    tpu.vector_store %arg14[%c0_50, %c0_51, %c0_52, %c0_53], %100 {strides = array<i32>} : memref<1x16x16x32xf32, #tpu.memory_space<vmem>>, vector<1x16x16x32xf32>,
    return
  }
  func.func @transform_0(%arg0: i32) -> (i32, i32, i32, i32) {
    %c0_i32 = arith.constant 0 : i32
    %c0_i32_0 = arith.constant 0 : i32
    %c0_i32_1 = arith.constant 0 : i32
    %c0_i32_2 = arith.constant 0 : i32
    return %arg0, %c0_i32, %c0_i32_0, %c0_i32_1 : i32, i32, i32, i32
  }
  func.func @transform_1(%arg0: i32) -> (i32, i32) {
    %c0_i32 = arith.constant 0 : i32
    %c0_i32_0 = arith.constant 0 : i32
    %c0_i32_1 = arith.constant 0 : i32
    return %c0_i32, %c0_i32_0 : i32, i32
  }
  func.func @transform_2(%arg0: i32) -> (i32, i32) {
    %c0_i32 = arith.constant 0 : i32
    %c0_i32_0 = arith.constant 0 : i32
    %c0_i32_1 = arith.constant 0 : i32
    return %c0_i32, %c0_i32_0 : i32, i32
  }
  func.func @transform_3(%arg0: i32) -> (i32, i32) {
    %c0_i32 = arith.constant 0 : i32
    %c0_i32_0 = arith.constant 0 : i32
    %c0_i32_1 = arith.constant 0 : i32
    return %c0_i32, %c0_i32_0 : i32, i32
  }
  func.func @transform_4(%arg0: i32) -> (i32, i32) {
    %c0_i32 = arith.constant 0 : i32
    %c0_i32_0 = arith.constant 0 : i32
    %c0_i32_1 = arith.constant 0 : i32
    return %c0_i32, %c0_i32_0 : i32, i32
  }
  func.func @transform_5(%arg0: i32) -> (i32, i32, i32) {
    %c0_i32 = arith.constant 0 : i32
    %c0_i32_0 = arith.constant 0 : i32
    %c0_i32_1 = arith.constant 0 : i32
    %c0_i32_2 = arith.constant 0 : i32
    return %c0_i32, %c0_i32_0, %c0_i32_1 : i32, i32, i32
  }
  func.func @transform_6(%arg0: i32) -> (i32, i32) {
    %c0_i32 = arith.constant 0 : i32
    %c0_i32_0 = arith.constant 0 : i32
    %c0_i32_1 = arith.constant 0 : i32
    return %c0_i32, %c0_i32_0 : i32, i32
  }
  func.func @transform_7(%arg0: i32) -> (i32, i32) {
    %c0_i32 = arith.constant 0 : i32
    %c0_i32_0 = arith.constant 0 : i32
    %c0_i32_1 = arith.constant 0 : i32
    return %c0_i32, %c0_i32_0 : i32, i32
  }
  func.func @transform_8(%arg0: i32) -> (i32, i32) {
    %c0_i32 = arith.constant 0 : i32
    %c0_i32_0 = arith.constant 0 : i32
    %c0_i32_1 = arith.constant 0 : i32
    return %c0_i32, %c0_i32_0 : i32, i32
  }
  func.func @transform_9(%arg0: i32) -> (i32, i32) {
    %c0_i32 = arith.constant 0 : i32
    %c0_i32_0 = arith.constant 0 : i32
    %c0_i32_1 = arith.constant 0 : i32
    return %c0_i32, %c0_i32_0 : i32, i32
  }
  func.func @transform_10(%arg0: i32) -> (i32, i32) {
    %c0_i32 = arith.constant 0 : i32
    %c0_i32_0 = arith.constant 0 : i32
    %c0_i32_1 = arith.constant 0 : i32
    return %c0_i32, %c0_i32_0 : i32, i32
  }
  func.func @transform_11(%arg0: i32) -> (i32, i32) {
    %c0_i32 = arith.constant 0 : i32
    %c0_i32_0 = arith.constant 0 : i32
    %c0_i32_1 = arith.constant 0 : i32
    return %c0_i32, %c0_i32_0 : i32, i32
  }
  func.func @transform_12(%arg0: i32) -> (i32, i32) {
    %c0_i32 = arith.constant 0 : i32
    %c0_i32_0 = arith.constant 0 : i32
    %c0_i32_1 = arith.constant 0 : i32
    return %c0_i32, %c0_i32_0 : i32, i32
  }
  func.func @transform_13(%arg0: i32) -> (i32, i32, i32, i32) {
    %c0_i32 = arith.constant 0 : i32
    %c0_i32_0 = arith.constant 0 : i32
    %c0_i32_1 = arith.constant 0 : i32
    %c0_i32_2 = arith.constant 0 : i32
    return %arg0, %c0_i32, %c0_i32_0, %c0_i32_1 : i32, i32, i32, i32
  }
}

</mosaic_0001>

<bundles_post_ra>
// kernel: tpu_custom_call.1
= control target key start
LH: loop header
LB: loop body
LE: loop exit
PB: predicated region body
PF: predicated region fallthrough
CT: control target
= control target key end

     0   :  { %18 = vsyncpa [#allocation3], 0  ;;  %s7190_s0 = inlined_call_operand.vmem [shape: bf16[2,16,16,8], index: 0, kind: input, shape index: {}]   ;;  %s7191_s1 = inlined_call_operand.vmem [shape: f32[1,8], index: 1, kind: input, shape index: {}]   ;;  %s7192_s2 = inlined_call_operand.vmem [shape: f32[1,8], index: 2, kind: input, shape index: {}]   ;;  %s7193_s3 = inlined_call_operand.vmem [shape: bf16[8,128], index: 3, kind: input, shape index: {}]   ;;  %s7194_s4 = inlined_call_operand.vmem [shape: f32[1,128], index: 4, kind: input, shape index: {}]   ;;  %s7195_s5 = inlined_call_operand.hbm [shape: bf16[3,384,128], index: 5, kind: input, shape index: {}]   ;;  %s7196_s6 = inlined_call_operand.vmem [shape: f32[1,128], index: 6, kind: input, shape index: {}]   ;;  %s7197_s7 = inlined_call_operand.vmem [shape: bf16[128,128], index: 7, kind: input, shape index: {}]   ;;  %s7198_s8 = inlined_call_operand.vmem [shape: f32[1,128], index: 8, kind: input, shape index: {}]   ;;  %s7199_s9 = inlined_call_operand.vmem [shape: bf16[128,2], index: 9, kind: input, shape index: {}]   ;;  %s7200_s10 = inlined_call_operand.vmem [shape: bf16[2,128], index: 10, kind: input, shape index: {}]   ;;  %s7201_s11 = inlined_call_operand.vmem [shape: bf16[8,128], index: 11, kind: input, shape index: {}]   ;;  %s7202_s12 = inlined_call_operand.vmem [shape: f32[1,128], index: 12, kind: input, shape index: {}]   ;;  %s7203_s13 = inlined_call_operand.hbm [shape: f32[2,16,16,32], index: 13, kind: output, shape index: {}]  }
   0x1   :  { %19 = vsyncpa [#allocation4], 0 }
   0x2   :  { %21 = vsyncpa [#allocation4 + $0x1], 0  ;;  %s5585_s25 = smov 0   ;;  %s5587_s26 = smov 0  }
   0x3   :  { %s5589_s27 = smov 0   ;;  %s5591_s28 = smov 0  }
   0x4 LB: > { %7255 = sst [smem:[#allocation8_spill]] %s5499_s27  ;;  %s5606_s29 = sadd.s32 4294967295, %s5503_s28   ;;  %s5503_s28 = sphi %s5591_s28, %s7357_s28   ;;  %s5499_s27 = sphi %s5589_s27, %s7359_s27   ;;  %s5495_s26 = sphi %s5587_s26, %s7361_s26   ;;  %s5491_s25 = sphi %s5585_s25, %s7360_s25  }
   0x5   : > { %s3788_s30 = sadd.s32 4294967294, %s5503_s28   ;;  %s5610_s14 = sadd.s32 1, %s5503_s28  }
   0x6   : > { %7256 = sst [smem:[#allocation9_spill]] %s5610_s14  ;;  %s312_s15 = sadd.s32 1, %s5499_s27 }
   0x7   : > { %s309_s16 = ssub.s32 %s5503_s28, %s5610_s14  ;;  %p322_p0 = scmp.ne.s32.totalorder %s5499_s27, %s5495_s26 }
   0x8   : > { %p310_p1 = scmp.eq.s32.totalorder %s309_s16, 0  ;;  %p323_p2 = scmp.eq.s32.totalorder %s5606_s29, 1 }
   0x9   : > { %p328_p3 = scmp.ne.s32.totalorder %s5495_s26, %s5491_s25  ;;  %p329_p4 = scmp.eq.s32.totalorder %s3788_s30, 1 }
   0xa   : > { %s5621_s17 = scalar_select %p310_p1, %s5499_s27, %s312_s15  }
   0xb   : > { %p5623_p5 = por %p323_p2, %p322_p0  ;;  %p5627_p6 = por %p329_p4, %p328_p3 }
   0xc   : > { %7257 = sst [smem:[#allocation10_spill]] %s5621_s17  ;;  %p3789_p7 = scmp.ge.s32.totalorder %s5503_s28, 1 }
   0xd   : > { %s7258_s18 = scalar_select %p5623_p5, 1, 0 }
   0xe   : > { %s7259_s19 = scalar_select %p5627_p6, 1, 0 }
   0xf   : > { %p336_p8 = scmp.lt.s32.totalorder %s5503_s28, 3  ;;  %p7207_p9 = scmp.eq.s32.totalorder %s5606_s29, 0 }
  0x10   : > { %s5505_s21 = smov [#allocation2]   ;;  %s5409_s15 = scalar_lea.hbm %s7195_s5, 9216 }
  0x11   : > { %p5634_p10 = pnand %p3789_p7, %p336_p8  ;;  %s360_s22 = sshll.u32 %s5505_s21, 4  ;;  %s361_s22 = int_to_ptr.vmem [resolvable:$true] %s360_s22 }
  0x12   : > { %p5410_p13 = scmp.ne.s32.totalorder %s7195_s5, %s5409_s15  ;;  %p5416_p3 = scmp.lt.u32.totalorder %s5409_s15, %s7195_s5 }
  0x13   : > { %s7260_s20 = scalar_select %p5634_p10, 1, 0 }
  0x14   : > { %p5217_p11 = pneg %p5634_p10 }
  0x16   : > { %p5642_p12 = pnand %p7207_p9, %p5217_p11 }
  0x18   : > { %p5411_p0 = pneg %p5642_p12 }
  0x1a   : > { %p5412_p1 = pnand %p5411_p0, %p5410_p13 }
  0x1c   : > { %p5413_p2 = pneg %p5412_p1 }
  0x1e   : > { %p5418_p4 = pnand %p5416_p3, %p5413_p2 }
  0x20   : > { %5421 = shalt.err (!%p5418_p4)
}
  0x21   : > { %s5422_s14 = scalar_lea.vmem %s361_s22, 9216  ;;  %p5430_p9 = scmp.lt.s32.totalorder %s361_s22, %s361_s22 }
  0x22   : > { %p5423_p7 = scmp.ne.s32.totalorder %s361_s22, %s5422_s14  ;;  %p5431_p6 = scmp.lt.s32.totalorder %s5422_s14, %s5422_s14 }
  0x24   : > { %p5425_p8 = pnand %p5423_p7, %p5411_p0  ;;  %p5432_p5 = por %p5431_p6, %p5430_p9 }
  0x26   : > { %p5426_p11 = pneg %p5425_p8 }
  0x28   : > { %p5433_p10 = pnand %p5432_p5, %p5426_p11 }
  0x2a   : > { %5436 = shalt.err (!%p5433_p10)
}
  0x2b   : > { %s5506_s17 = smov 64   ;;  %s5507_s24 = smov 4  }
  0x2c   : > { %5220 = dma.hbm_to_vmem [thread:$0]  (!%p5642_p12), %s7195_s5, 9216, %s361_s22, [#allocation3], %s5506_s17, %s5506_s17, %s5507_s24  }
  0x2d   : > { %p7262_p13 = scmp.ne.s32.totalorder %s7260_s20, 0 }
  0x2f   : > { %405 = sbr.rel (%p7262_p13) target bundleno = 1580 (0x62c), region = 72 }
  0x36   : > { %p7263_p1 = scmp.eq.s32.totalorder %s5606_s29, 0 }
  0x38   : > { %5482 = dma.done.wait (%p7263_p1), [#allocation3], 9216   ;;  %p7264_p0 = pmov %p7263_p1 }
  0x39   : > { %p449_p5 = scmp.lt.s32.totalorder %s5606_s29, 1  ;;  %vm702_vm0 = vcmask 1043456   ;;  %v645_v0 = vld [vmem:[%s7193_s3] sm:$0xf]  ;;  %vm653_vm1 = vcmask 64512   ;;  %v5270_v50 = vld [vmem:[#allocation2 + $0x148] sm:$0xff]  }
  0x3a   : > { %5484 = vsyncadd (%p7264_p0), [#allocation3], 4294958080  ;;  %v5682_v2 = vld [vmem:[%s7191_s1] ss:$0 sm:$0xff]  ;;  %5209 = vmatprep.subr.msk.bf16.mxu0 %vm702_vm0, %v645_v0  ;;  %v704_v3 = vsel %vm702_vm0, %v645_v0, 0  ;;  %v5271_v60 = vld [vmem:[#allocation2 + $0x150] sm:$0xff]  }
  0x3b   : > { %s450_s27 = scalar_select %p449_p5, %s5606_s29, 1  ;;  %4748 = vmatpush3.bf16.msra.mxu0 %v704_v3  ;;  %v5691_v8 = vld [vmem:[%s7192_s2] ss:$0 sm:$0xff]  ;;  %vm931_vm2 = vcmask 1040384   ;;  %vm2089_vm3 = vcmask 1046528   ;;  %vm5509_vm5 = vmmov 1  }
  0x3c   : > { %v5269_v37 = vld [vmem:[#allocation2 + $0x140] sm:$0xff]   ;;  %vm3864_vm4 = vmneg %vm931_vm2  ;;  %vm5511_vm8 = vmmov 0   ;;  %vm3246_vm9 = vcmask 15360   ;;  %vm3667_vm10 = vcmask 261120   ;;  %s446_s15 = sand.u32 1, %s5495_s26   ;;  %s4269_s17 = sshll.u32 %s5606_s29, 12 }
  0x3d   : > { %s4268_s14 = sshll.u32 %s450_s27, 7  ;;  %4781 = vmatprep.subr.bf16.mxu0 %v5269_v37  ;;  %v5273_v61 = vld [vmem:[#allocation2 + $0x100] sm:$0xff]   ;;  %vm5990_vm6 = vmpackc.low %vm5509_vm5, %vm3864_vm4  ;;  %s3794_s22 = sshll.u32 %s446_s15, 8 }
  0x3e   : > { %s5673_s21 = scalar_lea.vmem %s7190_s0, %s4268_s14  ;;  %v5274_v3 = vld [vmem:[#allocation2 + $0xc0] sm:$0xff]   ;;  %4287 = vmatprep.subr.bf16.mxu1 %v5273_v61  ;;  %vm6049_vm7 = vmpackc.low %vm2089_vm3, %vm5509_vm5  ;;  %s7047_s20 = scalar_lea.vmem [#allocation5], %s3794_s22 }
  0x3f   : > { %v455_v1 = vld [vmem:[%s5673_s21] sm:$0xff]   ;;  %v457_v6 = vld [vmem:[%s5673_s21 + $0x8] sm:$0xff]   ;;  %v459_v7 = vld [vmem:[%s5673_s21 + $0x10] sm:$0xff]   ;;  %4288 = vmatpush3.bf16.msra.mxu1 %v5274_v3  ;;  %s3714_s24 = sshll.u32 %s7047_s20, 4  ;;  %s7114_s16 = scalar_lea.hbm %s7203_s13, %s4269_s17  ;;  %s7116_s24 = int_to_ptr.vmem [resolvable:$true] %s3714_s24 }
  0x40   : > { %v487_v4 = vunpack.c.l.bf16 %v455_v1  ;;  %v488_v5 = vunpack.c.h.bf16 %v455_v1  ;;  %v489_v9 = vunpack.c.l.bf16 %v457_v6  ;;  %v490_v10 = vunpack.c.h.bf16 %v457_v6  ;;  %v461_v13 = vld [vmem:[%s5673_s21 + $0x18] sm:$0xff]   ;;  %v463_v26 = vld [vmem:[%s5673_s21 + $0x20] sm:$0xff]   ;;  %v465_v31 = vld [vmem:[%s5673_s21 + $0x28] sm:$0xff]   ;;  %s7149_s27 = scalar_lea.sflag [#allocation4], %s446_s15  ;;  %s5437_s14 = scalar_lea.vmem %s7116_s24, 4096 }
  0x41   : > { %v491_v11 = vunpack.c.l.bf16 %v459_v7  ;;  %v492_v12 = vunpack.c.h.bf16 %v459_v7  ;;  %v493_v16 = vunpack.c.l.bf16 %v461_v13  ;;  %v494_v17 = vunpack.c.h.bf16 %v461_v13  ;;  %v467_v36 = vld [vmem:[%s5673_s21 + $0x30] sm:$0xff]   ;;  %v469_v45 = vld [vmem:[%s5673_s21 + $0x38] sm:$0xff]   ;;  %v471_v59 = vld [vmem:[%s5673_s21 + $0x40] sm:$0xff]   ;;  %p5438_p6 = scmp.ne.s32.totalorder %s7116_s24, %s5437_s14  ;;  %p7355_p9 = scmp.ne.s32.totalorder %s7258_s18, 0 }
  0x42   : > { %v526_v14 = vmul.f32 %v5682_v2, %v487_v4  ;;  %v527_v15 = vmul.f32 %v5682_v2, %v488_v5  ;;  %v528_v18 = vmul.f32 %v5682_v2, %v489_v9  ;;  %v529_v19 = vmul.f32 %v5682_v2, %v490_v10  ;;  %v5275_v9 = vld [vmem:[#allocation2 + $0x108] sm:$0xff]  }
  0x43   : > { %v530_v20 = vmul.f32 %v5682_v2, %v491_v11  ;;  %v531_v21 = vmul.f32 %v5682_v2, %v492_v12  ;;  %v532_v24 = vmul.f32 %v5682_v2, %v493_v16  ;;  %v533_v25 = vmul.f32 %v5682_v2, %v494_v17  ;;  %4289 = vmatprep.subr.bf16.mxu1 %v5275_v9  ;;  %p5439_p10 = pnand %p5438_p6, %p7355_p9 }
  0x44   : > { %v565_v22 = vadd.f32 %v5691_v8, %v526_v14  ;;  %v566_v23 = vadd.f32 %v5691_v8, %v527_v15  ;;  %v567_v27 = vadd.f32 %v5691_v8, %v528_v18  ;;  %v568_v28 = vadd.f32 %v5691_v8, %v529_v19  ;;  %v473_v14 = vld [vmem:[%s5673_s21 + $0x48] sm:$0xff]   ;;  %v475_v19 = vld [vmem:[%s5673_s21 + $0x50] sm:$0xff]  }
  0x45   : > { %v569_v29 = vadd.f32 %v5691_v8, %v530_v20  ;;  %v570_v30 = vadd.f32 %v5691_v8, %v531_v21  ;;  %v571_v34 = vadd.f32 %v5691_v8, %v532_v24  ;;  %v572_v35 = vadd.f32 %v5691_v8, %v533_v25  ;;  %v5276_v20 = vld [vmem:[#allocation2 + $0xc8] sm:$0xff]   ;;  %v477_v25 = vld [vmem:[%s5673_s21 + $0x58] sm:$0xff]   ;;  %p5440_p12 = pneg %p5439_p10 }
  0x46   : > { %v597_v32 = vmax.f32 %v565_v22, 0.0  ;;  %v598_v33 = vmax.f32 %v566_v23, 0.0  ;;  %v599_v38 = vmax.f32 %v567_v27, 0.0  ;;  %v600_v39 = vmax.f32 %v568_v28, 0.0  ;;  %4290 = vmatpush3.bf16.msra.mxu1 %v5276_v20  ;;  %v5285_v20 = vld [vmem:[#allocation2 + $0x128] sm:$0xff]  }
  0x47   : > { %v601_v40 = vmax.f32 %v569_v29, 0.0  ;;  %v602_v41 = vmax.f32 %v570_v30, 0.0  ;;  %v603_v43 = vmax.f32 %v571_v34, 0.0  ;;  %v495_v44 = vunpack.c.l.bf16 %v463_v26  ;;  %v5272_v30 = vld [vmem:[#allocation2 + $0x158] sm:$0xff]  }
  0x48   : > { %v629_v42 = vpack.c.bf16 %v598_v33, %v597_v32  ;;  %v630_v46 = vpack.c.bf16 %v600_v39, %v599_v38  ;;  %v496_v48 = vunpack.c.h.bf16 %v463_v26  ;;  %v497_v49 = vunpack.c.l.bf16 %v465_v31  ;;  %v479_v39 = vld [vmem:[%s5673_s21 + $0x60] sm:$0xff]  }
  0x49   : > { %v631_v47 = vpack.c.bf16 %v602_v41, %v601_v40  ;;  %v604_v51 = vmax.f32 %v572_v35, 0.0  ;;  %v534_v52 = vmul.f32 %v5682_v2, %v495_v44  ;;  %v498_v53 = vunpack.c.h.bf16 %v465_v31  ;;  %v5278_v31 = vld [vmem:[#allocation2 + $0x110] sm:$0xff]   ;;  %v5280_v44 = vld [vmem:[#allocation2 + $0x118] sm:$0xff]  }
  0x4a   : > { %4749 = vmatprep.mubr.msk.bf16.mxu0 %vm653_vm1, %v629_v42  ;;  %v499_v54 = vunpack.c.l.bf16 %v467_v36  ;;  %v535_v55 = vmul.f32 %v5682_v2, %v496_v48  ;;  %v536_v56 = vmul.f32 %v5682_v2, %v497_v49  ;;  %v500_v57 = vunpack.c.h.bf16 %v467_v36  ;;  %v5279_v35 = vld [vmem:[#allocation2 + $0xd0] sm:$0xff]   ;;  %v5277_v49 = vld [vmem:[#allocation2 + $0x160] sm:$0xff]   ;;  %4291 = vmatprep.subr.bf16.mxu1 %v5278_v31 }
  0x4b   : > { %4750 = vmatmul.mubr.msk.bf16.vlgmr.msra.gmra.mrb[0].mxu0 %vm653_vm1, %v630_v46  ;;  %v501_v58 = vunpack.c.l.bf16 %v469_v45  ;;  %v573_v62 = vadd.f32 %v5691_v8, %v534_v52  ;;  %v537_v63 = vmul.f32 %v5682_v2, %v498_v53  ;;  %v502_v1 = vunpack.c.h.bf16 %v469_v45  ;;  %v481_v53 = vld [vmem:[%s5673_s21 + $0x68] sm:$0xff]   ;;  %4292 = vmatpush3.bf16.msra.mxu1 %v5279_v35 }
  0x4c   : > { %4753 = vmatprep.mubr.msk.bf16.mxu0 %vm653_vm1, %v631_v47  ;;  %v538_v0 = vmul.f32 %v5682_v2, %v499_v54  ;;  %4782 = vmatpush3.bf16.msra.mxu0 %v5269_v37  ;;  %v574_v4 = vadd.f32 %v5691_v8, %v535_v55  ;;  %v575_v5 = vadd.f32 %v5691_v8, %v536_v56  ;;  %v503_v24 = vunpack.c.l.bf16 %v471_v59  ;;  %v5281_v54 = vld [vmem:[#allocation2 + $0xd8] sm:$0xff]  }
  0x4d   : > { %v539_v6 = vmul.f32 %v5682_v2, %v500_v57  ;;  %v540_v7 = vmul.f32 %v5682_v2, %v501_v58  ;;  %4783 = vmatprep.subr.bf16.mxu0 %v5270_v50  ;;  %v605_v10 = vmax.f32 %v573_v62, 0.0  ;;  %v576_v11 = vadd.f32 %v5691_v8, %v537_v63  ;;  %v483_v63 = vld [vmem:[%s5673_s21 + $0x70] sm:$0xff]   ;;  %4293 = vmatprep.subr.bf16.mxu1 %v5280_v44 }
  0x4e   : > { %v577_v12 = vadd.f32 %v5691_v8, %v538_v0  ;;  %v541_v13 = vmul.f32 %v5682_v2, %v502_v1  ;;  %v632_v15 = vpack.c.bf16 %v604_v51, %v603_v43  ;;  %v606_v16 = vmax.f32 %v574_v4, 0.0  ;;  %v5282_v0 = vld [vmem:[#allocation2 + $0x168] sm:$0xff]   ;;  %v5283_v4 = vld [vmem:[#allocation2 + $0x120] sm:$0xff]  }
  0x4f   : > { %v578_v17 = vadd.f32 %v5691_v8, %v539_v6  ;;  %v579_v18 = vadd.f32 %v5691_v8, %v540_v7  ;;  %v607_v21 = vmax.f32 %v575_v5, 0.0  ;;  %v608_v22 = vmax.f32 %v576_v11, 0.0  ;;  %4294 = vmatpush3.bf16.msra.mxu1 %v5281_v54 }
  0x50   : > { %v580_v23 = vadd.f32 %v5691_v8, %v541_v13  ;;  %4784 = vmatpush3.bf16.msra.mxu0 %v5270_v50  ;;  %v633_v26 = vpack.c.bf16 %v606_v16, %v605_v10  ;;  %v609_v27 = vmax.f32 %v577_v12, 0.0  ;;  %v504_v29 = vunpack.c.h.bf16 %v471_v59  ;;  %v485_v10 = vld [vmem:[%s5673_s21 + $0x78] sm:$0xff]   ;;  %4295 = vmatprep.subr.bf16.mxu1 %v5283_v4 }
  0x51   : > { %v610_v28 = vmax.f32 %v578_v17, 0.0  ;;  %4785 = vmatprep.subr.bf16.mxu0 %v5271_v60  ;;  %v611_v32 = vmax.f32 %v579_v18, 0.0  ;;  %v542_v33 = vmul.f32 %v5682_v2, %v503_v24  ;;  %v505_v34 = vunpack.c.l.bf16 %v473_v14 }
  0x52   : > { %v543_v36 = vmul.f32 %v5682_v2, %v504_v29  ;;  %v506_v37 = vunpack.c.h.bf16 %v473_v14  ;;  %v507_v38 = vunpack.c.l.bf16 %v475_v19  ;;  %v612_v40 = vmax.f32 %v580_v23, 0.0 }
  0x53   : > { %4754 = vmatmul.mubr.msk.bf16.gmra.mrb[4].mxu0 %vm653_vm1, %v632_v15  ;;  %v581_v41 = vadd.f32 %v5691_v8, %v542_v33  ;;  %v544_v42 = vmul.f32 %v5682_v2, %v505_v34  ;;  %v508_v43 = vunpack.c.h.bf16 %v475_v19  ;;  %v509_v48 = vunpack.c.l.bf16 %v477_v25  ;;  %v5284_v15 = vld [vmem:[#allocation2 + $0xe0] sm:$0xff]  }
  0x54   : > { %4757 = vmatprep.mubr.msk.bf16.mxu0 %vm653_vm1, %v633_v26  ;;  %4786 = vmatpush3.bf16.msra.mxu0 %v5271_v60  ;;  %v582_v45 = vadd.f32 %v5691_v8, %v543_v36  ;;  %v545_v46 = vmul.f32 %v5682_v2, %v506_v37  ;;  %v546_v47 = vmul.f32 %v5682_v2, %v507_v38  ;;  %v510_v52 = vunpack.c.h.bf16 %v477_v25 }
  0x55   : > { %4787 = vmatprep.subr.bf16.mxu0 %v5272_v30  ;;  %v5748_v50 = vadd.f32 %v5691_v8, %v544_v42  ;;  %v547_v51 = vmul.f32 %v5682_v2, %v508_v43  ;;  %v634_v55 = vpack.c.bf16 %v608_v22, %v607_v21  ;;  %v613_v56 = vmax.f32 %v581_v41, 0.0  ;;  %4296 = vmatpush3.bf16.msra.mxu1 %v5284_v15 }
  0x56   : > { %v614_v57 = vmax.f32 %v582_v45, 0.0  ;;  %v548_v58 = vmul.f32 %v5682_v2, %v509_v48  ;;  %v635_v59 = vpack.c.bf16 %v610_v28, %v609_v27  ;;  %v5754_v60 = vadd.f32 %v5691_v8, %v545_v46  ;;  %4297 = vmatprep.subr.bf16.mxu1 %v5285_v20 }
  0x57   : > { %v549_v61 = vmul.f32 %v5682_v2, %v510_v52  ;;  %v511_v62 = vunpack.c.l.bf16 %v479_v39  ;;  %v636_v1 = vpack.c.bf16 %v612_v40, %v611_v32  ;;  %v585_v3 = vadd.f32 %v5691_v8, %v546_v47 }
  0x58   : > { %4788 = vmatpush3.bf16.msra.mxu0 %v5272_v30  ;;  %v615_v5 = vmax.f32 %v5748_v50, 0.0  ;;  %v586_v6 = vadd.f32 %v5691_v8, %v547_v51  ;;  %v512_v7 = vunpack.c.h.bf16 %v479_v39  ;;  %v637_v11 = vpack.c.bf16 %v614_v57, %v613_v56  ;;  %v5288_v56 = vld [vmem:[#allocation2 + $0x130] sm:$0xff]  }
  0x59   : > { %4789 = vmatprep.subr.bf16.mxu0 %v5277_v49  ;;  %v550_v9 = vmul.f32 %v5682_v2, %v511_v62  ;;  %v587_v12 = vadd.f32 %v5691_v8, %v548_v58  ;;  %v513_v13 = vunpack.c.l.bf16 %v481_v53  ;;  %v514_v14 = vunpack.c.h.bf16 %v481_v53  ;;  %v5289_v57 = vld [vmem:[#allocation2 + $0xf0] sm:$0xff]   ;;  %v5290_v58 = vld [vmem:[#allocation2 + $0x138] sm:$0xff]   ;;  %v5293_v62 = vld [vmem:[#allocation2 + $0x40] sm:$0xff]  }
  0x5a   : > { %v616_v16 = vmax.f32 %v5754_v60, 0.0  ;;  %v588_v17 = vadd.f32 %v5691_v8, %v549_v61  ;;  %v551_v18 = vmul.f32 %v5682_v2, %v512_v7  ;;  %v515_v23 = vunpack.c.l.bf16 %v483_v63  ;;  %v5291_v60 = vld [vmem:[#allocation2 + $0xf8] sm:$0xff]  }
  0x5b   : > { %4758 = vmatmul.mubr.msk.bf16.gmra.mrb[8].mxu0 %vm653_vm1, %v634_v55  ;;  %v589_v19 = vadd.f32 %v5691_v8, %v550_v9  ;;  %v552_v21 = vmul.f32 %v5682_v2, %v513_v13  ;;  %v553_v22 = vmul.f32 %v5682_v2, %v514_v14  ;;  %v516_v24 = vunpack.c.h.bf16 %v483_v63  ;;  %v5286_v55 = vld [vmem:[#allocation2 + $0xe8] sm:$0xff]   ;;  %v5292_v61 = vld [vmem:[#allocation2 + $0x178] sm:$0xff]   ;;  %v5309_v63 = vld [vmem:[#allocation2 + $0x1c0] sm:$0xff]  }
  0x5c   : > { %4761 = vmatprep.mubr.msk.bf16.mxu0 %vm653_vm1, %v635_v59  ;;  %4790 = vmatpush3.bf16.msra.mxu0 %v5277_v49  ;;  %v617_v25 = vmax.f32 %v585_v3, 0.0  ;;  %v618_v26 = vmax.f32 %v586_v6, 0.0  ;;  %v590_v27 = vadd.f32 %v5691_v8, %v551_v18  ;;  %v517_v28 = vunpack.c.l.bf16 %v485_v10  ;;  %v5287_v59 = vld [vmem:[#allocation2 + $0x170] sm:$0xff]  }
  0x5d   : > { %4791 = vmatprep.subr.bf16.mxu0 %v5282_v0  ;;  %v591_v29 = vadd.f32 %v5691_v8, %v552_v21  ;;  %v592_v30 = vadd.f32 %v5691_v8, %v553_v22  ;;  %v554_v31 = vmul.f32 %v5682_v2, %v515_v23  ;;  %v555_v32 = vmul.f32 %v5682_v2, %v516_v24 }
  0x5e   : > { %v619_v33 = vmax.f32 %v587_v12, 0.0  ;;  %v620_v34 = vmax.f32 %v588_v17, 0.0  ;;  %v518_v35 = vunpack.c.h.bf16 %v485_v10  ;;  %v556_v36 = vmul.f32 %v5682_v2, %v517_v28  ;;  %4298 = vmatpush3.bf16.msra.mxu1 %v5286_v55 }
  0x5f   : > { %v621_v37 = vmax.f32 %v589_v19, 0.0  ;;  %v622_v38 = vmax.f32 %v590_v27, 0.0  ;;  %v593_v39 = vadd.f32 %v5691_v8, %v554_v31  ;;  %v594_v40 = vadd.f32 %v5691_v8, %v555_v32  ;;  %4299 = vmatprep.subr.bf16.mxu1 %v5288_v56 }
  0x60   : > { %4792 = vmatpush3.bf16.msra.mxu0 %v5282_v0  ;;  %v557_v41 = vmul.f32 %v5682_v2, %v518_v35  ;;  %v595_v42 = vadd.f32 %v5691_v8, %v556_v36  ;;  %v623_v43 = vmax.f32 %v591_v29, 0.0  ;;  %v624_v44 = vmax.f32 %v592_v30, 0.0  ;;  %v5795_v0 = vld [vmem:[%s7194_s4] ss:$0 sm:$0xff]  ;;  %v5312_v30 = vld [vmem:[#allocation2 + $0x1c8] sm:$0xff]  }
  0x61   : > { %v625_v45 = vmax.f32 %v593_v39, 0.0  ;;  %v626_v46 = vmax.f32 %v594_v40, 0.0  ;;  %v638_v50 = vpack.c.bf16 %v616_v16, %v615_v5  ;;  %v639_v51 = vpack.c.bf16 %v618_v26, %v617_v25  ;;  %4793 = vmatprep.subr.bf16.mxu0 %v5287_v59  ;;  %v5310_v26 = vld [vmem:[#allocation2 + $0x180] sm:$0xff]  }
  0x62   : > { %v596_v47 = vadd.f32 %v5691_v8, %v557_v41  ;;  %v627_v48 = vmax.f32 %v595_v42, 0.0  ;;  %v640_v2 = vpack.c.bf16 %v620_v34, %v619_v33  ;;  %v641_v52 = vpack.c.bf16 %v622_v38, %v621_v37  ;;  %4300 = vmatpush3.bf16.msra.mxu1 %v5289_v57 }
  0x63   : > { %4762 = vmatmul.mubr.msk.bf16.gmra.mrb[12].mxu0 %vm653_vm1, %v636_v1  ;;  %v642_v53 = vpack.c.bf16 %v624_v44, %v623_v43  ;;  %v643_v54 = vpack.c.bf16 %v626_v46, %v625_v45  ;;  %4301 = vmatprep.subr.bf16.mxu1 %v5290_v58  ;;  %v5508_v40 = vmov 0   ;;  %v5313_v45 = vld [vmem:[#allocation2 + $0x188] sm:$0xff]  }
  0x64   : > { %4765 = vmatprep.mubr.msk.bf16.mxu0 %vm653_vm1, %v637_v11  ;;  %v628_v49 = vmax.f32 %v596_v47, 0.0  ;;  %4794 = vmatpush3.bf16.msra.mxu0 %v5287_v59 }
  0x65   : > { %4795 = vmatprep.subr.bf16.mxu0 %v5292_v61 }
  0x66   : > { %v644_v8 = vpack.c.bf16 %v628_v49, %v627_v48  ;;  %4302 = vmatpush3.bf16.msra.mxu1 %v5291_v60  ;;  %v5315_v48 = vld [vmem:[#allocation2 + $0x1d0] sm:$0xff]  }
  0x67   : > { %4559 = vmatprep.subr.bf16.mxu1 %v5309_v63 }
  0x68   : > { %4796 = vmatpush3.bf16.msra.mxu0 %v5292_v61 }
  0x69   : > { %4423 = vmatprep.subr.bf16.mxu0 %v5293_v62  ;;  %v5295_v62 = vld [vmem:[#allocation2 + $0x48] sm:$0xff]  }
  0x6b   : > { %4766 = vmatmul.mubr.msk.bf16.gmra.mrb[16].mxu0 %vm653_vm1, %v638_v50 }
  0x6c   : > { %4769 = vmatprep.mubr.msk.bf16.mxu0 %vm653_vm1, %v639_v51 }
  0x73   : > { %4770 = vmatmul.mubr.msk.bf16.gmra.mrb[20].mxu0 %vm653_vm1, %v640_v2 }
  0x74   : > { %4773 = vmatprep.mubr.msk.bf16.mxu0 %vm653_vm1, %v641_v52 }
  0x7b   : > { %4774 = vmatmul.mubr.msk.bf16.gmra.mrb[24].mxu0 %vm653_vm1, %v642_v53 }
  0x7c   : > { %4777 = vmatprep.mubr.msk.bf16.mxu0 %vm653_vm1, %v643_v54  ;;  %v5294_v54 = vld [vmem:[#allocation2] sm:$0xff]  }
  0x83   : > { %4778 = vmatmul.mubr.msk.bf16.gmra.mrb[28].mxu0 %vm653_vm1, %v644_v8 }
 0x11e   : > { %v4751_v1 = vpop.f32.mrb[0].mxu0 }
 0x11f   : > { %v749_v3 = vadd.f32 %v4751_v1, %v5795_v0  ;;  %v740_v4 = vpop.f32.mrb[1].mxu0  ;;  %v5316_v1 = vld [vmem:[#allocation2 + $0x190] sm:$0xff]  }
 0x120   : > { %v741_v5 = vadd.f32 %v5795_v0, %v740_v4  ;;  %v4752_v6 = vpop.f32.mrb[2].mxu0 }
 0x121   : > { %v869_v7 = vmax.f32 %v749_v3, 0.0  ;;  %v752_v9 = vadd.f32 %v4752_v6, %v5795_v0  ;;  %v743_v10 = vpop.f32.mrb[3].mxu0 }
 0x122   : > { %v867_v11 = vmax.f32 %v741_v5, 0.0  ;;  %v744_v12 = vadd.f32 %v5795_v0, %v743_v10 }
 0x123   : > { %v870_v13 = vmax.f32 %v752_v9, 0.0  ;;  %v935_v14 = vrot.slane %v869_v7, 7  ;;  %v2093_v15 = vrot.slane %v869_v7, 1  ;;  %v5318_v9 = vld [vmem:[#allocation2 + $0x1d8] sm:$0xff]  }
 0x124   : > { %v868_v16 = vmax.f32 %v744_v12, 0.0  ;;  %v932_v17 = vrot.slane %v867_v11, 7  ;;  %v2090_v21 = vrot.slane %v867_v11, 1 }
 0x125   : > { %v936_v18 = vrot.slane %v870_v13, 7  ;;  %v2094_v19 = vrot.slane %v870_v13, 1  ;;  %v5801_v20 = vpack.c.bf16 %v870_v13, %v869_v7 }
 0x126   : > { %v933_v22 = vrot.slane %v868_v16, 7  ;;  %v2091_v23 = vrot.slane %v868_v16, 1  ;;  %v4755_v24 = vpop.f32.mrb[4].mxu0  ;;  %v1092_v25 = vpack.c.bf16 %v868_v16, %v867_v11 }
 0x127   : > { %v765_v27 = vadd.f32 %v4755_v24, %v5795_v0  ;;  %v756_v28 = vpop.f32.mrb[5].mxu0  ;;  %4797 = vmatprep.mubr.bf16.mxu0 %v5801_v20  ;;  %v937_v29 = vsel %vm931_vm2, %v935_v14, %v936_v18  ;;  %v2095_v31 = vsel %vm2089_vm3, %v2093_v15, %v2094_v19 }
 0x128   : > { %v757_v32 = vadd.f32 %v5795_v0, %v756_v28  ;;  %v4756_v33 = vpop.f32.mrb[6].mxu0  ;;  %1333 = vmatprep.mubr.bf16.mxu1 %v1092_v25  ;;  %v934_v34 = vsel %vm931_vm2, %v932_v17, %v933_v22  ;;  %v5809_v35 = vpack.c.bf16 %v937_v29, %v935_v14  ;;  %v2092_v36 = vsel %vm2089_vm3, %v2090_v21, %v2091_v23  ;;  %v5296_v14 = vld [vmem:[#allocation2 + $0x8] sm:$0xff]  }
 0x129   : > { %v873_v37 = vmax.f32 %v765_v27, 0.0  ;;  %v768_v38 = vadd.f32 %v4756_v33, %v5795_v0  ;;  %v759_v39 = vpop.f32.mrb[7].mxu0  ;;  %1334 = vmatmul.mubr.bf16.vlgmr.msra.gmra.mrb[0].mxu1 %v5508_v40  ;;  %v5814_v41 = vpack.c.bf16 %v934_v34, %v932_v17  ;;  %v5816_v42 = vpack.c.bf16 %v2091_v23, %v2092_v36  ;;  %v5319_v23 = vld [vmem:[#allocation2 + $0x198] sm:$0xff]  }
 0x12a   : > { %v871_v43 = vmax.f32 %v757_v32, 0.0  ;;  %v760_v44 = vadd.f32 %v5795_v0, %v759_v39  ;;  %1341 = vmatprep.mubr.bf16.mxu1 %v5801_v20  ;;  %4560 = vmatpush3.bf16.msra.mxu1 %v5310_v26  ;;  %v5820_v46 = vpack.c.bf16 %v2094_v19, %v2095_v31  ;;  %v5297_v19 = vld [vmem:[#allocation2 + $0x50] sm:$0xff]   ;;  %v5320_v26 = vld [vmem:[#allocation2 + $0x1e0] sm:$0xff]  }
 0x12b   : > { %v874_v47 = vmax.f32 %v768_v38, 0.0  ;;  %4561 = vmatprep.subr.bf16.mxu1 %v5312_v30  ;;  %v941_v49 = vrot.slane %v873_v37, 7  ;;  %v2099_v50 = vrot.slane %v873_v37, 1 }
 0x12c   : > { %v872_v51 = vmax.f32 %v760_v44, 0.0  ;;  %v938_v2 = vrot.slane %v871_v43, 7  ;;  %v2096_v55 = vrot.slane %v871_v43, 1  ;;  %v5299_v44 = vld [vmem:[#allocation2 + $0x58] sm:$0xff]  }
 0x12d   : > { %v942_v52 = vrot.slane %v874_v47, 7  ;;  %v2100_v53 = vrot.slane %v874_v47, 1  ;;  %v5822_v8 = vpack.c.bf16 %v874_v47, %v873_v37  ;;  %v5298_v37 = vld [vmem:[#allocation2 + $0x10] sm:$0xff]   ;;  %v5321_v47 = vld [vmem:[#allocation2 + $0x1a0] sm:$0xff]  }
 0x12e   : > { %v939_v56 = vrot.slane %v872_v51, 7  ;;  %v5824_v57 = vpack.c.bf16 %v872_v51, %v871_v43  ;;  %v2097_v58 = vrot.slane %v872_v51, 1  ;;  %v4759_v59 = vpop.f32.mrb[8].mxu0  ;;  %4562 = vmatpush3.bf16.msra.mxu1 %v5313_v45 }
 0x12f   : > { %v781_v60 = vadd.f32 %v4759_v59, %v5795_v0  ;;  %v772_v61 = vpop.f32.mrb[9].mxu0  ;;  %v943_v63 = vsel %vm931_vm2, %v941_v49, %v942_v52  ;;  %4563 = vmatprep.subr.bf16.mxu1 %v5315_v48  ;;  %v2101_v3 = vsel %vm2089_vm3, %v2099_v50, %v2100_v53  ;;  %v5322_v52 = vld [vmem:[#allocation2 + $0x1e8] sm:$0xff]  }
 0x130   : > { %v773_v4 = vadd.f32 %v5795_v0, %v772_v61  ;;  %v4760_v5 = vpop.f32.mrb[10].mxu0  ;;  %4798 = vmatmul.mubr.bf16.vlgmr.msra.gmra.mrb[32].mxu0 %v5824_v57  ;;  %v940_v6 = vsel %vm931_vm2, %v938_v2, %v939_v56  ;;  %v5832_v7 = vpack.c.bf16 %v943_v63, %v941_v49  ;;  %v2098_v10 = vsel %vm2089_vm3, %v2096_v55, %v2097_v58  ;;  %v5300_v61 = vld [vmem:[#allocation2 + $0x18] sm:$0xff]  }
 0x131   : > { %v877_v11 = vmax.f32 %v781_v60, 0.0  ;;  %v784_v12 = vadd.f32 %v4760_v5, %v5795_v0  ;;  %4424 = vmatpush3.bf16.msra.mxu0 %v5294_v54  ;;  %v775_v13 = vpop.f32.mrb[11].mxu0  ;;  %1342 = vmatmul.mubr.bf16.gmra.mrb[4].mxu1 %v1092_v25  ;;  %v5836_v15 = vpack.c.bf16 %v940_v6, %v938_v2  ;;  %v5838_v16 = vpack.c.bf16 %v2097_v58, %v2098_v10  ;;  %v5325_v6 = vld [vmem:[#allocation2 + $0x1f0] sm:$0xff]  }
 0x132   : > { %v875_v17 = vmax.f32 %v773_v4, 0.0  ;;  %v776_v18 = vadd.f32 %v5795_v0, %v775_v13  ;;  %4801 = vmatprep.mubr.bf16.mxu0 %v5822_v8  ;;  %1349 = vmatprep.mubr.bf16.mxu1 %v5824_v57  ;;  %v5843_v21 = vpack.c.bf16 %v2100_v53, %v2101_v3  ;;  %v5323_v3 = vld [vmem:[#allocation2 + $0x1a8] sm:$0xff]  }
 0x133   : > { %v878_v22 = vmax.f32 %v784_v12, 0.0  ;;  %4425 = vmatprep.subr.bf16.mxu0 %v5295_v62  ;;  %4564 = vmatpush3.bf16.msra.mxu1 %v5316_v1  ;;  %v947_v24 = vrot.slane %v877_v11, 7  ;;  %v2105_v27 = vrot.slane %v877_v11, 1 }
 0x134   : > { %v876_v25 = vmax.f32 %v776_v18, 0.0  ;;  %4565 = vmatprep.subr.bf16.mxu1 %v5318_v9  ;;  %v944_v31 = vrot.slane %v875_v17, 7  ;;  %v2102_v38 = vrot.slane %v875_v17, 1 }
 0x135   : > { %v948_v28 = vrot.slane %v878_v22, 7  ;;  %v2106_v29 = vrot.slane %v878_v22, 1  ;;  %4426 = vmatpush3.bf16.msra.mxu0 %v5296_v14  ;;  %v5845_v30 = vpack.c.bf16 %v878_v22, %v877_v11  ;;  %v5302_v22 = vld [vmem:[#allocation2 + $0x20] sm:$0xff]  }
 0x136   : > { %v945_v32 = vrot.slane %v876_v25, 7  ;;  %v2103_v33 = vrot.slane %v876_v25, 1  ;;  %v4763_v34 = vpop.f32.mrb[12].mxu0  ;;  %v5847_v36 = vpack.c.bf16 %v876_v25, %v875_v17  ;;  %4427 = vmatprep.subr.bf16.mxu0 %v5297_v19 }
 0x137   : > { %v797_v39 = vadd.f32 %v4763_v34, %v5795_v0  ;;  %v788_v43 = vpop.f32.mrb[13].mxu0  ;;  %v949_v45 = vsel %vm931_vm2, %v947_v24, %v948_v28  ;;  %4566 = vmatpush3.bf16.msra.mxu1 %v5319_v23  ;;  %v2107_v48 = vsel %vm2089_vm3, %v2105_v27, %v2106_v29  ;;  %v5326_v28 = vld [vmem:[#allocation2 + $0x1b0] sm:$0xff]  }
 0x138   : > { %v789_v49 = vadd.f32 %v5795_v0, %v788_v43  ;;  %v4764_v50 = vpop.f32.mrb[14].mxu0  ;;  %4802 = vmatmul.mubr.bf16.gmra.mrb[36].mxu0 %v5847_v36  ;;  %v946_v51 = vsel %vm931_vm2, %v944_v31, %v945_v32  ;;  %v5855_v2 = vpack.c.bf16 %v949_v45, %v947_v24  ;;  %4567 = vmatprep.subr.bf16.mxu1 %v5320_v26  ;;  %v5303_v26 = vld [vmem:[#allocation2 + $0x68] sm:$0xff]  }
 0x139   : > { %v881_v53 = vmax.f32 %v797_v39, 0.0  ;;  %v800_v54 = vadd.f32 %v4764_v50, %v5795_v0  ;;  %v791_v55 = vpop.f32.mrb[15].mxu0  ;;  %1350 = vmatmul.mubr.bf16.gmra.mrb[8].mxu1 %v5801_v20  ;;  %4805 = vmatprep.mubr.bf16.mxu0 %v5845_v30  ;;  %v5860_v56 = vpack.c.bf16 %v946_v51, %v944_v31  ;;  %v2104_v58 = vsel %vm2089_vm3, %v2102_v38, %v2103_v33  ;;  %v5301_v20 = vld [vmem:[#allocation2 + $0x60] sm:$0xff]  }
 0x13a   : > { %v879_v59 = vmax.f32 %v789_v49, 0.0  ;;  %v792_v60 = vadd.f32 %v5795_v0, %v791_v55  ;;  %1357 = vmatprep.mubr.bf16.mxu1 %v5822_v8  ;;  %4428 = vmatpush3.bf16.msra.mxu0 %v5298_v37  ;;  %v5865_v62 = vpack.c.bf16 %v2103_v33, %v2104_v58  ;;  %v5867_v63 = vpack.c.bf16 %v2106_v29, %v2107_v48  ;;  %v5327_v37 = vld [vmem:[#allocation2 + $0x1f8] sm:$0xff]   ;;  %v5304_v49 = vld [vmem:[#allocation2 + $0x28] sm:$0xff]  }
 0x13b   : > { %v882_v1 = vmax.f32 %v800_v54, 0.0  ;;  %4429 = vmatprep.subr.bf16.mxu0 %v5299_v44  ;;  %4568 = vmatpush3.bf16.msra.mxu1 %v5321_v47  ;;  %v953_v4 = vrot.slane %v881_v53, 7  ;;  %v2111_v9 = vrot.slane %v881_v53, 1 }
 0x13c   : > { %v880_v5 = vmax.f32 %v792_v60, 0.0  ;;  %4569 = vmatprep.subr.bf16.mxu1 %v5322_v52  ;;  %v950_v13 = vrot.slane %v879_v59, 7  ;;  %v2108_v23 = vrot.slane %v879_v59, 1 }
 0x13d   : > { %v954_v10 = vrot.slane %v882_v1, 7  ;;  %v2112_v11 = vrot.slane %v882_v1, 1  ;;  %v5869_v12 = vpack.c.bf16 %v882_v1, %v881_v53  ;;  %v5328_v53 = vld [vmem:[#allocation2 + $0x1b8] sm:$0xff]  }
 0x13e   : > { %v951_v14 = vrot.slane %v880_v5, 7  ;;  %v2109_v17 = vrot.slane %v880_v5, 1  ;;  %v4767_v18 = vpop.f32.mrb[16].mxu0  ;;  %v5871_v19 = vpack.c.bf16 %v880_v5, %v879_v59  ;;  %4430 = vmatpush3.bf16.msra.mxu0 %v5300_v61 }
 0x13f   : > { %v813_v24 = vadd.f32 %v4767_v18, %v5795_v0  ;;  %v804_v25 = vpop.f32.mrb[17].mxu0  ;;  %4431 = vmatprep.subr.bf16.mxu0 %v5301_v20  ;;  %4570 = vmatpush3.bf16.msra.mxu1 %v5323_v3  ;;  %v955_v27 = vsel %vm931_vm2, %v953_v4, %v954_v10  ;;  %v2113_v29 = vsel %vm2089_vm3, %v2111_v9, %v2112_v11  ;;  %v5306_v9 = vld [vmem:[#allocation2 + $0x30] sm:$0xff]  }
 0x140   : > { %v805_v31 = vadd.f32 %v5795_v0, %v804_v25  ;;  %v4768_v32 = vpop.f32.mrb[18].mxu0  ;;  %4806 = vmatmul.mubr.bf16.gmra.mrb[40].mxu0 %v5871_v19  ;;  %v952_v33 = vsel %vm931_vm2, %v950_v13, %v951_v14  ;;  %v5879_v34 = vpack.c.bf16 %v955_v27, %v953_v4  ;;  %4571 = vmatprep.subr.bf16.mxu1 %v5325_v6 }
 0x141   : > { %v885_v38 = vmax.f32 %v813_v24, 0.0  ;;  %v816_v39 = vadd.f32 %v4768_v32, %v5795_v0  ;;  %v807_v43 = vpop.f32.mrb[19].mxu0  ;;  %1358 = vmatmul.mubr.bf16.gmra.mrb[12].mxu1 %v5824_v57  ;;  %4809 = vmatprep.mubr.bf16.mxu0 %v5869_v12  ;;  %v5884_v44 = vpack.c.bf16 %v952_v33, %v950_v13  ;;  %v2110_v45 = vsel %vm2089_vm3, %v2108_v23, %v2109_v17  ;;  %v5305_v57 = vld [vmem:[#allocation2 + $0x70] sm:$0xff]   ;;  %v5307_v13 = vld [vmem:[#allocation2 + $0x78] sm:$0xff]  }
 0x142   : > { %v883_v47 = vmax.f32 %v805_v31, 0.0  ;;  %v808_v48 = vadd.f32 %v5795_v0, %v807_v43  ;;  %1365 = vmatprep.mubr.bf16.mxu1 %v5847_v36  ;;  %4432 = vmatpush3.bf16.msra.mxu0 %v5302_v22  ;;  %v5889_v50 = vpack.c.bf16 %v2109_v17, %v2110_v45  ;;  %v5891_v51 = vpack.c.bf16 %v2112_v11, %v2113_v29  ;;  %v5917_v43 = vld [vmem:[#allocation2 + $0x80] sm:$0xff]  }
 0x143   : > { %v886_v52 = vmax.f32 %v816_v39, 0.0  ;;  %4433 = vmatprep.subr.bf16.mxu0 %v5303_v26  ;;  %4572 = vmatpush3.bf16.msra.mxu1 %v5326_v28  ;;  %v959_v54 = vrot.slane %v885_v38, 7  ;;  %v2117_v55 = vrot.slane %v885_v38, 1 }
 0x144   : > { %v884_v58 = vmax.f32 %v808_v48, 0.0  ;;  %4573 = vmatprep.subr.bf16.mxu1 %v5327_v37  ;;  %v956_v59 = vrot.slane %v883_v47, 7  ;;  %v2114_v20 = vrot.slane %v883_v47, 1  ;;  %v5308_v37 = vld [vmem:[#allocation2 + $0x38] sm:$0xff]  }
 0x145   : > { %v960_v60 = vrot.slane %v886_v52, 7  ;;  %v2118_v61 = vrot.slane %v886_v52, 1  ;;  %v5893_v1 = vpack.c.bf16 %v886_v52, %v885_v38 }
 0x146   : > { %v957_v3 = vrot.slane %v884_v58, 7  ;;  %v2115_v4 = vrot.slane %v884_v58, 1  ;;  %v4771_v5 = vpop.f32.mrb[20].mxu0  ;;  %v5895_v6 = vpack.c.bf16 %v884_v58, %v883_v47  ;;  %4434 = vmatpush3.bf16.msra.mxu0 %v5304_v49 }
 0x147   : > { %v829_v10 = vadd.f32 %v4771_v5, %v5795_v0  ;;  %v820_v11 = vpop.f32.mrb[21].mxu0  ;;  %4435 = vmatprep.subr.bf16.mxu0 %v5305_v57  ;;  %4574 = vmatpush3.bf16.msra.mxu1 %v5328_v53  ;;  %v961_v14 = vsel %vm931_vm2, %v959_v54, %v960_v60  ;;  %v2119_v17 = vsel %vm2089_vm3, %v2117_v55, %v2118_v61 }
 0x148   : > { %v821_v18 = vadd.f32 %v5795_v0, %v820_v11  ;;  %v4772_v22 = vpop.f32.mrb[22].mxu0  ;;  %4810 = vmatmul.mubr.bf16.gmra.mrb[44].mxu0 %v5895_v6  ;;  %v958_v23 = vsel %vm931_vm2, %v956_v59, %v957_v3  ;;  %v5903_v24 = vpack.c.bf16 %v961_v14, %v959_v54  ;;  %v2116_v25 = vsel %vm2089_vm3, %v2114_v20, %v2115_v4 }
 0x149   : > { %v889_v26 = vmax.f32 %v829_v10, 0.0  ;;  %v832_v27 = vadd.f32 %v4772_v22, %v5795_v0  ;;  %v823_v28 = vpop.f32.mrb[23].mxu0  ;;  %1366 = vmatmul.mubr.bf16.gmra.mrb[16].mxu1 %v5822_v8  ;;  %4813 = vmatprep.mubr.bf16.mxu0 %v5893_v1  ;;  %v5909_v29 = vpack.c.bf16 %v958_v23, %v956_v59  ;;  %v5911_v31 = vpack.c.bf16 %v2115_v4, %v2116_v25 }
 0x14a   : > { %v887_v32 = vmax.f32 %v821_v18, 0.0  ;;  %v824_v33 = vadd.f32 %v5795_v0, %v823_v28  ;;  %1373 = vmatprep.mubr.bf16.mxu1 %v5845_v30  ;;  %4436 = vmatpush3.bf16.msra.mxu0 %v5306_v9  ;;  %v5915_v38 = vpack.c.bf16 %v2118_v61, %v2119_v17 }
 0x14b   : > { %v890_v39 = vmax.f32 %v832_v27, 0.0  ;;  %4437 = vmatprep.subr.bf16.mxu0 %v5307_v13  ;;  %v965_v8 = vrot.slane %v889_v26, 7  ;;  %v2123_v45 = vrot.slane %v889_v26, 1 }
 0x14c   : > { %v888_v47 = vmax.f32 %v824_v33, 0.0  ;;  %v962_v48 = vrot.slane %v887_v32, 7  ;;  %v2120_v53 = vrot.slane %v887_v32, 1 }
 0x14d   : > { %v966_v49 = vrot.slane %v890_v39, 7  ;;  %v2124_v52 = vrot.slane %v890_v39, 1  ;;  %v5919_v57 = vpack.c.bf16 %v890_v39, %v889_v26 }
 0x14e   : > { %v963_v54 = vrot.slane %v888_v47, 7  ;;  %v2121_v55 = vrot.slane %v888_v47, 1  ;;  %v4775_v58 = vpop.f32.mrb[24].mxu0  ;;  %v5921_v59 = vpack.c.bf16 %v888_v47, %v887_v32  ;;  %4438 = vmatpush3.bf16.msra.mxu0 %v5308_v37 }
 0x14f   : > { %v845_v60 = vadd.f32 %v4775_v58, %v5795_v0  ;;  %v836_v61 = vpop.f32.mrb[25].mxu0  ;;  %4829 = vmatprep.subr.bf16.mxu0 %v5917_v43  ;;  %v967_v20 = vsel %vm931_vm2, %v965_v8, %v966_v49  ;;  %v2125_v3 = vsel %vm2089_vm3, %v2123_v45, %v2124_v52 }
 0x150   : > { %v837_v4 = vadd.f32 %v5795_v0, %v836_v61  ;;  %v4776_v5 = vpop.f32.mrb[26].mxu0  ;;  %4814 = vmatmul.mubr.bf16.gmra.mrb[48].mxu0 %v5921_v59  ;;  %v964_v9 = vsel %vm931_vm2, %v962_v48, %v963_v54  ;;  %v5930_v10 = vpack.c.bf16 %v967_v20, %v965_v8  ;;  %v2122_v11 = vsel %vm2089_vm3, %v2120_v53, %v2121_v55 }
 0x151   : > { %v893_v13 = vmax.f32 %v845_v60, 0.0  ;;  %v848_v14 = vadd.f32 %v4776_v5, %v5795_v0  ;;  %v839_v17 = vpop.f32.mrb[27].mxu0  ;;  %1374 = vmatmul.mubr.bf16.gmra.mrb[20].mxu1 %v5847_v36  ;;  %4817 = vmatprep.mubr.bf16.mxu0 %v5919_v57  ;;  %v5936_v18 = vpack.c.bf16 %v964_v9, %v962_v48  ;;  %v5938_v22 = vpack.c.bf16 %v2121_v55, %v2122_v11 }
 0x152   : > { %v891_v23 = vmax.f32 %v837_v4, 0.0  ;;  %v840_v25 = vadd.f32 %v5795_v0, %v839_v17  ;;  %1381 = vmatprep.mubr.bf16.mxu1 %v5871_v19  ;;  %v5942_v26 = vpack.c.bf16 %v2124_v52, %v2125_v3 }
 0x153   : > { %v894_v27 = vmax.f32 %v848_v14, 0.0  ;;  %v971_v28 = vrot.slane %v893_v13, 7  ;;  %v2129_v32 = vrot.slane %v893_v13, 1 }
 0x154   : > { %v892_v33 = vmax.f32 %v840_v25, 0.0  ;;  %v968_v37 = vrot.slane %v891_v23, 7  ;;  %v2126_v45 = vrot.slane %v891_v23, 1 }
 0x155   : > { %v972_v39 = vrot.slane %v894_v27, 7  ;;  %v2130_v36 = vrot.slane %v894_v27, 1  ;;  %v5944_v8 = vpack.c.bf16 %v894_v27, %v893_v13 }
 0x156   : > { %v969_v47 = vrot.slane %v892_v33, 7  ;;  %v2127_v48 = vrot.slane %v892_v33, 1  ;;  %v4779_v49 = vpop.f32.mrb[28].mxu0  ;;  %v5946_v53 = vpack.c.bf16 %v892_v33, %v891_v23 }
 0x157   : > { %v861_v54 = vadd.f32 %v4779_v49, %v5795_v0  ;;  %v852_v55 = vpop.f32.mrb[29].mxu0  ;;  %v973_v52 = vsel %vm931_vm2, %v971_v28, %v972_v39  ;;  %v2131_v58 = vsel %vm2089_vm3, %v2129_v32, %v2130_v36 }
 0x158   : > { %v853_v60 = vadd.f32 %v5795_v0, %v852_v55  ;;  %v4780_v61 = vpop.f32.mrb[30].mxu0  ;;  %4818 = vmatmul.mubr.bf16.gmra.mrb[52].mxu0 %v5946_v53  ;;  %v970_v20 = vsel %vm931_vm2, %v968_v37, %v969_v47  ;;  %v5954_v3 = vpack.c.bf16 %v973_v52, %v971_v28  ;;  %v2128_v4 = vsel %vm2089_vm3, %v2126_v45, %v2127_v48 }
 0x159   : > { %v897_v5 = vmax.f32 %v861_v54, 0.0  ;;  %v864_v9 = vadd.f32 %v4780_v61, %v5795_v0  ;;  %v855_v11 = vpop.f32.mrb[31].mxu0  ;;  %1382 = vmatmul.mubr.bf16.gmra.mrb[24].mxu1 %v5845_v30  ;;  %4821 = vmatprep.mubr.bf16.mxu0 %v5944_v8  ;;  %v5960_v13 = vpack.c.bf16 %v970_v20, %v968_v37  ;;  %v5962_v14 = vpack.c.bf16 %v2127_v48, %v2128_v4 }
 0x15a   : > { %v895_v17 = vmax.f32 %v853_v60, 0.0  ;;  %v856_v23 = vadd.f32 %v5795_v0, %v855_v11  ;;  %1389 = vmatprep.mubr.bf16.mxu1 %v5869_v12  ;;  %v5966_v25 = vpack.c.bf16 %v2130_v36, %v2131_v58  ;;  %v5338_v11 = vld [vmem:[#allocation2 + $0x228] sm:$0xff]  }
 0x15b   : > { %v898_v27 = vmax.f32 %v864_v9, 0.0  ;;  %v977_v28 = vrot.slane %v897_v5, 7  ;;  %v2135_v32 = vrot.slane %v897_v5, 1 }
 0x15c   : > { %v896_v33 = vmax.f32 %v856_v23, 0.0  ;;  %v974_v39 = vrot.slane %v895_v17, 7  ;;  %v2132_v37 = vrot.slane %v895_v17, 1  ;;  %v5339_v23 = vld [vmem:[#allocation2 + $0x230] sm:$0xff]  }
 0x15d   : > { %v978_v45 = vrot.slane %v898_v27, 7  ;;  %v2136_v30 = vrot.slane %v898_v27, 1  ;;  %v5968_v47 = vpack.c.bf16 %v898_v27, %v897_v5  ;;  %v5324_v5 = vld [vmem:[#allocation2 + $0x98] sm:$0xff]  }
 0x15e   : > { %v975_v49 = vrot.slane %v896_v33, 7  ;;  %v2133_v48 = vrot.slane %v896_v33, 1  ;;  %v5970_v54 = vpack.c.bf16 %v896_v33, %v895_v17  ;;  %v5340_v33 = vld [vmem:[#allocation2 + $0x238] sm:$0xff]  }
 0x15f   : > { %v979_v0 = vsel %vm931_vm2, %v977_v28, %v978_v45  ;;  %v2137_v55 = vsel %vm2089_vm3, %v2135_v32, %v2136_v30 }
 0x160   : > { %4822 = vmatmul.mubr.bf16.gmra.mrb[56].mxu0 %v5970_v54  ;;  %v976_v36 = vsel %vm931_vm2, %v974_v39, %v975_v49  ;;  %v5976_v52 = vpack.c.bf16 %v979_v0, %v977_v28  ;;  %v2134_v58 = vsel %vm2089_vm3, %v2132_v37, %v2133_v48  ;;  %v5979_v60 = vpack.c.bf16 %v2136_v30, %v2137_v55 }
 0x161   : > { %1390 = vmatmul.mubr.bf16.gmra.mrb[28].mxu1 %v5871_v19  ;;  %4825 = vmatprep.mubr.bf16.mxu0 %v5968_v47  ;;  %v5983_v61 = vpack.c.bf16 %v976_v36, %v974_v39  ;;  %v5985_v20 = vpack.c.bf16 %v2133_v48, %v2134_v58  ;;  %v5314_v19 = vld [vmem:[#allocation2 + $0x88] sm:$0xff]  }
 0x162   : > { %1397 = vmatprep.mubr.bf16.mxu1 %v5895_v6 }
 0x168   : > { %4826 = vmatmul.mubr.bf16.gmra.mrb[60].mxu0 %v5508_v40 }
 0x169   : > { %1398 = vmatmul.mubr.bf16.gmra.mrb[32].mxu1 %v5869_v12  ;;  %3867 = vmatprep.mubr.msk.bf16.mxu0 %vm5990_vm6, %v5814_v41  ;;  %v5317_v12 = vld [vmem:[#allocation2 + $0x90] sm:$0xff]  }
 0x16a   : > { %1405 = vmatprep.mubr.bf16.mxu1 %v5893_v1 }
 0x170   : > { %1800 = vmatmul.mubr.bf16.vlgmr.msra.gmra.mrb[64].mxu0 %v5508_v40 }
 0x171   : > { %4830 = vmatpush3.bf16.msra.mxu0 %v5917_v43  ;;  %1406 = vmatmul.mubr.bf16.gmra.mrb[36].mxu1 %v5895_v6  ;;  %v5329_v6 = vld [vmem:[#allocation2 + $0xa0] sm:$0xff]   ;;  %v5330_v43 = vld [vmem:[#allocation2 + $0xa8] sm:$0xff]  }
 0x172   : > { %3871 = vmatprep.mubr.msk.bf16.mxu0 %vm5990_vm6, %v5809_v35  ;;  %1413 = vmatprep.mubr.bf16.mxu1 %v5921_v59 }
 0x173   : > { %4831 = vmatprep.subr.bf16.mxu0 %v5314_v19 }
 0x175   : > { %4832 = vmatpush3.bf16.msra.mxu0 %v5314_v19 }
 0x176   : > { %4833 = vmatprep.subr.bf16.mxu0 %v5317_v12 }
 0x178   : > { %3875 = vmatmul.mubr.msk.bf16.gmra.mrb[68].mxu0 %vm5990_vm6, %v5814_v41  ;;  %v5331_v41 = vld [vmem:[#allocation2 + $0xb0] sm:$0xff]  }
 0x179   : > { %1414 = vmatmul.mubr.bf16.gmra.mrb[40].mxu1 %v5893_v1  ;;  %3879 = vmatprep.mubr.msk.bf16.mxu0 %vm5990_vm6, %v5836_v15  ;;  %v5332_v1 = vld [vmem:[#allocation2 + $0xb8] sm:$0xff]  }
 0x17a   : > { %1421 = vmatprep.mubr.bf16.mxu1 %v5919_v57  ;;  %4834 = vmatpush3.bf16.msra.mxu0 %v5317_v12 }
 0x17b   : > { %4835 = vmatprep.subr.bf16.mxu0 %v5324_v5 }
 0x17e   : > { %4836 = vmatpush3.bf16.msra.mxu0 %v5324_v5 }
 0x17f   : > { %4837 = vmatprep.subr.bf16.mxu0 %v5329_v6 }
 0x180   : > { %3883 = vmatmul.mubr.msk.bf16.gmra.mrb[72].mxu0 %vm5990_vm6, %v5809_v35 }
 0x181   : > { %1422 = vmatmul.mubr.bf16.gmra.mrb[44].mxu1 %v5921_v59  ;;  %3887 = vmatprep.mubr.msk.bf16.mxu0 %vm5990_vm6, %v5832_v7  ;;  %v5333_v59 = vld [vmem:[#allocation2 + $0x200] sm:$0xff]  }
 0x182   : > { %1429 = vmatprep.mubr.bf16.mxu1 %v5946_v53  ;;  %4838 = vmatpush3.bf16.msra.mxu0 %v5329_v6 }
 0x183   : > { %4839 = vmatprep.subr.bf16.mxu0 %v5330_v43 }
 0x186   : > { %4840 = vmatpush3.bf16.msra.mxu0 %v5330_v43 }
 0x187   : > { %4841 = vmatprep.subr.bf16.mxu0 %v5331_v41 }
 0x188   : > { %3891 = vmatmul.mubr.msk.bf16.gmra.mrb[76].mxu0 %vm5990_vm6, %v5836_v15 }
 0x189   : > { %1430 = vmatmul.mubr.bf16.gmra.mrb[48].mxu1 %v5919_v57  ;;  %3895 = vmatprep.mubr.msk.bf16.mxu0 %vm5990_vm6, %v5860_v56 }
 0x18a   : > { %1437 = vmatprep.mubr.bf16.mxu1 %v5944_v8  ;;  %4842 = vmatpush3.bf16.msra.mxu0 %v5331_v41 }
 0x18b   : > { %4843 = vmatprep.subr.bf16.mxu0 %v5332_v1 }
 0x18e   : > { %4844 = vmatpush3.bf16.msra.mxu0 %v5332_v1 }
 0x18f   : > { %4877 = vmatprep.subr.bf16.mxu0 %v5333_v59 }
 0x190   : > { %3899 = vmatmul.mubr.msk.bf16.gmra.mrb[80].mxu0 %vm5990_vm6, %v5832_v7 }
 0x191   : > { %1438 = vmatmul.mubr.bf16.gmra.mrb[52].mxu1 %v5946_v53  ;;  %3903 = vmatprep.mubr.msk.bf16.mxu0 %vm5990_vm6, %v5855_v2 }
 0x192   : > { %1445 = vmatprep.mubr.bf16.mxu1 %v5970_v54 }
 0x198   : > { %3907 = vmatmul.mubr.msk.bf16.gmra.mrb[84].mxu0 %vm5990_vm6, %v5860_v56 }
 0x199   : > { %1446 = vmatmul.mubr.bf16.gmra.mrb[56].mxu1 %v5944_v8  ;;  %3911 = vmatprep.mubr.msk.bf16.mxu0 %vm5990_vm6, %v5884_v44  ;;  %v5336_v8 = vld [vmem:[#allocation2 + $0x218] sm:$0xff]  }
 0x19a   : > { %1453 = vmatprep.mubr.bf16.mxu1 %v5968_v47 }
 0x1a0   : > { %3915 = vmatmul.mubr.msk.bf16.gmra.mrb[88].mxu0 %vm5990_vm6, %v5855_v2 }
 0x1a1   : > { %1454 = vmatmul.mubr.bf16.gmra.mrb[60].mxu1 %v5970_v54  ;;  %3919 = vmatprep.mubr.msk.bf16.mxu0 %vm5990_vm6, %v5879_v34 }
 0x1a2   : > { %4074 = vmatprep.mubr.msk.bf16.mxu1 %vm6049_vm7, %v5816_v42 }
 0x1a8   : > { %3923 = vmatmul.mubr.msk.bf16.gmra.mrb[92].mxu0 %vm5990_vm6, %v5884_v44 }
 0x1a9   : > { %3927 = vmatprep.mubr.msk.bf16.mxu0 %vm5990_vm6, %v5909_v29  ;;  %2428 = vmatmul.mubr.bf16.vlgmr.msra.gmra.mrb[64].mxu1 %v5508_v40 }
 0x1aa   : > { %4077 = vmatprep.mubr.msk.bf16.mxu1 %vm6049_vm7, %v5820_v46 }
 0x1b0   : > { %3931 = vmatmul.mubr.msk.bf16.gmra.mrb[96].mxu0 %vm5990_vm6, %v5879_v34 }
 0x1b1   : > { %3935 = vmatprep.mubr.msk.bf16.mxu0 %vm5990_vm6, %v5903_v24  ;;  %4080 = vmatmul.mubr.msk.bf16.gmra.mrb[68].mxu1 %vm6049_vm7, %v5816_v42  ;;  %v5334_v42 = vld [vmem:[#allocation2 + $0x208] sm:$0xff]  }
 0x1b2   : > { %4083 = vmatprep.mubr.msk.bf16.mxu1 %vm6049_vm7, %v5838_v16 }
 0x1b8   : > { %3939 = vmatmul.mubr.msk.bf16.gmra.mrb[100].mxu0 %vm5990_vm6, %v5909_v29 }
 0x1b9   : > { %3943 = vmatprep.mubr.msk.bf16.mxu0 %vm5990_vm6, %v5936_v18  ;;  %4086 = vmatmul.mubr.msk.bf16.gmra.mrb[72].mxu1 %vm6049_vm7, %v5820_v46 }
 0x1ba   : > { %4089 = vmatprep.mubr.msk.bf16.mxu1 %vm6049_vm7, %v5843_v21 }
 0x1c0   : > { %3947 = vmatmul.mubr.msk.bf16.gmra.mrb[104].mxu0 %vm5990_vm6, %v5903_v24 }
 0x1c1   : > { %3951 = vmatprep.mubr.msk.bf16.mxu0 %vm5990_vm6, %v5930_v10  ;;  %4092 = vmatmul.mubr.msk.bf16.gmra.mrb[76].mxu1 %vm6049_vm7, %v5838_v16 }
 0x1c2   : > { %4095 = vmatprep.mubr.msk.bf16.mxu1 %vm6049_vm7, %v5865_v62 }
 0x1c8   : > { %3955 = vmatmul.mubr.msk.bf16.gmra.mrb[108].mxu0 %vm5990_vm6, %v5936_v18 }
 0x1c9   : > { %3959 = vmatprep.mubr.msk.bf16.mxu0 %vm5990_vm6, %v5960_v13  ;;  %4098 = vmatmul.mubr.msk.bf16.gmra.mrb[80].mxu1 %vm6049_vm7, %v5843_v21 }
 0x1ca   : > { %4101 = vmatprep.mubr.msk.bf16.mxu1 %vm6049_vm7, %v5867_v63 }
 0x1d0   : > { %3963 = vmatmul.mubr.msk.bf16.gmra.mrb[112].mxu0 %vm5990_vm6, %v5930_v10 }
 0x1d1   : > { %3967 = vmatprep.mubr.msk.bf16.mxu0 %vm5990_vm6, %v5954_v3  ;;  %4104 = vmatmul.mubr.msk.bf16.gmra.mrb[84].mxu1 %vm6049_vm7, %v5865_v62 }
 0x1d2   : > { %4107 = vmatprep.mubr.msk.bf16.mxu1 %vm6049_vm7, %v5889_v50 }
 0x1d8   : > { %3971 = vmatmul.mubr.msk.bf16.gmra.mrb[116].mxu0 %vm5990_vm6, %v5960_v13 }
 0x1d9   : > { %3975 = vmatprep.mubr.msk.bf16.mxu0 %vm5990_vm6, %v5983_v61  ;;  %4110 = vmatmul.mubr.msk.bf16.gmra.mrb[88].mxu1 %vm6049_vm7, %v5867_v63 }
 0x1da   : > { %4113 = vmatprep.mubr.msk.bf16.mxu1 %vm6049_vm7, %v5891_v51 }
 0x1e0   : > { %3979 = vmatmul.mubr.msk.bf16.gmra.mrb[120].mxu0 %vm5990_vm6, %v5954_v3 }
 0x1e1   : > { %3983 = vmatprep.mubr.msk.bf16.mxu0 %vm5990_vm6, %v5976_v52  ;;  %4116 = vmatmul.mubr.msk.bf16.gmra.mrb[92].mxu1 %vm6049_vm7, %v5889_v50 }
 0x1e2   : > { %4119 = vmatprep.mubr.msk.bf16.mxu1 %vm6049_vm7, %v5911_v31 }
 0x1e8   : > { %3987 = vmatmul.mubr.msk.bf16.gmra.mrb[124].mxu0 %vm5990_vm6, %v5983_v61 }
 0x1e9   : > { %4845 = vmatprep.mubr.msk.bf16.mxu0 %vm5990_vm6, %v5809_v35  ;;  %4122 = vmatmul.mubr.msk.bf16.gmra.mrb[96].mxu1 %vm6049_vm7, %v5891_v51  ;;  %v5335_v35 = vld [vmem:[#allocation2 + $0x210] sm:$0xff]  }
 0x1ea   : > { %4125 = vmatprep.mubr.msk.bf16.mxu1 %vm6049_vm7, %v5915_v38 }
 0x1f0   : > { %4846 = vmatmul.mubr.msk.bf16.vlgmr.msra.gmra.mrb[32].mxu0 %vm5990_vm6, %v5836_v15 }
 0x1f1   : > { %4878 = vmatpush3.bf16.msra.mxu0 %v5333_v59  ;;  %4849 = vmatprep.mubr.msk.bf16.mxu0 %vm5990_vm6, %v5832_v7  ;;  %v5337_v7 = vld [vmem:[#allocation2 + $0x220] sm:$0xff]  }
 0x1f2   : > { %4128 = vmatmul.mubr.msk.bf16.gmra.mrb[100].mxu1 %vm6049_vm7, %v5911_v31  ;;  %4879 = vmatprep.subr.bf16.mxu0 %v5334_v42 }
 0x1f3   : > { %4131 = vmatprep.mubr.msk.bf16.mxu1 %vm6049_vm7, %v5938_v22 }
 0x1f5   : > { %4880 = vmatpush3.bf16.msra.mxu0 %v5334_v42 }
 0x1f6   : > { %4881 = vmatprep.subr.bf16.mxu0 %v5335_v35 }
 0x1f8   : > { %4850 = vmatmul.mubr.msk.bf16.gmra.mrb[36].mxu0 %vm5990_vm6, %v5860_v56 }
 0x1f9   : > { %4853 = vmatprep.mubr.msk.bf16.mxu0 %vm5990_vm6, %v5855_v2  ;;  %4882 = vmatpush3.bf16.msra.mxu0 %v5335_v35 }
 0x1fa   : > { %4134 = vmatmul.mubr.msk.bf16.gmra.mrb[104].mxu1 %vm6049_vm7, %v5915_v38  ;;  %4883 = vmatprep.subr.bf16.mxu0 %v5336_v8 }
 0x1fb   : > { %4137 = vmatprep.mubr.msk.bf16.mxu1 %vm6049_vm7, %v5942_v26 }
 0x1fc   : > { %v4303_v15 = vpop.f32.mrb[0].mxu1 }
 0x1fd   : > { %v4304_v53 = vpop.f32.mrb[1].mxu1  ;;  %4884 = vmatpush3.bf16.msra.mxu0 %v5336_v8 }
 0x1fe   : > { %v6193_v9 = vadd.f32 %v4304_v53, %v4303_v15  ;;  %v4306_v56 = vpop.f32.mrb[2].mxu1  ;;  %4885 = vmatprep.subr.bf16.mxu0 %v5337_v7 }
 0x1ff   : > { %v4307_v2 = vpop.f32.mrb[3].mxu1 }
 0x200   : > { %4854 = vmatmul.mubr.msk.bf16.gmra.mrb[40].mxu0 %vm5990_vm6, %v5884_v44  ;;  %v6198_v17 = vadd.f32 %v4307_v2, %v4306_v56 }
 0x201   : > { %4857 = vmatprep.mubr.msk.bf16.mxu0 %vm5990_vm6, %v5879_v34  ;;  %4886 = vmatpush3.bf16.msra.mxu0 %v5337_v7 }
 0x202   : > { %4140 = vmatmul.mubr.msk.bf16.gmra.mrb[108].mxu1 %vm6049_vm7, %v5938_v22  ;;  %4887 = vmatprep.subr.bf16.mxu0 %v5338_v11 }
 0x203   : > { %4143 = vmatprep.mubr.msk.bf16.mxu1 %vm6049_vm7, %v5962_v14 }
 0x204   : > { %v4309_v27 = vpop.f32.mrb[4].mxu1 }
 0x205   : > { %v4310_v28 = vpop.f32.mrb[5].mxu1  ;;  %4888 = vmatpush3.bf16.msra.mxu0 %v5338_v11 }
 0x206   : > { %v6209_v44 = vadd.f32 %v4310_v28, %v4309_v27  ;;  %v4312_v32 = vpop.f32.mrb[6].mxu1  ;;  %4889 = vmatprep.subr.bf16.mxu0 %v5339_v23 }
 0x207   : > { %v4313_v34 = vpop.f32.mrb[7].mxu1 }
 0x208   : > { %v6211_v39 = vadd.f32 %v4313_v34, %v4312_v32  ;;  %4858 = vmatmul.mubr.msk.bf16.gmra.mrb[44].mxu0 %vm5990_vm6, %v5909_v29 }
 0x209   : > { %4861 = vmatprep.mubr.msk.bf16.mxu0 %vm5990_vm6, %v5903_v24  ;;  %4890 = vmatpush3.bf16.msra.mxu0 %v5339_v23 }
 0x20a   : > { %4146 = vmatmul.mubr.msk.bf16.gmra.mrb[112].mxu1 %vm6049_vm7, %v5942_v26  ;;  %4891 = vmatprep.subr.bf16.mxu0 %v5340_v33 }
 0x20b   : > { %4149 = vmatprep.mubr.msk.bf16.mxu1 %vm6049_vm7, %v5966_v25 }
 0x20c   : > { %v4315_v45 = vpop.f32.mrb[8].mxu1 }
 0x20d   : > { %v4316_v30 = vpop.f32.mrb[9].mxu1  ;;  %4892 = vmatpush3.bf16.msra.mxu0 %v5340_v33 }
 0x20e   : > { %v6225_v47 = vadd.f32 %v4316_v30, %v4315_v45  ;;  %v4318_v29 = vpop.f32.mrb[10].mxu1 }
 0x20f   : > { %v4319_v37 = vpop.f32.mrb[11].mxu1 }
 0x210   : > { %v6227_v49 = vadd.f32 %v4319_v37, %v4318_v29  ;;  %4862 = vmatmul.mubr.msk.bf16.gmra.mrb[48].mxu0 %vm5990_vm6, %v5936_v18 }
 0x211   : > { %4865 = vmatprep.mubr.msk.bf16.mxu0 %vm5990_vm6, %v5930_v10 }
 0x212   : > { %4152 = vmatmul.mubr.msk.bf16.gmra.mrb[116].mxu1 %vm6049_vm7, %v5962_v14 }
 0x213   : > { %4155 = vmatprep.mubr.msk.bf16.mxu1 %vm6049_vm7, %v5985_v20 }
 0x214   : > { %v4321_v24 = vpop.f32.mrb[12].mxu1 }
 0x215   : > { %v4322_v48 = vpop.f32.mrb[13].mxu1 }
 0x216   : > { %v6241_v54 = vadd.f32 %v4322_v48, %v4321_v24  ;;  %v4324_v0 = vpop.f32.mrb[14].mxu1 }
 0x217   : > { %v4325_v55 = vpop.f32.mrb[15].mxu1 }
 0x218   : > { %v6243_v36 = vadd.f32 %v4325_v55, %v4324_v0  ;;  %4866 = vmatmul.mubr.msk.bf16.gmra.mrb[52].mxu0 %vm5990_vm6, %v5960_v13 }
 0x219   : > { %4869 = vmatprep.mubr.msk.bf16.mxu0 %vm5990_vm6, %v5954_v3  ;;  %v5341_v3 = vld [vmem:[%s7197_s7] sm:$0xff]  }
 0x21a   : > { %4158 = vmatmul.mubr.msk.bf16.gmra.mrb[120].mxu1 %vm6049_vm7, %v5966_v25  ;;  %5033 = vmatprep.subr.bf16.mxu1 %v5341_v3 }
 0x21b   : > { %4161 = vmatprep.mubr.msk.bf16.mxu1 %vm6049_vm7, %v5979_v60  ;;  %4925 = vmatprep.subr.bf16.mxu0 %v5341_v3 }
 0x21c   : > { %v4327_v10 = vpop.f32.mrb[16].mxu1  ;;  %5041 = vmatpush3.bf16.msra.mxu1 %v5341_v3 }
 0x21d   : > { %v4328_v18 = vpop.f32.mrb[17].mxu1 }
 0x21e   : > { %v6257_v58 = vadd.f32 %v4328_v18, %v4327_v10  ;;  %v4330_v19 = vpop.f32.mrb[18].mxu1 }
 0x21f   : > { %v4331_v12 = vpop.f32.mrb[19].mxu1 }
 0x220   : > { %v6259_v5 = vadd.f32 %v4331_v12, %v4330_v19  ;;  %4870 = vmatmul.mubr.msk.bf16.gmra.mrb[56].mxu0 %vm5990_vm6, %v5983_v61 }
 0x221   : > { %4873 = vmatprep.mubr.msk.bf16.mxu0 %vm5990_vm6, %v5976_v52 }
 0x222   : > { %4164 = vmatmul.mubr.msk.bf16.gmra.mrb[124].mxu1 %vm6049_vm7, %v5985_v20 }
 0x224   : > { %v4333_v13 = vpop.f32.mrb[20].mxu1 }
 0x225   : > { %v4334_v6 = vpop.f32.mrb[21].mxu1 }
 0x226   : > { %v6273_v43 = vadd.f32 %v4334_v6, %v4333_v13  ;;  %v4336_v61 = vpop.f32.mrb[22].mxu1 }
 0x227   : > { %v4337_v41 = vpop.f32.mrb[23].mxu1 }
 0x228   : > { %v6275_v1 = vadd.f32 %v4337_v41, %v4336_v61  ;;  %4874 = vmatmul.mubr.bf16.gmra.mrb[60].mxu0 %v5508_v40 }
 0x229   : > { %4893 = vmatprep.mubr.msk.bf16.mxu0 %vm6049_vm7, %v5820_v46  ;;  %v5342_v46 = vld [vmem:[%s7197_s7 + $0x8] sm:$0xff]  }
 0x22a   : > { %5034 = vmatprep.subr.bf16.mxu1 %v5342_v46 }
 0x22b   : > { %5042 = vmatpush3.bf16.msra.mxu1 %v5342_v46 }
 0x22c   : > { %v4339_v52 = vpop.f32.mrb[24].mxu1 }
 0x22d   : > { %v4340_v4 = vpop.f32.mrb[25].mxu1 }
 0x22e   : > { %v6281_v59 = vadd.f32 %v4340_v4, %v4339_v52  ;;  %v4342_v42 = vpop.f32.mrb[26].mxu1 }
 0x22f   : > { %v4343_v35 = vpop.f32.mrb[27].mxu1 }
 0x230   : > { %v6283_v8 = vadd.f32 %v4343_v35, %v4342_v42  ;;  %4894 = vmatmul.mubr.msk.bf16.vlgmr.msra.gmra.mrb[32].mxu0 %vm6049_vm7, %v5838_v16 }
 0x231   : > { %4897 = vmatprep.mubr.msk.bf16.mxu0 %vm6049_vm7, %v5843_v21  ;;  %4926 = vmatpush3.bf16.msra.mxu0 %v5341_v3 }
 0x232   : > { %4927 = vmatprep.subr.bf16.mxu0 %v5342_v46 }
 0x234   : > { %v4345_v7 = vpop.f32.mrb[28].mxu1 }
 0x235   : > { %v4346_v15 = vpop.f32.mrb[29].mxu1  ;;  %4928 = vmatpush3.bf16.msra.mxu0 %v5342_v46 }
 0x236   : > { %v6294_v53 = vadd.f32 %v4346_v15, %v4345_v7  ;;  %v4348_v56 = vpop.f32.mrb[30].mxu1 }
 0x237   : > { %v4349_v11 = vpop.f32.mrb[31].mxu1 }
 0x238   : > { %v6296_v16 = vadd.f32 %v4349_v11, %v4348_v56  ;;  %4898 = vmatmul.mubr.msk.bf16.gmra.mrb[36].mxu0 %vm6049_vm7, %v5865_v62  ;;  %v5343_v62 = vld [vmem:[%s7197_s7 + $0x10] sm:$0xff]  }
 0x239   : > { %4901 = vmatprep.mubr.msk.bf16.mxu0 %vm6049_vm7, %v5867_v63  ;;  %5035 = vmatprep.subr.bf16.mxu1 %v5343_v62 }
 0x23a   : > { %4929 = vmatprep.subr.bf16.mxu0 %v5343_v62  ;;  %5043 = vmatpush3.bf16.msra.mxu1 %v5343_v62 }
 0x23b   : > { %4930 = vmatpush3.bf16.msra.mxu0 %v5343_v62 }
 0x23c   : > { %v4351_v21 = vpop.f32.mrb[32].mxu1 }
 0x23d   : > { %v4352_v2 = vpop.f32.mrb[33].mxu1 }
 0x23e   : > { %v6304_v23 = vadd.f32 %v4352_v2, %v4351_v21  ;;  %v4354_v27 = vpop.f32.mrb[34].mxu1 }
 0x23f   : > { %v4355_v28 = vpop.f32.mrb[35].mxu1 }
 0x240   : > { %v6306_v32 = vadd.f32 %v4355_v28, %v4354_v27  ;;  %4902 = vmatmul.mubr.msk.bf16.gmra.mrb[40].mxu0 %vm6049_vm7, %v5889_v50 }
 0x241   : > { %4905 = vmatprep.mubr.msk.bf16.mxu0 %vm6049_vm7, %v5891_v51 }
 0x243   : > { %v4439_v63 = vpop.f32.mrb[64].mxu0 }
 0x244   : > { %v4357_v33 = vpop.f32.mrb[36].mxu1  ;;  %v4440_v34 = vpop.f32.mrb[65].mxu0 }
 0x245   : > { %v4441_v45 = vadd.f32 %v4440_v34, %v4439_v63  ;;  %v4358_v30 = vpop.f32.mrb[37].mxu1  ;;  %v4442_v29 = vpop.f32.mrb[66].mxu0 }
 0x246   : > { %v6317_v37 = vadd.f32 %v4358_v30, %v4357_v33  ;;  %v4360_v50 = vpop.f32.mrb[38].mxu1  ;;  %v4443_v24 = vpop.f32.mrb[67].mxu0 }
 0x247   : > { %v6320_v51 = vadd.f32 %v4441_v45, %v6193_v9  ;;  %v4444_v48 = vadd.f32 %v4443_v24, %v4442_v29  ;;  %v4361_v0 = vpop.f32.mrb[39].mxu1 }
 0x248   : > { %v6322_v55 = vadd.f32 %v4361_v0, %v4360_v50  ;;  %4906 = vmatmul.mubr.msk.bf16.gmra.mrb[44].mxu0 %vm6049_vm7, %v5911_v31 }
 0x249   : > { %v6328_v10 = vadd.f32 %v4444_v48, %v6198_v17  ;;  %4909 = vmatprep.mubr.msk.bf16.mxu0 %vm6049_vm7, %v5915_v38 }
 0x24b   : > { %v4445_v18 = vpop.f32.mrb[68].mxu0 }
 0x24c   : > { %v4363_v19 = vpop.f32.mrb[40].mxu1  ;;  %v4446_v12 = vpop.f32.mrb[69].mxu0 }
 0x24d   : > { %v4447_v9 = vadd.f32 %v4446_v12, %v4445_v18  ;;  %v4364_v3 = vpop.f32.mrb[41].mxu1  ;;  %v4448_v13 = vpop.f32.mrb[70].mxu0 }
 0x24e   : > { %v6333_v6 = vadd.f32 %v4364_v3, %v4363_v19  ;;  %v4366_v61 = vpop.f32.mrb[42].mxu1  ;;  %v4449_v41 = vpop.f32.mrb[71].mxu0 }
 0x24f   : > { %v6336_v52 = vadd.f32 %v4447_v9, %v6209_v44  ;;  %v4450_v31 = vadd.f32 %v4449_v41, %v4448_v13  ;;  %v4367_v17 = vpop.f32.mrb[43].mxu1  ;;  %v5344_v44 = vld [vmem:[%s7197_s7 + $0x18] sm:$0xff]  }
 0x250   : > { %v6338_v4 = vadd.f32 %v4367_v17, %v4366_v61  ;;  %4910 = vmatmul.mubr.msk.bf16.gmra.mrb[48].mxu0 %vm6049_vm7, %v5938_v22  ;;  %5036 = vmatprep.subr.bf16.mxu1 %v5344_v44 }
 0x251   : > { %v6344_v38 = vadd.f32 %v4450_v31, %v6211_v39  ;;  %4913 = vmatprep.mubr.msk.bf16.mxu0 %vm6049_vm7, %v5942_v26  ;;  %4931 = vmatprep.subr.bf16.mxu0 %v5344_v44 }
 0x252   : > { %5044 = vmatpush3.bf16.msra.mxu1 %v5344_v44  ;;  %4932 = vmatpush3.bf16.msra.mxu0 %v5344_v44 }
 0x253   : > { %v4451_v42 = vpop.f32.mrb[72].mxu0 }
 0x254   : > { %v4369_v35 = vpop.f32.mrb[44].mxu1  ;;  %v4452_v46 = vpop.f32.mrb[73].mxu0 }
 0x255   : > { %v4453_v7 = vadd.f32 %v4452_v46, %v4451_v42  ;;  %v4370_v22 = vpop.f32.mrb[45].mxu1  ;;  %v4454_v15 = vpop.f32.mrb[74].mxu0 }
 0x256   : > { %v6352_v39 = vadd.f32 %v4370_v22, %v4369_v35  ;;  %v4372_v56 = vpop.f32.mrb[46].mxu1  ;;  %v4455_v11 = vpop.f32.mrb[75].mxu0 }
 0x257   : > { %v6355_v26 = vadd.f32 %v4453_v7, %v6225_v47  ;;  %v4456_v21 = vadd.f32 %v4455_v11, %v4454_v15  ;;  %v4373_v2 = vpop.f32.mrb[47].mxu1 }
 0x258   : > { %v6357_v27 = vadd.f32 %v4373_v2, %v4372_v56  ;;  %4914 = vmatmul.mubr.msk.bf16.gmra.mrb[52].mxu0 %vm6049_vm7, %v5962_v14 }
 0x259   : > { %v6363_v28 = vadd.f32 %v4456_v21, %v6227_v49  ;;  %4917 = vmatprep.mubr.msk.bf16.mxu0 %vm6049_vm7, %v5966_v25 }
 0x25b   : > { %v4457_v62 = vpop.f32.mrb[76].mxu0 }
 0x25c   : > { %v4375_v63 = vpop.f32.mrb[48].mxu1  ;;  %v4458_v33 = vpop.f32.mrb[77].mxu0 }
 0x25d   : > { %v4459_v47 = vadd.f32 %v4458_v33, %v4457_v62  ;;  %v4376_v34 = vpop.f32.mrb[49].mxu1  ;;  %v4460_v45 = vpop.f32.mrb[78].mxu0 }
 0x25e   : > { %v6368_v30 = vadd.f32 %v4376_v34, %v4375_v63  ;;  %v4378_v29 = vpop.f32.mrb[50].mxu1  ;;  %v4461_v50 = vpop.f32.mrb[79].mxu0 }
 0x25f   : > { %v6371_v24 = vadd.f32 %v4459_v47, %v6241_v54  ;;  %v4462_v14 = vadd.f32 %v4461_v50, %v4460_v45  ;;  %v4379_v49 = vpop.f32.mrb[51].mxu1  ;;  %v5345_v54 = vld [vmem:[%s7197_s7 + $0x20] sm:$0xff]  }
 0x260   : > { %v6373_v48 = vadd.f32 %v4379_v49, %v4378_v29  ;;  %4918 = vmatmul.mubr.msk.bf16.gmra.mrb[56].mxu0 %vm6049_vm7, %v5985_v20  ;;  %5037 = vmatprep.subr.bf16.mxu1 %v5345_v54 }
 0x261   : > { %v6379_v25 = vadd.f32 %v4462_v14, %v6243_v36  ;;  %4921 = vmatprep.mubr.msk.bf16.mxu0 %vm6049_vm7, %v5979_v60  ;;  %4933 = vmatprep.subr.bf16.mxu0 %v5345_v54 }
 0x262   : > { %5045 = vmatpush3.bf16.msra.mxu1 %v5345_v54  ;;  %4934 = vmatpush3.bf16.msra.mxu0 %v5345_v54 }
 0x263   : > { %v4463_v0 = vpop.f32.mrb[80].mxu0 }
 0x264   : > { %v4381_v18 = vpop.f32.mrb[52].mxu1  ;;  %v4464_v19 = vpop.f32.mrb[81].mxu0 }
 0x265   : > { %v4465_v12 = vadd.f32 %v4464_v19, %v4463_v0  ;;  %v4382_v20 = vpop.f32.mrb[53].mxu1  ;;  %v4466_v9 = vpop.f32.mrb[82].mxu0 }
 0x266   : > { %v6387_v36 = vadd.f32 %v4382_v20, %v4381_v18  ;;  %v4384_v3 = vpop.f32.mrb[54].mxu1  ;;  %v4467_v13 = vpop.f32.mrb[83].mxu0  ;;  %v5347_v18 = vld [vmem:[%s7197_s7 + $0x30] sm:$0xff]  }
 0x267   : > { %v6390_v60 = vadd.f32 %v4465_v12, %v6257_v58  ;;  %v4468_v57 = vadd.f32 %v4467_v13, %v4466_v9  ;;  %v4385_v61 = vpop.f32.mrb[55].mxu1 }
 0x268   : > { %v6392_v41 = vadd.f32 %v4385_v61, %v4384_v3  ;;  %4922 = vmatmul.mubr.bf16.gmra.mrb[60].mxu0 %v5508_v40 }
 0x269   : > { %v6396_v31 = vadd.f32 %v4468_v57, %v6259_v5  ;;  %v5346_v5 = vld [vmem:[%s7197_s7 + $0x28] sm:$0xff]  }
 0x26a   : > { %5038 = vmatprep.subr.bf16.mxu1 %v5346_v5  ;;  %4935 = vmatprep.subr.bf16.mxu0 %v5346_v5 }
 0x26b   : > { %v4469_v17 = vpop.f32.mrb[84].mxu0  ;;  %5046 = vmatpush3.bf16.msra.mxu1 %v5346_v5  ;;  %4936 = vmatpush3.bf16.msra.mxu0 %v5346_v5 }
 0x26c   : > { %v4387_v44 = vpop.f32.mrb[56].mxu1  ;;  %v4470_v42 = vpop.f32.mrb[85].mxu0  ;;  %4937 = vmatprep.subr.bf16.mxu0 %v5347_v18  ;;  %5039 = vmatprep.subr.bf16.mxu1 %v5347_v18 }
 0x26d   : > { %v4471_v35 = vadd.f32 %v4470_v42, %v4469_v17  ;;  %v4388_v46 = vpop.f32.mrb[57].mxu1  ;;  %v4472_v7 = vpop.f32.mrb[86].mxu0 }
 0x26e   : > { %v6398_v22 = vadd.f32 %v4388_v46, %v4387_v44  ;;  %v4390_v15 = vpop.f32.mrb[58].mxu1  ;;  %v4473_v58 = vpop.f32.mrb[87].mxu0 }
 0x26f   : > { %v6401_v56 = vadd.f32 %v4471_v35, %v6273_v43  ;;  %v4474_v11 = vadd.f32 %v4473_v58, %v4472_v7  ;;  %v4391_v21 = vpop.f32.mrb[59].mxu1  ;;  %4938 = vmatpush3.bf16.msra.mxu0 %v5347_v18  ;;  %5047 = vmatpush3.bf16.msra.mxu1 %v5347_v18 }
 0x270   : > { %v6403_v2 = vadd.f32 %v4391_v21, %v4390_v15 }
 0x271   : > { %v6406_v40 = vadd.f32 %v4474_v11, %v6275_v1 }
 0x273   : > { %v4475_v62 = vpop.f32.mrb[88].mxu0 }
 0x274   : > { %v4393_v63 = vpop.f32.mrb[60].mxu1  ;;  %v4476_v33 = vpop.f32.mrb[89].mxu0 }
 0x275   : > { %v4477_v43 = vadd.f32 %v4476_v33, %v4475_v62  ;;  %v4394_v47 = vpop.f32.mrb[61].mxu1  ;;  %v4478_v34 = vpop.f32.mrb[90].mxu0 }
 0x276   : > { %v6411_v45 = vadd.f32 %v4394_v47, %v4393_v63  ;;  %v4396_v29 = vpop.f32.mrb[62].mxu1  ;;  %v4479_v50 = vpop.f32.mrb[91].mxu0 }
 0x277   : > { %v6414_v1 = vadd.f32 %v4477_v43, %v6281_v59  ;;  %v4480_v14 = vadd.f32 %v4479_v50, %v4478_v34  ;;  %v4397_v49 = vpop.f32.mrb[63].mxu1 }
 0x278   : > { %v6416_v54 = vadd.f32 %v4397_v49, %v4396_v29 }
 0x279   : > { %v6419_v0 = vadd.f32 %v4480_v14, %v6283_v8 }
 0x27b   : > { %v4481_v19 = vpop.f32.mrb[92].mxu0 }
 0x27c   : > { %v4482_v12 = vpop.f32.mrb[93].mxu0  ;;  %v4575_v20 = vpop.f32.mrb[64].mxu1 }
 0x27d   : > { %v4483_v59 = vadd.f32 %v4482_v12, %v4481_v19  ;;  %v4484_v9 = vpop.f32.mrb[94].mxu0  ;;  %v4576_v3 = vpop.f32.mrb[65].mxu1 }
 0x27e   : > { %v4577_v13 = vadd.f32 %v4576_v3, %v4575_v20  ;;  %v4485_v57 = vpop.f32.mrb[95].mxu0  ;;  %v4578_v61 = vpop.f32.mrb[66].mxu1 }
 0x27f   : > { %v6425_v8 = vadd.f32 %v4483_v59, %v6294_v53  ;;  %v4486_v17 = vadd.f32 %v4485_v57, %v4484_v9  ;;  %v4579_v44 = vpop.f32.mrb[67].mxu1 }
 0x280   : > { %v4580_v42 = vadd.f32 %v4579_v44, %v4578_v61  ;;  %v6428_v35 = vadd.f32 %v6320_v51, %v4577_v13 }
 0x281   : > { %v6431_v46 = vadd.f32 %v4486_v17, %v6296_v16 }
 0x282   : > { %v6434_v7 = vadd.f32 %v6328_v10, %v4580_v42 }
 0x283   : > { %v4487_v15 = vpop.f32.mrb[96].mxu0 }
 0x284   : > { %v4488_v58 = vpop.f32.mrb[97].mxu0  ;;  %v4581_v11 = vpop.f32.mrb[68].mxu1 }
 0x285   : > { %v4489_v21 = vadd.f32 %v4488_v58, %v4487_v15  ;;  %v4490_v5 = vpop.f32.mrb[98].mxu0  ;;  %v4582_v62 = vpop.f32.mrb[69].mxu1 }
 0x286   : > { %v4583_v53 = vadd.f32 %v4582_v62, %v4581_v11  ;;  %v4491_v63 = vpop.f32.mrb[99].mxu0  ;;  %v4584_v33 = vpop.f32.mrb[70].mxu1 }
 0x287   : > { %v6437_v43 = vadd.f32 %v4489_v21, %v6304_v23  ;;  %v4492_v51 = vadd.f32 %v4491_v63, %v4490_v5  ;;  %v4585_v47 = vpop.f32.mrb[71].mxu1  ;;  %v5348_v23 = vld [vmem:[%s7197_s7 + $0x38] sm:$0xff]  }
 0x288   : > { %v4586_v34 = vadd.f32 %v4585_v47, %v4584_v33  ;;  %v6440_v16 = vadd.f32 %v6336_v52, %v4583_v53  ;;  %4939 = vmatprep.subr.bf16.mxu0 %v5348_v23  ;;  %5040 = vmatprep.subr.bf16.mxu1 %v5348_v23 }
 0x289   : > { %v6443_v10 = vadd.f32 %v4492_v51, %v6306_v32  ;;  %4940 = vmatpush3.bf16.msra.mxu0 %v5348_v23  ;;  %5048 = vmatpush3.bf16.msra.mxu1 %v5348_v23 }
 0x28a   : > { %v6446_v29 = vadd.f32 %v6344_v38, %v4586_v34 }
 0x28b   : > { %v4493_v50 = vpop.f32.mrb[100].mxu0 }
 0x28c   : > { %v4494_v14 = vpop.f32.mrb[101].mxu0  ;;  %v4587_v49 = vpop.f32.mrb[72].mxu1 }
 0x28d   : > { %v4495_v18 = vadd.f32 %v4494_v14, %v4493_v50  ;;  %v4496_v19 = vpop.f32.mrb[102].mxu0  ;;  %v4588_v12 = vpop.f32.mrb[73].mxu1 }
 0x28e   : > { %v4589_v20 = vadd.f32 %v4588_v12, %v4587_v49  ;;  %v4497_v59 = vpop.f32.mrb[103].mxu0  ;;  %v4590_v52 = vpop.f32.mrb[74].mxu1 }
 0x28f   : > { %v6452_v32 = vadd.f32 %v4495_v18, %v6317_v37  ;;  %v4498_v38 = vadd.f32 %v4497_v59, %v4496_v19  ;;  %v4591_v9 = vpop.f32.mrb[75].mxu1 }
 0x290   : > { %v4592_v3 = vadd.f32 %v4591_v9, %v4590_v52  ;;  %v6455_v13 = vadd.f32 %v6355_v26, %v4589_v20 }
 0x291   : > { %v6458_v57 = vadd.f32 %v4498_v38, %v6322_v55 }
 0x292   : > { %v6461_v61 = vadd.f32 %v6363_v28, %v4592_v3 }
 0x293   : > { %v4499_v17 = vpop.f32.mrb[104].mxu0 }
 0x294   : > { %v4500_v44 = vpop.f32.mrb[105].mxu0  ;;  %v4593_v42 = vpop.f32.mrb[76].mxu1 }
 0x295   : > { %v4501_v15 = vadd.f32 %v4500_v44, %v4499_v17  ;;  %v4502_v37 = vpop.f32.mrb[106].mxu0  ;;  %v4594_v58 = vpop.f32.mrb[77].mxu1 }
 0x296   : > { %v4595_v11 = vadd.f32 %v4594_v58, %v4593_v42  ;;  %v4503_v21 = vpop.f32.mrb[107].mxu0  ;;  %v4596_v5 = vpop.f32.mrb[78].mxu1 }
 0x297   : > { %v6464_v62 = vadd.f32 %v4501_v15, %v6333_v6  ;;  %v4504_v26 = vadd.f32 %v4503_v21, %v4502_v37  ;;  %v4597_v53 = vpop.f32.mrb[79].mxu1 }
 0x298   : > { %v4598_v63 = vadd.f32 %v4597_v53, %v4596_v5  ;;  %v6467_v55 = vadd.f32 %v6371_v24, %v4595_v11 }
 0x299   : > { %v6470_v28 = vadd.f32 %v4504_v26, %v6338_v4 }
 0x29a   : > { %v6473_v33 = vadd.f32 %v6379_v25, %v4598_v63 }
 0x29b   : > { %v4505_v51 = vpop.f32.mrb[108].mxu0 }
 0x29c   : > { %v4506_v47 = vpop.f32.mrb[109].mxu0  ;;  %v4599_v34 = vpop.f32.mrb[80].mxu1 }
 0x29d   : > { %v4507_v50 = vadd.f32 %v4506_v47, %v4505_v51  ;;  %v4508_v14 = vpop.f32.mrb[110].mxu0  ;;  %v4600_v49 = vpop.f32.mrb[81].mxu1 }
 0x29e   : > { %v4601_v6 = vadd.f32 %v4600_v49, %v4599_v34  ;;  %v4509_v23 = vpop.f32.mrb[111].mxu0  ;;  %v4602_v18 = vpop.f32.mrb[82].mxu1 }
 0x29f   : > { %v6476_v19 = vadd.f32 %v4507_v50, %v6352_v39  ;;  %v4510_v24 = vadd.f32 %v4509_v23, %v4508_v14  ;;  %v4603_v12 = vpop.f32.mrb[83].mxu1 }
 0x2a0   : > { %v4604_v20 = vadd.f32 %v4603_v12, %v4602_v18  ;;  %v6479_v4 = vadd.f32 %v6390_v60, %v4601_v6 }
 0x2a1   : > { %v6482_v25 = vadd.f32 %v4510_v24, %v6357_v27 }
 0x2a2   : > { %v6485_v59 = vadd.f32 %v6396_v31, %v4604_v20 }
 0x2a3   : > { %v4511_v52 = vpop.f32.mrb[112].mxu0 }
 0x2a4   : > { %v4512_v38 = vpop.f32.mrb[113].mxu0  ;;  %v4605_v9 = vpop.f32.mrb[84].mxu1 }
 0x2a5   : > { %v4513_v3 = vadd.f32 %v4512_v38, %v4511_v52  ;;  %v4514_v17 = vpop.f32.mrb[114].mxu0  ;;  %v4606_v44 = vpop.f32.mrb[85].mxu1 }
 0x2a6   : > { %v4607_v39 = vadd.f32 %v4606_v44, %v4605_v9  ;;  %v4515_v42 = vpop.f32.mrb[115].mxu0  ;;  %v4608_v15 = vpop.f32.mrb[86].mxu1 }
 0x2a7   : > { %v6488_v37 = vadd.f32 %v4513_v3, %v6368_v30  ;;  %v4516_v60 = vadd.f32 %v4515_v42, %v4514_v17  ;;  %v4609_v58 = vpop.f32.mrb[87].mxu1 }
 0x2a8   : > { %v4610_v11 = vadd.f32 %v4609_v58, %v4608_v15  ;;  %v6491_v27 = vadd.f32 %v6401_v56, %v4607_v39 }
 0x2a9   : > { %v6494_v31 = vadd.f32 %v4516_v60, %v6373_v48 }
 0x2aa   : > { %v6497_v21 = vadd.f32 %v6406_v40, %v4610_v11 }
 0x2ab   : > { %v4517_v5 = vpop.f32.mrb[116].mxu0 }
 0x2ac   : > { %v4518_v26 = vpop.f32.mrb[117].mxu0  ;;  %v4611_v53 = vpop.f32.mrb[88].mxu1 }
 0x2ad   : > { %v4519_v63 = vadd.f32 %v4518_v26, %v4517_v5  ;;  %v4520_v51 = vpop.f32.mrb[118].mxu0  ;;  %v4612_v47 = vpop.f32.mrb[89].mxu1 }
 0x2ae   : > { %v4613_v30 = vadd.f32 %v4612_v47, %v4611_v53  ;;  %v4521_v34 = vpop.f32.mrb[119].mxu0  ;;  %v4614_v50 = vpop.f32.mrb[90].mxu1 }
 0x2af   : > { %v6500_v14 = vadd.f32 %v4519_v63, %v6387_v36  ;;  %v4522_v56 = vadd.f32 %v4521_v34, %v4520_v51  ;;  %v4615_v49 = vpop.f32.mrb[91].mxu1 }
 0x2b0   : > { %v4616_v6 = vadd.f32 %v4615_v49, %v4614_v50  ;;  %v6503_v48 = vadd.f32 %v6414_v1, %v4613_v30 }
 0x2b1   : > { %v6506_v40 = vadd.f32 %v4522_v56, %v6392_v41 }
 0x2b2   : > { %v6509_v23 = vadd.f32 %v6419_v0, %v4616_v6 }
 0x2b3   : > { %v4523_v18 = vpop.f32.mrb[120].mxu0 }
 0x2b4   : > { %v4524_v24 = vpop.f32.mrb[121].mxu0  ;;  %v4617_v12 = vpop.f32.mrb[92].mxu1 }
 0x2b5   : > { %v4525_v20 = vadd.f32 %v4524_v24, %v4523_v18  ;;  %v4526_v52 = vpop.f32.mrb[122].mxu0  ;;  %v4618_v38 = vpop.f32.mrb[93].mxu1 }
 0x2b6   : > { %v4619_v36 = vadd.f32 %v4618_v38, %v4617_v12  ;;  %v4527_v9 = vpop.f32.mrb[123].mxu0  ;;  %v4620_v3 = vpop.f32.mrb[94].mxu1 }
 0x2b7   : > { %v6512_v17 = vadd.f32 %v4525_v20, %v6398_v22  ;;  %v4528_v1 = vadd.f32 %v4527_v9, %v4526_v52  ;;  %v4621_v44 = vpop.f32.mrb[95].mxu1 }
 0x2b8   : > { %v4622_v39 = vadd.f32 %v4621_v44, %v4620_v3  ;;  %v6515_v41 = vadd.f32 %v6425_v8, %v4619_v36 }
 0x2b9   : > { %v6518_v0 = vadd.f32 %v4528_v1, %v6403_v2 }
 0x2ba   : > { %v6521_v42 = vadd.f32 %v6431_v46, %v4622_v39 }
 0x2bb   : > { %v4529_v15 = vpop.f32.mrb[124].mxu0 }
 0x2bc   : > { %v4530_v60 = vpop.f32.mrb[125].mxu0  ;;  %v4623_v58 = vpop.f32.mrb[96].mxu1 }
 0x2bd   : > { %v4531_v11 = vadd.f32 %v4530_v60, %v4529_v15  ;;  %v4532_v5 = vpop.f32.mrb[126].mxu0  ;;  %v4624_v26 = vpop.f32.mrb[97].mxu1 }
 0x2be   : > { %v4625_v22 = vadd.f32 %v4624_v26, %v4623_v58  ;;  %v4533_v53 = vpop.f32.mrb[127].mxu0  ;;  %v4626_v63 = vpop.f32.mrb[98].mxu1 }
 0x2bf   : > { %v5133_v51 = vadd.f32 %v4531_v11, %v6411_v45  ;;  %v4534_v47 = vadd.f32 %v4533_v53, %v4532_v5  ;;  %v4627_v8 = vpop.f32.mrb[99].mxu1 }
 0x2c0   : > { %v4628_v30 = vadd.f32 %v4627_v8, %v4626_v63  ;;  %v6525_v2 = vadd.f32 %v6437_v43, %v4625_v22 }
 0x2c1   : > { %v5139_v46 = vadd.f32 %v4534_v47, %v6416_v54 }
 0x2c2   : > { %v6529_v34 = vadd.f32 %v6443_v10, %v4628_v30 }
 0x2c5   : > { %v4629_v50 = vpop.f32.mrb[100].mxu1 }
 0x2c6   : > { %v4630_v56 = vpop.f32.mrb[101].mxu1 }
 0x2c7   : > { %v4631_v49 = vadd.f32 %v4630_v56, %v4629_v50  ;;  %v4632_v6 = vpop.f32.mrb[102].mxu1 }
 0x2c8   : > { %v4633_v18 = vpop.f32.mrb[103].mxu1 }
 0x2c9   : > { %v4634_v24 = vadd.f32 %v4633_v18, %v4632_v6  ;;  %v6532_v12 = vadd.f32 %v6452_v32, %v4631_v49 }
 0x2cb   : > { %v6535_v45 = vadd.f32 %v6458_v57, %v4634_v24 }
 0x2cd   : > { %v4635_v20 = vpop.f32.mrb[104].mxu1 }
 0x2ce   : > { %v4636_v43 = vpop.f32.mrb[105].mxu1 }
 0x2cf   : > { %v4637_v52 = vadd.f32 %v4636_v43, %v4635_v20  ;;  %v4638_v38 = vpop.f32.mrb[106].mxu1 }
 0x2d0   : > { %v4639_v54 = vpop.f32.mrb[107].mxu1 }
 0x2d1   : > { %v4640_v36 = vadd.f32 %v4639_v54, %v4638_v38  ;;  %v6538_v10 = vadd.f32 %v6464_v62, %v4637_v52 }
 0x2d3   : > { %v6541_v9 = vadd.f32 %v6470_v28, %v4640_v36 }
 0x2d5   : > { %v4641_v3 = vpop.f32.mrb[108].mxu1 }
 0x2d6   : > { %v4642_v1 = vpop.f32.mrb[109].mxu1 }
 0x2d7   : > { %v4643_v44 = vadd.f32 %v4642_v1, %v4641_v3  ;;  %v4644_v32 = vpop.f32.mrb[110].mxu1 }
 0x2d8   : > { %v4645_v39 = vpop.f32.mrb[111].mxu1 }
 0x2d9   : > { %v4646_v15 = vadd.f32 %v4645_v39, %v4644_v32  ;;  %v6544_v57 = vadd.f32 %v6476_v19, %v4643_v44  ;;  %v6574_v32 = vld [vmem:[%s7196_s6] ss:$0 sm:$0xff] }
 0x2db   : > { %v6547_v60 = vadd.f32 %v6482_v25, %v4646_v15 }
 0x2dd   : > { %v4647_v58 = vpop.f32.mrb[112].mxu1 }
 0x2de   : > { %v4648_v11 = vpop.f32.mrb[113].mxu1 }
 0x2df   : > { %v4649_v5 = vadd.f32 %v4648_v11, %v4647_v58  ;;  %v4650_v62 = vpop.f32.mrb[114].mxu1 }
 0x2e0   : > { %v4651_v26 = vpop.f32.mrb[115].mxu1 }
 0x2e1   : > { %v4652_v22 = vadd.f32 %v4651_v26, %v4650_v62  ;;  %v6550_v28 = vadd.f32 %v6488_v37, %v4649_v5 }
 0x2e3   : > { %v6553_v53 = vadd.f32 %v6494_v31, %v4652_v22 }
 0x2e5   : > { %v4653_v63 = vpop.f32.mrb[116].mxu1 }
 0x2e6   : > { %v4654_v47 = vpop.f32.mrb[117].mxu1 }
 0x2e7   : > { %v4655_v8 = vadd.f32 %v4654_v47, %v4653_v63  ;;  %v4656_v19 = vpop.f32.mrb[118].mxu1 }
 0x2e8   : > { %v4657_v30 = vpop.f32.mrb[119].mxu1 }
 0x2e9   : > { %v4658_v50 = vadd.f32 %v4657_v30, %v4656_v19  ;;  %v6556_v25 = vadd.f32 %v6500_v14, %v4655_v8 }
 0x2eb   : > { %v6559_v56 = vadd.f32 %v6506_v40, %v4658_v50 }
 0x2ed   : > { %v4659_v49 = vpop.f32.mrb[120].mxu1 }
 0x2ee   : > { %v4660_v6 = vpop.f32.mrb[121].mxu1 }
 0x2ef   : > { %v4661_v18 = vadd.f32 %v4660_v6, %v4659_v49  ;;  %v4662_v37 = vpop.f32.mrb[122].mxu1 }
 0x2f0   : > { %v4663_v24 = vpop.f32.mrb[123].mxu1 }
 0x2f1   : > { %v4664_v20 = vadd.f32 %v4663_v24, %v4662_v37  ;;  %v6562_v31 = vadd.f32 %v6512_v17, %v4661_v18 }
 0x2f3   : > { %v6565_v43 = vadd.f32 %v6518_v0, %v4664_v20 }
 0x2f5   : > { %v4665_v52 = vpop.f32.mrb[124].mxu1 }
 0x2f6   : > { %v4666_v38 = vpop.f32.mrb[125].mxu1 }
 0x2f7   : > { %v4667_v54 = vadd.f32 %v4666_v38, %v4665_v52  ;;  %v4668_v14 = vpop.f32.mrb[126].mxu1 }
 0x2f8   : > { %v4669_v36 = vpop.f32.mrb[127].mxu1 }
 0x2f9   : > { %v4670_v3 = vadd.f32 %v4669_v36, %v4668_v14  ;;  %v6567_v40 = vadd.f32 %v5133_v51, %v4667_v54 }
 0x2fb   : > { %v6569_v1 = vadd.f32 %v5139_v46, %v4670_v3 }
 0x303   : > { %v4895_v44 = vpop.f32.mrb[32].mxu0 }
 0x304   : > { %v5051_v17 = vadd.f32 %v6440_v16, %v4895_v44  ;;  %v2590_v0 = vpop.f32.mrb[33].mxu0 }
 0x305   : > { %v5054_v39 = vadd.f32 %v6428_v35, %v2590_v0  ;;  %v4896_v15 = vpop.f32.mrb[34].mxu0 }
 0x306   : > { %v2758_v58 = vadd.f32 %v5051_v17, %v6574_v32  ;;  %v5057_v11 = vadd.f32 %v6446_v29, %v4896_v15  ;;  %v2593_v51 = vpop.f32.mrb[35].mxu0 }
 0x307   : > { %v2756_v46 = vadd.f32 %v5054_v39, %v6574_v32  ;;  %v5060_v5 = vadd.f32 %v6434_v7, %v2593_v51 }
 0x308   : > { %v2759_v62 = vadd.f32 %v5057_v11, %v6574_v32  ;;  %v2790_v22 = vmax.f32 %v2758_v58, 0.0 }
 0x309   : > { %v2757_v26 = vadd.f32 %v5060_v5, %v6574_v32  ;;  %v2788_v16 = vmax.f32 %v2756_v46, 0.0 }
 0x30a   : > { %v2791_v63 = vmax.f32 %v2759_v62, 0.0 }
 0x30b   : > { %v2789_v47 = vmax.f32 %v2757_v26, 0.0  ;;  %v4899_v8 = vpop.f32.mrb[36].mxu0 }
 0x30c   : > { %v2821_v35 = vpack.c.bf16 %v2791_v63, %v2790_v22  ;;  %v5063_v19 = vadd.f32 %v6467_v55, %v4899_v8  ;;  %v2606_v30 = vpop.f32.mrb[37].mxu0 }
 0x30d   : > { %v5066_v29 = vadd.f32 %v6455_v13, %v2606_v30  ;;  %v4900_v50 = vpop.f32.mrb[38].mxu0  ;;  %v2820_v49 = vpack.c.bf16 %v2789_v47, %v2788_v16 }
 0x30e   : > { %v2762_v6 = vadd.f32 %v5063_v19, %v6574_v32  ;;  %v5069_v7 = vadd.f32 %v6473_v33, %v4900_v50  ;;  %v2609_v18 = vpop.f32.mrb[39].mxu0 }
 0x30f   : > { %v2760_v37 = vadd.f32 %v5066_v29, %v6574_v32  ;;  %v5072_v24 = vadd.f32 %v6461_v61, %v2609_v18  ;;  %4941 = vmatprep.mubr.bf16.mxu0 %v2820_v49 }
 0x310   : > { %v2763_v20 = vadd.f32 %v5069_v7, %v6574_v32  ;;  %4942 = vmatmul.mubr.bf16.vlgmr.msra.gmra.mrb[128].mxu0 %v2821_v35  ;;  %v2794_v52 = vmax.f32 %v2762_v6, 0.0 }
 0x311   : > { %v2761_v55 = vadd.f32 %v5072_v24, %v6574_v32  ;;  %v2792_v13 = vmax.f32 %v2760_v37, 0.0 }
 0x312   : > { %v2795_v38 = vmax.f32 %v2763_v20, 0.0 }
 0x313   : > { %v2793_v54 = vmax.f32 %v2761_v55, 0.0  ;;  %v4903_v14 = vpop.f32.mrb[40].mxu0 }
 0x314   : > { %v5075_v36 = vadd.f32 %v6491_v27, %v4903_v14  ;;  %v2622_v3 = vpop.f32.mrb[41].mxu0  ;;  %v2823_v33 = vpack.c.bf16 %v2795_v38, %v2794_v52 }
 0x315   : > { %v5078_v44 = vadd.f32 %v6479_v4, %v2622_v3  ;;  %v4904_v17 = vpop.f32.mrb[42].mxu0  ;;  %v2822_v0 = vpack.c.bf16 %v2793_v54, %v2792_v13 }
 0x316   : > { %v2766_v61 = vadd.f32 %v5075_v36, %v6574_v32  ;;  %v5081_v39 = vadd.f32 %v6497_v21, %v4904_v17  ;;  %v2625_v15 = vpop.f32.mrb[43].mxu0 }
 0x317   : > { %v2764_v58 = vadd.f32 %v5078_v44, %v6574_v32  ;;  %v5084_v11 = vadd.f32 %v6485_v59, %v2625_v15  ;;  %4945 = vmatprep.mubr.bf16.mxu0 %v2822_v0 }
 0x318   : > { %v2767_v51 = vadd.f32 %v5081_v39, %v6574_v32  ;;  %4946 = vmatmul.mubr.bf16.gmra.mrb[132].mxu0 %v2823_v33  ;;  %v2798_v46 = vmax.f32 %v2766_v61, 0.0 }
 0x319   : > { %v2765_v27 = vadd.f32 %v5084_v11, %v6574_v32  ;;  %v2796_v4 = vmax.f32 %v2764_v58, 0.0 }
 0x31a   : > { %v2799_v5 = vmax.f32 %v2767_v51, 0.0 }
 0x31b   : > { %v2797_v62 = vmax.f32 %v2765_v27, 0.0  ;;  %v4907_v26 = vpop.f32.mrb[44].mxu0 }
 0x31c   : > { %v2825_v22 = vpack.c.bf16 %v2799_v5, %v2798_v46  ;;  %v5087_v63 = vadd.f32 %v6515_v41, %v4907_v26  ;;  %v2638_v21 = vpop.f32.mrb[45].mxu0 }
 0x31d   : > { %v5090_v16 = vadd.f32 %v6503_v48, %v2638_v21  ;;  %v4908_v47 = vpop.f32.mrb[46].mxu0  ;;  %v2824_v8 = vpack.c.bf16 %v2797_v62, %v2796_v4 }
 0x31e   : > { %v2770_v59 = vadd.f32 %v5087_v63, %v6574_v32  ;;  %v5093_v35 = vadd.f32 %v6521_v42, %v4908_v47  ;;  %v2641_v19 = vpop.f32.mrb[47].mxu0 }
 0x31f   : > { %v2768_v30 = vadd.f32 %v5090_v16, %v6574_v32  ;;  %v5096_v29 = vadd.f32 %v6509_v23, %v2641_v19  ;;  %4949 = vmatprep.mubr.bf16.mxu1 %v2824_v8 }
 0x320   : > { %v2771_v50 = vadd.f32 %v5093_v35, %v6574_v32  ;;  %4950 = vmatmul.mubr.bf16.vlgmr.msra.gmra.mrb[128].mxu1 %v2825_v22  ;;  %v2802_v49 = vmax.f32 %v2770_v59, 0.0 }
 0x321   : > { %v2769_v41 = vadd.f32 %v5096_v29, %v6574_v32  ;;  %v2800_v48 = vmax.f32 %v2768_v30, 0.0 }
 0x322   : > { %v2803_v6 = vmax.f32 %v2771_v50, 0.0 }
 0x323   : > { %v2801_v7 = vmax.f32 %v2769_v41, 0.0  ;;  %v4911_v18 = vpop.f32.mrb[48].mxu0 }
 0x324   : > { %v5099_v37 = vadd.f32 %v6532_v12, %v4911_v18  ;;  %v2654_v24 = vpop.f32.mrb[49].mxu0  ;;  %v2827_v42 = vpack.c.bf16 %v2803_v6, %v2802_v49 }
 0x325   : > { %v5102_v20 = vadd.f32 %v6525_v2, %v2654_v24  ;;  %v4912_v55 = vpop.f32.mrb[50].mxu0  ;;  %v2826_v52 = vpack.c.bf16 %v2801_v7, %v2800_v48 }
 0x326   : > { %v2774_v23 = vadd.f32 %v5099_v37, %v6574_v32  ;;  %v5105_v38 = vadd.f32 %v6535_v45, %v4912_v55  ;;  %v2657_v13 = vpop.f32.mrb[51].mxu0 }
 0x327   : > { %v2772_v54 = vadd.f32 %v5102_v20, %v6574_v32  ;;  %v5108_v14 = vadd.f32 %v6529_v34, %v2657_v13  ;;  %4953 = vmatprep.mubr.bf16.mxu1 %v2826_v52 }
 0x328   : > { %v2775_v36 = vadd.f32 %v5105_v38, %v6574_v32  ;;  %4954 = vmatmul.mubr.bf16.gmra.mrb[132].mxu1 %v2827_v42  ;;  %v2806_v3 = vmax.f32 %v2774_v23, 0.0 }
 0x329   : > { %v2773_v12 = vadd.f32 %v5108_v14, %v6574_v32  ;;  %v2804_v2 = vmax.f32 %v2772_v54, 0.0 }
 0x32a   : > { %v2807_v33 = vmax.f32 %v2775_v36, 0.0 }
 0x32b   : > { %v2805_v44 = vmax.f32 %v2773_v12, 0.0  ;;  %v4915_v17 = vpop.f32.mrb[52].mxu0  ;;  %v5510_v12 = vmov 0.0  }
 0x32c   : > { %v5111_v0 = vadd.f32 %v6544_v57, %v4915_v17  ;;  %v2670_v61 = vpop.f32.mrb[53].mxu0  ;;  %v2829_v45 = vpack.c.bf16 %v2807_v33, %v2806_v3  ;;  %4973 = vmatprep.subr.bf16.mxu1 %v5510_v12  ;;  %4993 = vmatprep.subr.bf16.mxu0 %v5510_v12  ;;  %v5352_v3 = vld [vmem:[%s7199_s9 + $0x18] sm:$0xff]   ;;  %v5353_v33 = vld [vmem:[%s7199_s9 + $0x20] sm:$0xff]  }
 0x32d   : > { %v5114_v39 = vadd.f32 %v6538_v10, %v2670_v61  ;;  %v4916_v15 = vpop.f32.mrb[54].mxu0  ;;  %v2828_v58 = vpack.c.bf16 %v2805_v44, %v2804_v2  ;;  %v5354_v2 = vld [vmem:[%s7199_s9 + $0x28] sm:$0xff]   ;;  %v5355_v44 = vld [vmem:[%s7199_s9 + $0x30] sm:$0xff]   ;;  %4995 = vmatprep.mubr.msk.bf16.mxu0 %vm5511_vm8, %v5510_v12  ;;  %v5356_v17 = vld [vmem:[%s7199_s9 + $0x38] sm:$0xff]  }
 0x32e   : > { %v2778_v34 = vadd.f32 %v5111_v0, %v6574_v32  ;;  %v5117_v11 = vadd.f32 %v6547_v60, %v4916_v15  ;;  %v2673_v51 = vpop.f32.mrb[55].mxu0  ;;  %v6667_v0 = vld [vmem:[%s7201_s11] sm:$0xf] }
 0x32f   : > { %v2776_v27 = vadd.f32 %v5114_v39, %v6574_v32  ;;  %v5120_v46 = vadd.f32 %v6541_v9, %v2673_v51  ;;  %4957 = vmatprep.mubr.bf16.mxu1 %v2828_v58  ;;  %v3245_v61 = vld [vmem:[%s7200_s10] sm:$0x1] }
 0x330   : > { %v2779_v5 = vadd.f32 %v5117_v11, %v6574_v32  ;;  %4958 = vmatmul.mubr.bf16.gmra.mrb[136].mxu1 %v2829_v45  ;;  %v2810_v4 = vmax.f32 %v2778_v34, 0.0  ;;  %v3251_v45 = vsel %vm931_vm2, %v3245_v61, 0  ;;  %v6678_v39 = vld [vmem:[%s7198_s8] ss:$0 sm:$0xff] }
 0x331   : > { %v2777_v57 = vadd.f32 %v5120_v46, %v6574_v32  ;;  %v2808_v10 = vmax.f32 %v2776_v27, 0.0  ;;  %4994 = vmatpush3.bf16.msra.mxu0 %v3251_v45 }
 0x332   : > { %v2811_v62 = vmax.f32 %v2779_v5, 0.0 }
 0x333   : > { %v2809_v26 = vmax.f32 %v2777_v57, 0.0  ;;  %v4919_v22 = vpop.f32.mrb[56].mxu0 }
 0x334   : > { %v5123_v63 = vadd.f32 %v6556_v25, %v4919_v22  ;;  %v2686_v21 = vpop.f32.mrb[57].mxu0  ;;  %v2831_v60 = vpack.c.bf16 %v2811_v62, %v2810_v4 }
 0x335   : > { %v5126_v16 = vadd.f32 %v6550_v28, %v2686_v21  ;;  %v4920_v47 = vpop.f32.mrb[58].mxu0  ;;  %v2830_v8 = vpack.c.bf16 %v2809_v26, %v2808_v10 }
 0x336   : > { %v2782_v9 = vadd.f32 %v5123_v63, %v6574_v32  ;;  %v5129_v59 = vadd.f32 %v6559_v56, %v4920_v47  ;;  %v2689_v35 = vpop.f32.mrb[59].mxu0 }
 0x337   : > { %v2780_v19 = vadd.f32 %v5126_v16, %v6574_v32  ;;  %v5132_v30 = vadd.f32 %v6553_v53, %v2689_v35  ;;  %4961 = vmatprep.mubr.bf16.mxu1 %v2830_v8 }
 0x338   : > { %v2783_v29 = vadd.f32 %v5129_v59, %v6574_v32  ;;  %4962 = vmatmul.mubr.bf16.gmra.mrb[140].mxu1 %v2831_v60  ;;  %v2814_v50 = vmax.f32 %v2782_v9, 0.0 }
 0x339   : > { %v2781_v25 = vadd.f32 %v5132_v30, %v6574_v32  ;;  %v2812_v28 = vmax.f32 %v2780_v19, 0.0 }
 0x33a   : > { %v2815_v41 = vmax.f32 %v2783_v29, 0.0 }
 0x33b   : > { %v2813_v49 = vmax.f32 %v2781_v25, 0.0  ;;  %v4923_v6 = vpop.f32.mrb[60].mxu0 }
 0x33c   : > { %v5135_v48 = vadd.f32 %v6567_v40, %v4923_v6  ;;  %v2702_v7 = vpop.f32.mrb[61].mxu0  ;;  %v2833_v56 = vpack.c.bf16 %v2815_v41, %v2814_v50 }
 0x33d   : > { %v5138_v18 = vadd.f32 %v6562_v31, %v2702_v7  ;;  %v4924_v37 = vpop.f32.mrb[62].mxu0  ;;  %v2832_v24 = vpack.c.bf16 %v2813_v49, %v2812_v28 }
 0x33e   : > { %v2786_v53 = vadd.f32 %v5135_v48, %v6574_v32  ;;  %v5141_v42 = vadd.f32 %v6569_v1, %v4924_v37  ;;  %v2705_v20 = vpop.f32.mrb[63].mxu0  ;;  %v5349_v1 = vld [vmem:[%s7199_s9] sm:$0xff]  }
 0x33f   : > { %v2784_v55 = vadd.f32 %v5138_v18, %v6574_v32  ;;  %v5144_v52 = vadd.f32 %v6565_v43, %v2705_v20  ;;  %4965 = vmatprep.mubr.bf16.mxu1 %v2832_v24  ;;  %4974 = vmatpush3.bf16.msra.mxu1 %v5349_v1  ;;  %v5350_v43 = vld [vmem:[%s7199_s9 + $0x8] sm:$0xff]  }
 0x340   : > { %v2787_v23 = vadd.f32 %v5141_v42, %v6574_v32  ;;  %4966 = vmatmul.mubr.bf16.gmra.mrb[144].mxu1 %v2833_v56  ;;  %v2818_v38 = vmax.f32 %v2786_v53, 0.0  ;;  %4975 = vmatprep.subr.bf16.mxu1 %v5510_v12 }
 0x341   : > { %v2785_v40 = vadd.f32 %v5144_v52, %v6574_v32  ;;  %v2816_v31 = vmax.f32 %v2784_v55, 0.0  ;;  %v5351_v32 = vld [vmem:[%s7199_s9 + $0x10] sm:$0xff]  }
 0x342   : > { %v2819_v13 = vmax.f32 %v2787_v23, 0.0 }
 0x343   : > { %v2817_v54 = vmax.f32 %v2785_v40, 0.0  ;;  %4976 = vmatpush3.bf16.msra.mxu1 %v5350_v43 }
 0x344   : > { %v2835_v14 = vpack.c.bf16 %v2819_v13, %v2818_v38  ;;  %4977 = vmatprep.subr.bf16.mxu1 %v5510_v12 }
 0x345   : > { %v2834_v36 = vpack.c.bf16 %v2817_v54, %v2816_v31 }
 0x347   : > { %4969 = vmatprep.mubr.bf16.mxu1 %v2834_v36  ;;  %4978 = vmatpush3.bf16.msra.mxu1 %v5351_v32 }
 0x348   : > { %4970 = vmatmul.mubr.bf16.gmra.mrb[148].mxu1 %v2835_v14  ;;  %4979 = vmatprep.subr.bf16.mxu1 %v5510_v12 }
 0x349   : > { %4989 = vmatprep.mubr.msk.bf16.mxu1 %vm5511_vm8, %v5510_v12 }
 0x34b   : > { %4980 = vmatpush3.bf16.msra.mxu1 %v5352_v3 }
 0x34c   : > { %4981 = vmatprep.subr.bf16.mxu1 %v5510_v12 }
 0x34f   : > { %4982 = vmatpush3.bf16.msra.mxu1 %v5353_v33 }
 0x350   : > { %4983 = vmatprep.subr.bf16.mxu1 %v5510_v12 }
 0x353   : > { %4984 = vmatpush3.bf16.msra.mxu1 %v5354_v2 }
 0x354   : > { %4985 = vmatprep.subr.bf16.mxu1 %v5510_v12 }
 0x357   : > { %4986 = vmatpush3.bf16.msra.mxu1 %v5355_v44 }
 0x358   : > { %4987 = vmatprep.subr.bf16.mxu1 %v5510_v12 }
 0x35b   : > { %4988 = vmatpush3.bf16.msra.mxu1 %v5356_v17 }
 0x35c   : > { %5210 = vmatprep.subr.msk.bf16.mxu1 %vm702_vm0, %v6667_v0 }
 0x3e3   : > { %v4943_v15 = vpop.f32.mrb[128].mxu0 }
 0x3e4   : > { %v2941_v58 = vpop.f32.mrb[129].mxu0  ;;  %v6684_v27 = vadd.f32 %v4943_v15, %v6678_v39 }
 0x3e5   : > { %v6681_v34 = vadd.f32 %v6678_v39, %v2941_v58  ;;  %v4944_v11 = vpop.f32.mrb[130].mxu0 }
 0x3e6   : > { %v2944_v51 = vpop.f32.mrb[131].mxu0  ;;  %v6691_v57 = vadd.f32 %v4944_v11, %v6678_v39  ;;  %v7239_v62 = vmax.f32 %v6684_v27, 0.0 }
 0x3e7   : > { %v6687_v46 = vadd.f32 %v6678_v39, %v2944_v51  ;;  %v7241_v5 = vmax.f32 %v6681_v34, 0.0 }
 0x3e8   : > { %v7238_v63 = vmax.f32 %v6691_v57, 0.0 }
 0x3e9   : > { %v7240_v4 = vmax.f32 %v6687_v46, 0.0 }
 0x3eb   : > { %v3100_v10 = vadd.f32 %v7240_v4, %v7241_v5  ;;  %v4947_v26 = vpop.f32.mrb[132].mxu0 }
 0x3ec   : > { %v2957_v22 = vpop.f32.mrb[133].mxu0  ;;  %v6706_v8 = vadd.f32 %v4947_v26, %v6678_v39 }
 0x3ed   : > { %v3101_v21 = vadd.f32 %v3100_v10, %v7239_v62  ;;  %v6703_v60 = vadd.f32 %v6678_v39, %v2957_v22  ;;  %v4948_v16 = vpop.f32.mrb[134].mxu0 }
 0x3ee   : > { %v2960_v47 = vpop.f32.mrb[135].mxu0  ;;  %v6717_v30 = vadd.f32 %v4948_v16, %v6678_v39  ;;  %v7235_v25 = vmax.f32 %v6706_v8, 0.0 }
 0x3ef   : > { %v7237_v9 = vmax.f32 %v6703_v60, 0.0  ;;  %v3102_v59 = vadd.f32 %v3101_v21, %v7238_v63  ;;  %v6712_v35 = vadd.f32 %v6678_v39, %v2960_v47 }
 0x3f0   : > { %v7234_v49 = vmax.f32 %v6717_v30, 0.0 }
 0x3f1   : > { %v3103_v19 = vadd.f32 %v3102_v59, %v7237_v9  ;;  %v7236_v29 = vmax.f32 %v6712_v35, 0.0 }
 0x3f3   : > { %v3104_v50 = vadd.f32 %v3103_v19, %v7236_v29  ;;  %v4951_v41 = vpop.f32.mrb[128].mxu1 }
 0x3f4   : > { %v2973_v28 = vpop.f32.mrb[129].mxu1  ;;  %v6730_v18 = vadd.f32 %v4951_v41, %v6678_v39 }
 0x3f5   : > { %v3105_v6 = vadd.f32 %v3104_v50, %v7235_v25  ;;  %v6727_v48 = vadd.f32 %v6678_v39, %v2973_v28  ;;  %v4952_v7 = vpop.f32.mrb[130].mxu1 }
 0x3f6   : > { %v2976_v56 = vpop.f32.mrb[131].mxu1  ;;  %v6741_v20 = vadd.f32 %v4952_v7, %v6678_v39  ;;  %v7231_v52 = vmax.f32 %v6730_v18, 0.0 }
 0x3f7   : > { %v7233_v37 = vmax.f32 %v6727_v48, 0.0  ;;  %v3106_v24 = vadd.f32 %v3105_v6, %v7234_v49  ;;  %v6736_v53 = vadd.f32 %v6678_v39, %v2976_v56 }
 0x3f8   : > { %v7230_v13 = vmax.f32 %v6741_v20, 0.0 }
 0x3f9   : > { %v3107_v42 = vadd.f32 %v3106_v24, %v7233_v37  ;;  %v7232_v55 = vmax.f32 %v6736_v53, 0.0 }
 0x3fb   : > { %v3108_v23 = vadd.f32 %v3107_v42, %v7232_v55  ;;  %v4955_v40 = vpop.f32.mrb[132].mxu1 }
 0x3fc   : > { %v2989_v38 = vpop.f32.mrb[133].mxu1  ;;  %v6754_v1 = vadd.f32 %v4955_v40, %v6678_v39 }
 0x3fd   : > { %v3109_v31 = vadd.f32 %v3108_v23, %v7231_v52  ;;  %v6751_v54 = vadd.f32 %v6678_v39, %v2989_v38  ;;  %v4956_v14 = vpop.f32.mrb[134].mxu1 }
 0x3fe   : > { %v2992_v36 = vpop.f32.mrb[135].mxu1  ;;  %v6765_v33 = vadd.f32 %v4956_v14, %v6678_v39  ;;  %v7227_v44 = vmax.f32 %v6754_v1, 0.0 }
 0x3ff   : > { %v7229_v12 = vmax.f32 %v6751_v54, 0.0  ;;  %v3110_v43 = vadd.f32 %v3109_v31, %v7230_v13  ;;  %v6760_v32 = vadd.f32 %v6678_v39, %v2992_v36 }
 0x400   : > { %v7226_v15 = vmax.f32 %v6765_v33, 0.0 }
 0x401   : > { %v3111_v3 = vadd.f32 %v3110_v43, %v7229_v12  ;;  %v7228_v2 = vmax.f32 %v6760_v32, 0.0 }
 0x403   : > { %v3112_v17 = vadd.f32 %v3111_v3, %v7228_v2  ;;  %v4959_v61 = vpop.f32.mrb[136].mxu1 }
 0x404   : > { %v3005_v45 = vpop.f32.mrb[137].mxu1  ;;  %v6778_v26 = vadd.f32 %v4959_v61, %v6678_v39 }
 0x405   : > { %v3113_v58 = vadd.f32 %v3112_v17, %v7227_v44  ;;  %v6775_v11 = vadd.f32 %v6678_v39, %v3005_v45  ;;  %v4960_v51 = vpop.f32.mrb[138].mxu1 }
 0x406   : > { %v3008_v10 = vpop.f32.mrb[139].mxu1  ;;  %v6789_v59 = vadd.f32 %v4960_v51, %v6678_v39  ;;  %v7220_v50 = vmax.f32 %v6778_v26, 0.0 }
 0x407   : > { %v7225_v22 = vmax.f32 %v6775_v11, 0.0  ;;  %v3114_v21 = vadd.f32 %v3113_v58, %v7226_v15  ;;  %v6784_v16 = vadd.f32 %v6678_v39, %v3008_v10 }
 0x408   : > { %7269 = vst [vmem:[#allocation11_spill] sm:$0xff] %v6789_v59  ;;  %v7217_v7 = vmax.f32 %v6789_v59, 0.0 }
 0x409   : > { %v3115_v47 = vadd.f32 %v3114_v21, %v7225_v22  ;;  %v7222_v19 = vmax.f32 %v6784_v16, 0.0 }
 0x40b   : > { %v3116_v41 = vadd.f32 %v3115_v47, %v7222_v19  ;;  %v4963_v28 = vpop.f32.mrb[140].mxu1 }
 0x40c   : > { %v3021_v6 = vpop.f32.mrb[141].mxu1  ;;  %v6802_v40 = vadd.f32 %v4963_v28, %v6678_v39 }
 0x40d   : > { %v3117_v56 = vadd.f32 %v3116_v41, %v7220_v50  ;;  %v6799_v24 = vadd.f32 %v6678_v39, %v3021_v6  ;;  %v4964_v42 = vpop.f32.mrb[142].mxu1 }
 0x40e   : > { %v3024_v23 = vpop.f32.mrb[143].mxu1  ;;  %7271 = vst [vmem:[#allocation13_spill] sm:$0xff] %v6802_v40  ;;  %v6813_v43 = vadd.f32 %v4964_v42, %v6678_v39  ;;  %v7210_v17 = vmax.f32 %v6802_v40, 0.0 }
 0x40f   : > { %7270 = vst [vmem:[#allocation12_spill] sm:$0xff] %v6799_v24  ;;  %v7216_v38 = vmax.f32 %v6799_v24, 0.0  ;;  %v3118_v31 = vadd.f32 %v3117_v56, %v7217_v7  ;;  %v6808_v14 = vadd.f32 %v6678_v39, %v3024_v23 }
 0x410   : > { %7273 = vst [vmem:[#allocation15_spill] sm:$0xff] %v6813_v43  ;;  %v7211_v51 = vmax.f32 %v6813_v43, 0.0  ;;  %v4230_v43 = vld [vmem:[%s7202_s12] ss:$0 sm:$0xff] }
 0x411   : > { %7272 = vst [vmem:[#allocation14_spill] sm:$0xff] %v6808_v14  ;;  %v3119_v36 = vadd.f32 %v3118_v31, %v7216_v38  ;;  %v7213_v3 = vmax.f32 %v6808_v14, 0.0 }
 0x413   : > { %v3120_v61 = vadd.f32 %v3119_v36, %v7213_v3  ;;  %v4967_v45 = vpop.f32.mrb[144].mxu1 }
 0x414   : > { %v3037_v58 = vpop.f32.mrb[145].mxu1  ;;  %v6826_v28 = vadd.f32 %v4967_v45, %v6678_v39 }
 0x415   : > { %v3121_v10 = vadd.f32 %v3120_v61, %v7210_v17  ;;  %v6823_v21 = vadd.f32 %v6678_v39, %v3037_v58  ;;  %v4968_v47 = vpop.f32.mrb[146].mxu1 }
 0x416   : > { %v3040_v41 = vpop.f32.mrb[147].mxu1  ;;  %7275 = vst [vmem:[#allocation17_spill] sm:$0xff] %v6826_v28  ;;  %v6837_v31 = vadd.f32 %v4968_v47, %v6678_v39  ;;  %v7215_v61 = vmax.f32 %v6826_v28, 0.0 }
 0x417   : > { %7274 = vst [vmem:[#allocation16_spill] sm:$0xff] %v6823_v21  ;;  %v7212_v6 = vmax.f32 %v6823_v21, 0.0  ;;  %v3122_v56 = vadd.f32 %v3121_v10, %v7211_v51  ;;  %v6832_v42 = vadd.f32 %v6678_v39, %v3040_v41  ;;  %v3299_v21 = vlaneseq }
 0x418   : > { %7277 = vst [vmem:[#allocation19_spill] sm:$0xff] %v6837_v31  ;;  %v7219_v10 = vmax.f32 %v6837_v31, 0.0 }
 0x419   : > { %7276 = vst [vmem:[#allocation18_spill] sm:$0xff] %v6832_v42  ;;  %v3123_v23 = vadd.f32 %v3122_v56, %v7212_v6  ;;  %v7214_v36 = vmax.f32 %v6832_v42, 0.0  ;;  %v3300_v40 = vshrl.u32 %v3299_v21, 7 }
 0x41b   : > { %v3124_v45 = vadd.f32 %v3123_v23, %v7214_v36  ;;  %v4971_v58 = vpop.f32.mrb[148].mxu1 }
 0x41c   : > { %v3053_v17 = vpop.f32.mrb[149].mxu1  ;;  %v6850_v6 = vadd.f32 %v4971_v58, %v6678_v39 }
 0x41d   : > { %v3125_v41 = vadd.f32 %v3124_v45, %v7215_v61  ;;  %v6847_v51 = vadd.f32 %v6678_v39, %v3053_v17  ;;  %v4972_v56 = vpop.f32.mrb[150].mxu1 }
 0x41e   : > { %v3056_v47 = vpop.f32.mrb[151].mxu1  ;;  %7279 = vst [vmem:[#allocation21_spill] sm:$0xff] %v6850_v6  ;;  %v6861_v17 = vadd.f32 %v4972_v56, %v6678_v39  ;;  %v7224_v58 = vmax.f32 %v6850_v6, 0.0 }
 0x41f   : > { %7278 = vst [vmem:[#allocation20_spill] sm:$0xff] %v6847_v51  ;;  %v7218_v3 = vmax.f32 %v6847_v51, 0.0  ;;  %v3126_v23 = vadd.f32 %v3125_v41, %v7219_v10  ;;  %v6856_v36 = vadd.f32 %v6678_v39, %v3056_v47 }
 0x420   : > { %7281 = vst [vmem:[#allocation23_spill] sm:$0xff] %v6861_v17  ;;  %v7223_v7 = vmax.f32 %v6861_v17, 0.0 }
 0x421   : > { %7280 = vst [vmem:[#allocation22_spill] sm:$0xff] %v6856_v36  ;;  %v3127_v45 = vadd.f32 %v3126_v23, %v7218_v3  ;;  %v7221_v61 = vmax.f32 %v6856_v36, 0.0 }
 0x423   : > { %v3128_v38 = vadd.f32 %v3127_v45, %v7221_v61  ;;  %v5393_v61 = vld [vmem:[%s5673_s21] sm:$0xff]  }
 0x425   : > { %v3129_v41 = vadd.f32 %v3128_v38, %v7224_v58  ;;  %v3472_v38 = vsel %vm702_vm0, %v6667_v0, 0  ;;  %v5398_v0 = vld [vmem:[%s5673_s21 + $0x28] sm:$0xff]  }
 0x427   : > { %v3130_v47 = vadd.f32 %v3129_v41, %v7223_v7  ;;  %v5394_v41 = vld [vmem:[%s5673_s21 + $0x8] sm:$0xff]  }
 0x429   : > { %v3131_v23 = vrot.slane %v3130_v47, 4 }
 0x42b   : > { %v3132_v39 = vadd.f32 %v3131_v23, %v3130_v47  ;;  %v5395_v47 = vld [vmem:[%s5673_s21 + $0x10] sm:$0xff]   ;;  %v5402_v23 = vld [vmem:[%s5673_s21 + $0x48] sm:$0xff]  }
 0x42d   : > { %v3133_v56 = vrot.slane %v3132_v39, 2 }
 0x42f   : > { %v3134_v3 = vadd.f32 %v3133_v56, %v3132_v39  ;;  %v5403_v39 = vld [vmem:[%s5673_s21 + $0x50] sm:$0xff]   ;;  %v5404_v56 = vld [vmem:[%s5673_s21 + $0x58] sm:$0xff]  }
 0x431   : > { %v3135_v10 = vrot.slane %v3134_v3, 1 }
 0x433   : > { %v3136_v50 = vadd.f32 %v3135_v10, %v3134_v3  ;;  %v5397_v3 = vld [vmem:[%s5673_s21 + $0x20] sm:$0xff]  }
 0x434   : > { %v5401_v10 = vld [vmem:[%s5673_s21 + $0x40] sm:$0xff]  }
 0x435   : > { %v3137_v45 = vmul.f32 0.00390625, %v3136_v50  ;;  %v5396_v50 = vld [vmem:[%s5673_s21 + $0x18] sm:$0xff]  }
 0x437   : > { %v3138_v19 = vpack.c.bf16 %v3137_v45, %v3137_v45  ;;  %v5405_v45 = vld [vmem:[%s5673_s21 + $0x60] sm:$0xff]  }
 0x439   : > { %4990 = vmatmul.mubr.bf16.vlgmr.msra.gmra.mrb[152].mxu1 %v3138_v19  ;;  %v5399_v19 = vld [vmem:[%s5673_s21 + $0x30] sm:$0xff]  }
 0x43a   : > { %5000 = vmatpush3.bf16.msra.mxu1 %v3472_v38  ;;  %5001 = vmatprep.mubr.msk.bf16.mxu1 %vm653_vm1, %v5393_v61  ;;  %v5400_v61 = vld [vmem:[%s5673_s21 + $0x38] sm:$0xff]   ;;  %v5406_v38 = vld [vmem:[%s5673_s21 + $0x68] sm:$0xff]  }
 0x441   : > { %5002 = vmatmul.mubr.msk.bf16.vlgmr.msra.gmra.mrb[156].mxu1 %vm653_vm1, %v5394_v41  ;;  %v5407_v41 = vld [vmem:[%s5673_s21 + $0x70] sm:$0xff]  }
 0x442   : > { %5005 = vmatprep.mubr.msk.bf16.mxu1 %vm653_vm1, %v5395_v47  ;;  %v5408_v47 = vld [vmem:[%s5673_s21 + $0x78] sm:$0xff]   ;;  %s5512_s21 = smov [#allocation5]  }
 0x443   : > { %s5441_s23 = sshll.u32 %s5512_s21, 4  ;;  %s5442_s23 = int_to_ptr.vmem [resolvable:$false] %s5441_s23 }
 0x444   : > { %s5443_s22 = scalar_lea.vmem %s5442_s23, 8192  ;;  %p5444_p2 = scmp.lt.s32.totalorder %s7116_s24, %s5442_s23 }
 0x445   : > { %p5445_p3 = scmp.lt.s32.totalorder %s5443_s22, %s5437_s14 }
 0x447   : > { %p5446_p4 = por %p5445_p3, %p5444_p2 }
 0x449   : > { %5006 = vmatmul.mubr.msk.bf16.gmra.mrb[160].mxu1 %vm653_vm1, %v5396_v50  ;;  %p5447_p7 = pnand %p5446_p4, %p5440_p12 }
 0x44a   : > { %5009 = vmatprep.mubr.msk.bf16.mxu1 %vm653_vm1, %v5397_v3 }
 0x451   : > { %5010 = vmatmul.mubr.msk.bf16.gmra.mrb[164].mxu1 %vm653_vm1, %v5398_v0 }
 0x452   : > { %5013 = vmatprep.mubr.msk.bf16.mxu1 %vm653_vm1, %v5399_v19 }
 0x459   : > { %5014 = vmatmul.mubr.msk.bf16.gmra.mrb[168].mxu1 %vm653_vm1, %v5400_v61 }
 0x45a   : > { %5017 = vmatprep.mubr.msk.bf16.mxu1 %vm653_vm1, %v5401_v10 }
 0x461   : > { %5018 = vmatmul.mubr.msk.bf16.gmra.mrb[172].mxu1 %vm653_vm1, %v5402_v23 }
 0x462   : > { %5021 = vmatprep.mubr.msk.bf16.mxu1 %vm653_vm1, %v5403_v39 }
 0x469   : > { %5022 = vmatmul.mubr.msk.bf16.gmra.mrb[176].mxu1 %vm653_vm1, %v5404_v56 }
 0x46a   : > { %5025 = vmatprep.mubr.msk.bf16.mxu1 %vm653_vm1, %v5405_v45 }
 0x471   : > { %5026 = vmatmul.mubr.msk.bf16.gmra.mrb[180].mxu1 %vm653_vm1, %v5406_v38 }
 0x472   : > { %5029 = vmatprep.mubr.msk.bf16.mxu1 %vm653_vm1, %v5407_v41 }
 0x479   : > { %5030 = vmatmul.mubr.msk.bf16.gmra.mrb[184].mxu1 %vm653_vm1, %v5408_v47 }
 0x50c   : > { %v3237_v50 = vpop.f32.mrb[152].mxu1 }
 0x50d   : > { %v3243_v3 = vmax.f32 %v3237_v50, 0.0  ;;  %v4991_v0 = vpop.f32.mrb[153].mxu1 }
 0x50e   : > { %v3240_v19 = vpop.f32.mrb[154].mxu1 }
 0x50f   : > { %v3244_v61 = vpack.c.bf16 %v3243_v3, %v3243_v3  ;;  %v4992_v10 = vpop.f32.mrb[155].mxu1 }
 0x511   : > { %4996 = vmatmul.mubr.msk.bf16.vlgmr.msra.gmra.mrb[136].mxu0 %vm3246_vm9, %v3244_v61 }
 0x514   : > { %v5003_v23 = vpop.f32.mrb[156].mxu1 }
 0x515   : > { %v3508_v39 = vpop.f32.mrb[157].mxu1  ;;  %v6909_v14 = vadd.f32 %v5003_v23, %v4230_v43 }
 0x516   : > { %v5004_v56 = vpop.f32.mrb[158].mxu1  ;;  %v6911_v24 = vadd.f32 %v4230_v43, %v3508_v39 }
 0x517   : > { %v3511_v45 = vpop.f32.mrb[159].mxu1  ;;  %v6913_v59 = vadd.f32 %v5004_v56, %v4230_v43  ;;  %v3301_v56 = vsub.s32 0, %v3300_v40 }
 0x51c   : > { %v5007_v7 = vpop.f32.mrb[160].mxu1 }
 0x51d   : > { %v3524_v58 = vpop.f32.mrb[161].mxu1 }
 0x51e   : > { %v5008_v38 = vpop.f32.mrb[162].mxu1 }
 0x51f   : > { %v3527_v22 = vpop.f32.mrb[163].mxu1 }
 0x524   : > { %v5011_v41 = vpop.f32.mrb[164].mxu1 }
 0x525   : > { %v3540_v15 = vpop.f32.mrb[165].mxu1 }
 0x526   : > { %v5012_v44 = vpop.f32.mrb[166].mxu1 }
 0x527   : > { %v3543_v47 = vpop.f32.mrb[167].mxu1  ;;  %v6929_v21 = vadd.f32 %v5012_v44, %v4230_v43 }
 0x528   : > { %v6931_v23 = vadd.f32 %v4230_v43, %v3543_v47 }
 0x529   : > { %7282 = vst [vmem:[#allocation24_spill] sm:$0xff] %v6929_v21 }
 0x52c   : > { %v5015_v2 = vpop.f32.mrb[168].mxu1 }
 0x52d   : > { %v3556_v50 = vpop.f32.mrb[169].mxu1  ;;  %v6933_v39 = vadd.f32 %v5015_v2, %v4230_v43 }
 0x52e   : > { %v5016_v0 = vpop.f32.mrb[170].mxu1 }
 0x52f   : > { %v3559_v19 = vpop.f32.mrb[171].mxu1 }
 0x534   : > { %v5019_v12 = vpop.f32.mrb[172].mxu1 }
 0x535   : > { %v3572_v3 = vpop.f32.mrb[173].mxu1 }
 0x536   : > { %v5020_v10 = vpop.f32.mrb[174].mxu1 }
 0x537   : > { %v3575_v61 = vpop.f32.mrb[175].mxu1 }
 0x53c   : > { %v5023_v13 = vpop.f32.mrb[176].mxu1 }
 0x53d   : > { %v3588_v52 = vpop.f32.mrb[177].mxu1  ;;  %v6947_v44 = vadd.f32 %v5023_v13, %v4230_v43 }
 0x53e   : > { %v5024_v55 = vpop.f32.mrb[178].mxu1  ;;  %v6949_v21 = vadd.f32 %v4230_v43, %v3588_v52 }
 0x53f   : > { %v3591_v37 = vpop.f32.mrb[179].mxu1  ;;  %7284 = vst [vmem:[#allocation26_spill] sm:$0xff] %v6947_v44  ;;  %v6951_v2 = vadd.f32 %v5024_v55, %v4230_v43 }
 0x540   : > { %7285 = vst [vmem:[#allocation27_spill] sm:$0xff] %v6949_v21  ;;  %v6953_v40 = vadd.f32 %v4230_v43, %v3591_v37  ;;  %v7296_v37 = vmax.f32 %v6681_v34, 0.0  ;;  %v7302_v34 = vmax.f32 %v6706_v8, 0.0  ;;  %v7309_v8 = vmax.f32 %v6760_v32, 0.0 }
 0x541   : > { %7286 = vst [vmem:[#allocation28_spill] sm:$0xff] %v6951_v2 }
 0x542   : > { %7287 = vst [vmem:[#allocation29_spill] sm:$0xff] %v6953_v40 }
 0x544   : > { %v5027_v49 = vpop.f32.mrb[180].mxu1 }
 0x545   : > { %v3604_v25 = vpop.f32.mrb[181].mxu1 }
 0x546   : > { %v5028_v29 = vpop.f32.mrb[182].mxu1 }
 0x547   : > { %v3607_v9 = vpop.f32.mrb[183].mxu1 }
 0x54c   : > { %v5031_v63 = vpop.f32.mrb[184].mxu1 }
 0x54d   : > { %v3620_v62 = vpop.f32.mrb[185].mxu1  ;;  %v6963_v13 = vadd.f32 %v5031_v63, %v4230_v43 }
 0x54e   : > { %v5032_v4 = vpop.f32.mrb[186].mxu1 }
 0x54f   : > { %v3623_v5 = vpop.f32.mrb[187].mxu1  ;;  %7292 = vst [vmem:[#allocation34_spill] sm:$0xff] %v6963_v13  ;;  %v6967_v52 = vadd.f32 %v5032_v4, %v4230_v43 }
 0x550   : > { %v6969_v55 = vadd.f32 %v4230_v43, %v3623_v5  ;;  %v7301_v5 = vmax.f32 %v6712_v35, 0.0  ;;  %v7308_v35 = vmax.f32 %v6751_v54, 0.0  ;;  %v7314_v54 = vmax.f32 %v6778_v26, 0.0  ;;  %v7327_v26 = vld [vmem:[#allocation18_spill] sm:$0xff] }
 0x551   : > { %7294 = vst [vmem:[#allocation36_spill] sm:$0xff] %v6967_v52  ;;  %v7319_v52 = vld [vmem:[#allocation14_spill] sm:$0xff] }
 0x552   : > { %7295 = vst [vmem:[#allocation37_spill] sm:$0xff] %v6969_v55 }
 0x5e4   : > { %v3287_v17 = vpop.f32.mrb[136].mxu0 }
 0x5e5   : > { %v4229_v6 = vmul.f32 -1.442695, %v3287_v17  ;;  %v4997_v36 = vpop.f32.mrb[137].mxu0  ;;  %v6915_v17 = vadd.f32 %v4230_v43, %v3511_v45  ;;  %v6935_v45 = vadd.f32 %v4230_v43, %v3556_v50  ;;  %v6955_v50 = vadd.f32 %v5027_v49, %v4230_v43 }
 0x5e6   : > { %v3290_v51 = vpop.f32.mrb[138].mxu0  ;;  %v6927_v36 = vadd.f32 %v4230_v43, %v3540_v15  ;;  %v6945_v15 = vadd.f32 %v4230_v43, %v3575_v61  ;;  %v7297_v61 = vmax.f32 %v6687_v46, 0.0  ;;  %v7303_v46 = vmax.f32 %v6717_v30, 0.0 }
 0x5e7   : > { %5389 = vpow2.f32 %v4229_v6  ;;  %v4998_v31 = vpop.f32.mrb[139].mxu0  ;;  %v6917_v51 = vadd.f32 %v5007_v7, %v4230_v43  ;;  %v6919_v6 = vadd.f32 %v4230_v43, %v3524_v58  ;;  %v6937_v7 = vadd.f32 %v5016_v0, %v4230_v43  ;;  %7288 = vst [vmem:[#allocation30_spill] sm:$0xff] %v6955_v50 }
 0x5e8   : > { %v6925_v31 = vadd.f32 %v5011_v41, %v4230_v43  ;;  %v6939_v58 = vadd.f32 %v4230_v43, %v3559_v19  ;;  %v3584_v41 = vadd.f32 %v5020_v10, %v4230_v43  ;;  %7283 = vst [vmem:[#allocation25_spill] sm:$0xff] %v6945_v15  ;;  %v6959_v19 = vadd.f32 %v5028_v29, %v4230_v43 }
 0x5e9   : > { %v6965_v10 = vadd.f32 %v4230_v43, %v3620_v62  ;;  %v7298_v29 = vmax.f32 %v6684_v27, 0.0  ;;  %v7300_v62 = vmax.f32 %v6703_v60, 0.0  ;;  %v7304_v27 = vmax.f32 %v6727_v48, 0.0 }
 0x5ea   : > { %7290 = vst [vmem:[#allocation32_spill] sm:$0xff] %v6959_v19  ;;  %v7307_v60 = vmax.f32 %v6741_v20, 0.0  ;;  %v7310_v30 = vmax.f32 %v6754_v1, 0.0  ;;  %v7311_v48 = vmax.f32 %v6765_v33, 0.0  ;;  %v7313_v20 = vmax.f32 %v6784_v16, 0.0  ;;  %v7325_v16 = vld [vmem:[#allocation16_spill] sm:$0xff] }
 0x5eb   : > { %7293 = vst [vmem:[#allocation35_spill] sm:$0xff] %v6965_v10  ;;  %v7320_v33 = vmax.f32 %v7319_v52, 0.0  ;;  %v7321_v10 = vld [vmem:[#allocation13_spill] sm:$0xff]  ;;  %v7333_v52 = vld [vmem:[#allocation20_spill] sm:$0xff] }
 0x5ec   : > { %v7322_v13 = vmax.f32 %v7321_v10, 0.0  ;;  %v7335_v10 = vld [vmem:[#allocation22_spill] sm:$0xff] }
 0x5f1   : > { %v5390_v28 = vpop.eup %5389 }
 0x5f2   : > { %v3296_v42 = vadd.f32 1.0, %v5390_v28  ;;  %v6921_v28 = vadd.f32 %v5008_v38, %v4230_v43  ;;  %v6941_v38 = vadd.f32 %v5019_v12, %v4230_v43  ;;  %v6957_v12 = vadd.f32 %v4230_v43, %v3604_v25 }
 0x5f4   : > { %5391 = vrcp.f32 %v3296_v42  ;;  %v6923_v42 = vadd.f32 %v4230_v43, %v3527_v22  ;;  %v6943_v22 = vadd.f32 %v4230_v43, %v3572_v3  ;;  %7289 = vst [vmem:[#allocation31_spill] sm:$0xff] %v6957_v12  ;;  %v6961_v3 = vadd.f32 %v4230_v43, %v3607_v9 }
 0x5f6   : > { %7291 = vst [vmem:[#allocation33_spill] sm:$0xff] %v6961_v3 }
 0x5fe   : > { %v5392_v47 = vpop.eup %5391 }
 0x5ff   : > { %v3302_v0 = vrot.slane %v5392_v47, %v3301_v56  ;;  %v7299_v56 = vmax.f32 %v6691_v57, 0.0 }
 0x601   : > { %v3303_v49 = vmul.f32 %v3302_v0, %v7296_v37  ;;  %v3304_v25 = vmul.f32 %v3302_v0, %v7297_v61  ;;  %v3305_v9 = vmul.f32 %v3302_v0, %v7298_v29  ;;  %v3306_v63 = vmul.f32 %v3302_v0, %v7299_v56 }
 0x602   : > { %v3307_v4 = vmul.f32 %v3302_v0, %v7300_v62  ;;  %v3308_v43 = vmul.f32 %v3302_v0, %v7301_v5  ;;  %v3309_v47 = vmul.f32 %v3302_v0, %v7302_v34  ;;  %v3310_v37 = vmul.f32 %v3302_v0, %v7303_v46 }
 0x603   : > { %v3311_v61 = vmul.f32 %v3302_v0, %v7304_v27  ;;  %v7305_v29 = vmax.f32 %v6736_v53, 0.0  ;;  %v7306_v56 = vmax.f32 %v6730_v18, 0.0  ;;  %v3314_v62 = vmul.f32 %v3302_v0, %v7307_v60  ;;  %v7315_v60 = vld [vmem:[#allocation11_spill] sm:$0xff] }
 0x604   : > { %v3315_v5 = vmul.f32 %v3302_v0, %v7308_v35  ;;  %v3316_v34 = vmul.f32 %v3302_v0, %v7309_v8  ;;  %v3317_v46 = vmul.f32 %v3302_v0, %v7310_v30  ;;  %v3318_v27 = vmul.f32 %v3302_v0, %v7311_v48  ;;  %v7317_v8 = vld [vmem:[#allocation12_spill] sm:$0xff] }
 0x605   : > { %v3312_v57 = vmul.f32 %v3302_v0, %v7305_v29  ;;  %v3313_v55 = vmul.f32 %v3302_v0, %v7306_v56  ;;  %v7312_v18 = vmax.f32 %v6775_v11, 0.0  ;;  %v3320_v29 = vmul.f32 %v3302_v0, %v7313_v20  ;;  %v7323_v11 = vld [vmem:[#allocation15_spill] sm:$0xff] }
 0x606   : > { %v3321_v56 = vmul.f32 %v3302_v0, %v7314_v54  ;;  %v7316_v32 = vmax.f32 %v7315_v60, 0.0  ;;  %v7318_v1 = vmax.f32 %v7317_v8, 0.0  ;;  %v3324_v48 = vmul.f32 %v3302_v0, %v7320_v33  ;;  %v7329_v60 = vld [vmem:[#allocation17_spill] sm:$0xff]  ;;  %v7331_v8 = vld [vmem:[#allocation19_spill] sm:$0xff] }
 0x607   : > { %v3319_v53 = vmul.f32 %v3302_v0, %v7312_v18  ;;  %v3325_v3 = vmul.f32 %v3302_v0, %v7322_v13  ;;  %v7324_v18 = vmax.f32 %v7323_v11, 0.0  ;;  %v7326_v20 = vmax.f32 %v7325_v16, 0.0  ;;  %v7337_v11 = vld [vmem:[#allocation21_spill] sm:$0xff] }
 0x608   : > { %v3322_v35 = vmul.f32 %v3302_v0, %v7316_v32  ;;  %v3323_v30 = vmul.f32 %v3302_v0, %v7318_v1  ;;  %v7328_v54 = vmax.f32 %v7327_v26, 0.0  ;;  %v7330_v32 = vmax.f32 %v7329_v60, 0.0 }
 0x609   : > { %v3326_v19 = vmul.f32 %v3302_v0, %v7324_v18  ;;  %v3327_v12 = vmul.f32 %v3302_v0, %v7326_v20  ;;  %v7332_v1 = vmax.f32 %v7331_v8, 0.0  ;;  %v7334_v33 = vmax.f32 %v7333_v52, 0.0  ;;  %v7339_v20 = vld [vmem:[#allocation23_spill] sm:$0xff] }
 0x60a   : > { %v3328_v50 = vmul.f32 %v3302_v0, %v7328_v54  ;;  %v3329_v40 = vmul.f32 %v3302_v0, %v7330_v32  ;;  %v7336_v13 = vmax.f32 %v7335_v10, 0.0  ;;  %v7338_v18 = vmax.f32 %v7337_v11, 0.0 }
 0x60b   : > { %v3330_v2 = vmul.f32 %v3302_v0, %v7332_v1  ;;  %v3331_v21 = vmul.f32 %v3302_v0, %v7334_v33  ;;  %v7340_v15 = vmax.f32 %v7339_v20, 0.0  ;;  %v3654_v54 = vadd.f32 %v3584_v41, %v3322_v35 }
 0x60c   : > { %v7034_v44 = vmul.f32 %v3302_v0, %v7336_v13  ;;  %v3333_v16 = vmul.f32 %v3302_v0, %v7338_v18  ;;  %v3635_v60 = vadd.f32 %v6911_v24, %v3303_v49  ;;  %v3636_v32 = vadd.f32 %v6915_v17, %v3304_v25  ;;  %v7347_v25 = vld [vmem:[#allocation30_spill] sm:$0xff] }
 0x60d   : > { %v3334_v26 = vmul.f32 %v3302_v0, %v7340_v15  ;;  %v3637_v8 = vadd.f32 %v6909_v14, %v3305_v9  ;;  %v3638_v1 = vadd.f32 %v6913_v59, %v3306_v63  ;;  %v3639_v52 = vadd.f32 %v6919_v6, %v3307_v4  ;;  %3687 = vst.msk [vmem:[%s7047_s20 + $0x98] sm:$0xff] %vm3667_vm10, %v3654_v54  ;;  %v7345_v15 = vld [vmem:[#allocation28_spill] sm:$0xff]  ;;  %v7348_v9 = vld [vmem:[#allocation31_spill] sm:$0xff] }
 0x60e   : > { %v3640_v33 = vadd.f32 %v6923_v42, %v3308_v43  ;;  %v3641_v10 = vadd.f32 %v6917_v51, %v3309_v47  ;;  %v3642_v59 = vadd.f32 %v6921_v28, %v3310_v37  ;;  %v3643_v24 = vadd.f32 %v6927_v36, %v3311_v61  ;;  %3668 = vst.msk [vmem:[%s7047_s20] sm:$0xff] %vm3667_vm10, %v3635_v60  ;;  %v7341_v51 = vld [vmem:[#allocation24_spill] sm:$0xff]  ;;  %v7350_v43 = vld [vmem:[#allocation33_spill] sm:$0xff] }
 0x60f   : > { %v3644_v14 = vadd.f32 %v6931_v23, %v3312_v57  ;;  %v3645_v17 = vadd.f32 %v6925_v31, %v3313_v55  ;;  %3669 = vst.msk [vmem:[%s7047_s20 + $0x8] sm:$0xff] %vm3667_vm10, %v3636_v32  ;;  %3670 = vst.msk [vmem:[%s7047_s20 + $0x10] sm:$0xff] %vm3667_vm10, %v3637_v8  ;;  %v3646_v6 = vadd.f32 %v7341_v51, %v3314_v62  ;;  %v7346_v55 = vld [vmem:[#allocation29_spill] sm:$0xff]  ;;  %v7349_v4 = vld [vmem:[#allocation32_spill] sm:$0xff] }
 0x610   : > { %v3647_v28 = vadd.f32 %v6935_v45, %v3315_v5  ;;  %v3648_v42 = vadd.f32 %v6939_v58, %v3316_v34  ;;  %v3649_v36 = vadd.f32 %v6933_v39, %v3317_v46  ;;  %3671 = vst.msk [vmem:[%s7047_s20 + $0x18] sm:$0xff] %vm3667_vm10, %v3638_v1  ;;  %3672 = vst.msk [vmem:[%s7047_s20 + $0x20] sm:$0xff] %vm3667_vm10, %v3639_v52  ;;  %v7342_v45 = vld [vmem:[#allocation25_spill] sm:$0xff]  ;;  %v7353_v37 = vld [vmem:[#allocation36_spill] sm:$0xff] }
 0x611   : > { %3673 = vst.msk [vmem:[%s7047_s20 + $0x28] sm:$0xff] %vm3667_vm10, %v3640_v33  ;;  %3674 = vst.msk [vmem:[%s7047_s20 + $0x30] sm:$0xff] %vm3667_vm10, %v3641_v10  ;;  %v3650_v31 = vadd.f32 %v6937_v7, %v3318_v27  ;;  %v3651_v23 = vadd.f32 %v6943_v22, %v3319_v53  ;;  %v3653_v39 = vadd.f32 %v6941_v38, %v3321_v56  ;;  %v7343_v7 = vld [vmem:[#allocation26_spill] sm:$0xff]  ;;  %v7344_v22 = vld [vmem:[#allocation27_spill] sm:$0xff] }
 0x612   : > { %3675 = vst.msk [vmem:[%s7047_s20 + $0x38] sm:$0xff] %vm3667_vm10, %v3642_v59  ;;  %3676 = vst.msk [vmem:[%s7047_s20 + $0x40] sm:$0xff] %vm3667_vm10, %v3643_v24  ;;  %v3652_v58 = vadd.f32 %v7342_v45, %v3320_v29  ;;  %v3657_v38 = vadd.f32 %v7343_v7, %v3325_v3  ;;  %v3655_v41 = vadd.f32 %v7344_v22, %v3323_v30  ;;  %v7354_v57 = vld [vmem:[#allocation37_spill] sm:$0xff] }
 0x613   : > { %3677 = vst.msk [vmem:[%s7047_s20 + $0x48] sm:$0xff] %vm3667_vm10, %v3644_v14  ;;  %3678 = vst.msk [vmem:[%s7047_s20 + $0x50] sm:$0xff] %vm3667_vm10, %v3645_v17  ;;  %v3658_v0 = vadd.f32 %v7345_v15, %v3326_v19  ;;  %v3656_v49 = vadd.f32 %v7346_v55, %v3324_v48  ;;  %v3661_v3 = vadd.f32 %v7347_v25, %v3329_v40 }
 0x614   : > { %3679 = vst.msk [vmem:[%s7047_s20 + $0x58] sm:$0xff] %vm3667_vm10, %v3646_v6  ;;  %3680 = vst.msk [vmem:[%s7047_s20 + $0x60] sm:$0xff] %vm3667_vm10, %v3647_v28  ;;  %v3659_v63 = vadd.f32 %v7348_v9, %v3327_v12  ;;  %v3662_v19 = vadd.f32 %v7349_v4, %v3330_v2  ;;  %v3660_v47 = vadd.f32 %v7350_v43, %v3328_v50  ;;  %v7351_v2 = vld [vmem:[#allocation34_spill] sm:$0xff]  ;;  %v7352_v50 = vld [vmem:[#allocation35_spill] sm:$0xff] }
 0x615   : > { %3681 = vst.msk [vmem:[%s7047_s20 + $0x68] sm:$0xff] %vm3667_vm10, %v3648_v42  ;;  %3682 = vst.msk [vmem:[%s7047_s20 + $0x70] sm:$0xff] %vm3667_vm10, %v3649_v36  ;;  %v3665_v40 = vadd.f32 %v7351_v2, %v3333_v16  ;;  %v3663_v12 = vadd.f32 %v7352_v50, %v3331_v21  ;;  %v3666_v61 = vadd.f32 %v7353_v37, %v3334_v26 }
 0x616   : > { %3683 = vst.msk [vmem:[%s7047_s20 + $0x78] sm:$0xff] %vm3667_vm10, %v3650_v31  ;;  %3684 = vst.msk [vmem:[%s7047_s20 + $0x80] sm:$0xff] %vm3667_vm10, %v3651_v23  ;;  %v3664_v62 = vadd.f32 %v7354_v57, %v7034_v44 }
 0x617   : > { %3686 = vst.msk [vmem:[%s7047_s20 + $0x90] sm:$0xff] %vm3667_vm10, %v3653_v39  ;;  %3685 = vst.msk [vmem:[%s7047_s20 + $0x88] sm:$0xff] %vm3667_vm10, %v3652_v58 }
 0x618   : > { %3690 = vst.msk [vmem:[%s7047_s20 + $0xb0] sm:$0xff] %vm3667_vm10, %v3657_v38  ;;  %3688 = vst.msk [vmem:[%s7047_s20 + $0xa0] sm:$0xff] %vm3667_vm10, %v3655_v41 }
 0x619   : > { %3691 = vst.msk [vmem:[%s7047_s20 + $0xb8] sm:$0xff] %vm3667_vm10, %v3658_v0  ;;  %3689 = vst.msk [vmem:[%s7047_s20 + $0xa8] sm:$0xff] %vm3667_vm10, %v3656_v49 }
 0x61a   : > { %3694 = vst.msk [vmem:[%s7047_s20 + $0xd0] sm:$0xff] %vm3667_vm10, %v3661_v3  ;;  %3692 = vst.msk [vmem:[%s7047_s20 + $0xc0] sm:$0xff] %vm3667_vm10, %v3659_v63 }
 0x61b   : > { %3695 = vst.msk [vmem:[%s7047_s20 + $0xd8] sm:$0xff] %vm3667_vm10, %v3662_v19  ;;  %3693 = vst.msk [vmem:[%s7047_s20 + $0xc8] sm:$0xff] %vm3667_vm10, %v3660_v47 }
 0x61c   : > { %3698 = vst.msk [vmem:[%s7047_s20 + $0xf0] sm:$0xff] %vm3667_vm10, %v3665_v40  ;;  %3696 = vst.msk [vmem:[%s7047_s20 + $0xe0] sm:$0xff] %vm3667_vm10, %v3663_v12 }
 0x61d   : > { %3699 = vst.msk [vmem:[%s7047_s20 + $0xf8] sm:$0xff] %vm3667_vm10, %v3666_v61  ;;  %3697 = vst.msk [vmem:[%s7047_s20 + $0xe8] sm:$0xff] %vm3667_vm10, %v3664_v62 }
 0x61e   : > { %5450 = shalt.err (!%p5447_p7)
}
 0x61f   : > { %s5451_s15 = scalar_lea.hbm %s7114_s16, 4096  ;;  %s5455_s29 = scalar_lea.hbm %s7203_s13, 8192 }
 0x620   : > { %p5452_p8 = scmp.ne.s32.totalorder %s7114_s16, %s5451_s15  ;;  %p5456_p1 = scmp.lt.u32.totalorder %s7114_s16, %s7203_s13 }
 0x621   : > { %p5457_p0 = scmp.lt.u32.totalorder %s5455_s29, %s5451_s15  ;;  %p5459_p6 = scmp.lt.u32.totalorder %s5451_s15, %s7114_s16 }
 0x622   : > { %p5453_p11 = pnand %p5452_p8, %p7355_p9 }
 0x623   : > { %p5458_p5 = por %p5457_p0, %p5456_p1 }
 0x624   : > { %p5454_p13 = pneg %p5453_p11 }
 0x625   : > { %p5460_p10 = por %p5459_p6, %p5458_p5 }
 0x627   : > { %p5461_p12 = pnand %p5460_p10, %p5454_p13 }
 0x629   : > { %5464 = shalt.err (!%p5461_p12)
}
 0x62a   : > { %s5513_s14 = smov 128   ;;  %s5514_s23 = smov 8  }
 0x62b   : > { %5215 = dma.vmem_to_hbm [thread:$0]  (%p7355_p9), %s7116_s24, 4096, %s7114_s16, %s7149_s27, %s5513_s14, %s5513_s14, %s5514_s23  }
 0x62c PF: > { %p5227_p2 = scmp.ge.s32.totalorder %s5503_s28, 2  ;;  %s3729_s22 = sand.u32 1, %s5491_s25  }
 0x62d   : > { %p7356_p3 = scmp.ne.s32.totalorder %s7259_s19, 0  ;;  %s3730_s15 = scalar_lea.sflag [#allocation4], %s3729_s22 }
 0x62f   : > { %p5222_p4 = pnand %p5227_p2, %p7356_p3 }
 0x631   : > { %5486 = dma.done.wait (!%p5222_p4), %s3730_s15, 4096  }
 0x632   : > { %5488 = vsyncadd (!%p5222_p4), %s3730_s15, 4294963200  ;;  %s7357_s28 = sld [smem:[#allocation9_spill]]  ;;  %s7358_s20 = sld [smem:[#allocation8_spill]] }
 0x633   : > { %s7359_s27 = sld [smem:[#allocation10_spill]]  ;;  %s7360_s25 = smov %s5495_s26 }
 0x638   : > { %p24_p7 = scmp.ge.s32.totalorder %s7357_s28, 4   ;;  %s7361_s26 = smov %s7358_s20 }
 0x63a   :  { %26 = sbr.rel (!%p24_p7) target bundleno = 4 (0x4), region = 114 }
 0x641   :  { %3735 = vsyncpa [#allocation3], 1 }
 0x642   :  { %3737 = vsyncpa [#allocation3 + $0x1], 1 }
 0x643   :  { %3738 = vsyncpa [#allocation4], 1 }
 0x644   :  { %3740 = vsyncpa [#allocation4 + $0x1], 1 }

</bundles_post_ra>
